<compile_context>
chip_gen: v6e
topology: v6e:2x2x1
jax: 0.10.0
libtpu: 0.0.40
codegen_flags: <defaults>
</compile_context>

<pallas_src>
import jax
import jax.numpy as jnp
from jax.experimental import pallas as pl
from jax.experimental.pallas import tpu as pltpu

KH = KW = 3
CIN = 256
COUT = 256


def _round_up(v, m):
    return (v + m - 1) // m * m


def _pick_block_rows(h):
    # Largest divisor of H that is <= 8: keeps the per-strip matmul M = TH*WP a few
    # hundred rows, bounds VMEM per step (v7x: 64 MiB physical), and gives the grid
    # more than one step along H so the pipeline has depth.
    for th in range(min(h, 8), 0, -1):
        if h % th == 0:
            return th
    return 1


def smooth_kernel(x_ref, halo_ref, w_ref, b_ref, o_ref, xs_ref):
    """3x3 conv (pad 1) over one (batch, row-strip) tile.

    x_ref:    (1, TH, WP, CIN)  bf16 body rows; width pre-padded (1 zero col left,
                                zeros up to WP on the right), WP % 8 == 0.
    halo_ref: (1, 2, WP, CIN)   bf16 [row above strip, row below strip] (zeros at edges).
    w_ref:    (3*CIN, 3*COUT)   bf16 im2col weights (rows kh-major, cols kw-major).
    b_ref:    (1, COUT)         f32 bias.
    o_ref:    (1, TH, W, COUT)  output strip.
    xs_ref:   (TH, WP, 3*CIN)   bf16 scratch: per row, channel bands [row-1 | row | row+1].
    """
    th, wp, cin = x_ref.shape[1], x_ref.shape[2], x_ref.shape[3]
    w_out, cout = o_ref.shape[2], o_ref.shape[3]
    m = th * wp

    body = x_ref[0]                                           # (TH, WP, CIN)

    # --- im2col over kh: three channel bands, assembled with leading-axis (row)
    #     and lane-aligned (channel) copies only -> no sublane relayouts.
    xs_ref[0, :, 0:cin] = halo_ref[0, 0]                      # row above the strip
    xs_ref[:, :, cin:2 * cin] = body                          # the row itself
    xs_ref[th - 1, :, 2 * cin:3 * cin] = halo_ref[0, 1]       # row below the strip
    if th > 1:
        xs_ref[pl.ds(1, th - 1), :, 0:cin] = body[:th - 1]
        xs_ref[pl.ds(0, th - 1), :, 2 * cin:3 * cin] = body[1:]

    # --- one MXU matmul covers all 9 taps:
    #     K = 3*CIN folds the kh taps, N = 3*COUT keeps the three kw taps separate.
    x2d = xs_ref[...].reshape(m, 3 * cin)                     # free: WP % 8 == 0
    y = jnp.dot(x2d, w_ref[...], preferred_element_type=jnp.float32)   # (M, 3*COUT) f32

    # --- fold the kw (column) shift with XLU rolls on the row-flattened result:
    #     out[p] = sum_kw y[p + kw, kw-band];  roll(v, M - kw)[p] == v[(p + kw) % M].
    #     Wrap-around / row-crossing spill lands only in the discarded pad columns.
    acc = y[:, 0:cout]
    acc = acc + pltpu.roll(y[:, cout:2 * cout], m - 1, axis=0)
    acc = acc + pltpu.roll(y[:, 2 * cout:3 * cout], m - 2, axis=0)

    out = acc.reshape(th, wp, cout)[:, 0:w_out, :] + b_ref[0]  # bias in f32
    o_ref[0] = out.astype(o_ref.dtype)


@jax.jit
def smooth_forward(x_nchw, weight_oihw, bias):
    """Forward of Smooth: conv 3x3, stride 1, pad 1, 256->256, with bias (NCHW)."""
    N, C, H, W = x_nchw.shape
    assert C == CIN
    TH = _pick_block_rows(H)
    n_th = H // TH
    WP = _round_up(W + 2, 8)

    # Layout glue (one fused XLA pass): NCHW->NHWC, bf16 cast, width padding only.
    x_nhwc = jnp.transpose(x_nchw, (0, 2, 3, 1)).astype(jnp.bfloat16)
    x_wp = jnp.pad(x_nhwc, ((0, 0), (0, 0), (1, WP - W - 1), (0, 0)))  # (N,H,WP,CIN)

    # Tiny halo side-array: for each strip t, [row t*TH-1, row (t+1)*TH] (zeros at edges).
    zrow = jnp.zeros((N, 1, WP, CIN), jnp.bfloat16)
    if n_th > 1:
        tops = jnp.concatenate([zrow, x_wp[:, TH - 1::TH][:, :n_th - 1]], axis=1)
        bots = jnp.concatenate([x_wp[:, TH::TH][:, :n_th - 1], zrow], axis=1)
    else:
        tops, bots = zrow, zrow
    halo = jnp.stack([tops, bots], axis=2).reshape(N, 2 * n_th, WP, CIN)

    # im2col weights: row index = kh*CIN + cin, col index = kw*COUT + cout.
    w_mat = jnp.transpose(weight_oihw, (2, 1, 3, 0)).reshape(
        KH * CIN, KW * COUT).astype(jnp.bfloat16)
    b2 = bias.reshape(1, COUT).astype(jnp.float32)

    flops = 2 * N * H * W * KH * KW * CIN * COUT
    out_bytes = N * H * W * COUT * jnp.dtype(x_nchw.dtype).itemsize
    bytes_accessed = int((x_wp.size + halo.size + w_mat.size) * 2 + b2.size * 4 + out_bytes)

    out_nhwc = pl.pallas_call(
        smooth_kernel,
        out_shape=jax.ShapeDtypeStruct((N, H, W, COUT), x_nchw.dtype),
        grid_spec=pltpu.PrefetchScalarGridSpec(
            num_scalar_prefetch=0,
            grid=(N, n_th),
            in_specs=[
                pl.BlockSpec((1, TH, WP, CIN), lambda n, t: (n, t, 0, 0)),
                pl.BlockSpec((1, 2, WP, CIN), lambda n, t: (n, t, 0, 0)),
                pl.BlockSpec((KH * CIN, KW * COUT), lambda n, t: (0, 0)),
                pl.BlockSpec((1, COUT), lambda n, t: (0, 0)),
            ],
            out_specs=pl.BlockSpec((1, TH, W, COUT), lambda n, t: (n, t, 0, 0)),
            scratch_shapes=[pltpu.VMEM((TH, WP, 3 * CIN), jnp.bfloat16)],
        ),
        compiler_params=pltpu.CompilerParams(
            dimension_semantics=("parallel", "parallel"),
            vmem_limit_bytes=32 * 1024 * 1024,
        ),
        cost_estimate=pl.CostEstimate(
            flops=flops, transcendentals=0, bytes_accessed=bytes_accessed),
    )(x_wp, halo, w_mat, b2)

    return jnp.transpose(out_nhwc, (0, 3, 1, 2))               # back to NCHW


def reference_forward(x_nchw, weight_oihw, bias):
    """Plain-JAX reference with the same bf16 inputs / f32 accumulation as the kernel."""
    out = jax.lax.conv_general_dilated(
        x_nchw.astype(jnp.bfloat16), weight_oihw.astype(jnp.bfloat16),
        window_strides=(1, 1), padding=((1, 1), (1, 1)),
        dimension_numbers=("NCHW", "OIHW", "NCHW"),
        preferred_element_type=jnp.float32)
    return out + bias.reshape(1, COUT, 1, 1)


if __name__ == "__main__":
    key = jax.random.PRNGKey(0)
    kx, kwt, kb = jax.random.split(key, 3)

    # Small spatial / batch; channels fixed at 256 by the module definition.
    N, H, W = 2, 16, 16
    x = jax.random.normal(kx, (N, CIN, H, W), dtype=jnp.float32)

    # PyTorch-style uniform(-bound, bound) init, bound = 1/sqrt(Cin*KH*KW).
    fan_in = CIN * KH * KW
    bound = 1.0 / (fan_in ** 0.5)
    weight = jax.random.uniform(kwt, (COUT, CIN, KH, KW), jnp.float32,
                                minval=-bound, maxval=bound)
    bias = jax.random.uniform(kb, (COUT,), jnp.float32, minval=-bound, maxval=bound)

    out = jax.block_until_ready(smooth_forward(x, weight, bias))
    assert out.shape == (N, COUT, H, W)
    assert out.dtype == x.dtype

    ref = reference_forward(x, weight, bias)
    max_err = float(jnp.max(jnp.abs(out - ref)))
    assert jnp.allclose(out, ref, atol=1e-2, rtol=1e-2), \
        f"mismatch vs reference conv (max abs err {max_err})"

    print("KERNEL_OK")
</pallas_src>

<mosaic_0001>
module attributes {stable_mosaic.version = 11 : i64} {
  func.func @smooth_kernel(%arg0: i32, %arg1: i32, %arg2: memref<1x8x24x256xbf16, #tpu.memory_space<vmem>>, %arg3: memref<1x2x24x256xbf16, #tpu.memory_space<vmem>>, %arg4: memref<768x768xbf16, #tpu.memory_space<vmem>>, %arg5: memref<1x256xf32, #tpu.memory_space<vmem>>, %arg6: memref<1x8x16x256xf32, #tpu.memory_space<vmem>>, %arg7: memref<8x24x768xbf16, #tpu.memory_space<vmem>>) attributes {dimension_semantics = [#tpu.dimension_semantics<parallel>, #tpu.dimension_semantics<parallel>], iteration_bounds = array<i64: 2, 2>, scalar_prefetch = 0 : i64, scratch_operands = 1 : i64, tpu.core_type = #tpu.core_type<tc>, window_params = [{transform_indices = @transform_0, window_bounds = array<i64: 1, 8, 24, 256>}, {transform_indices = @transform_1, window_bounds = array<i64: 1, 2, 24, 256>}, {pipeline_mode = #tpu.pipeline_mode<synchronous>, transform_indices = @transform_2, window_bounds = array<i64: 768, 768>}, {pipeline_mode = #tpu.pipeline_mode<synchronous>, transform_indices = @transform_3, window_bounds = array<i64: 1, 256>}, {transform_indices = @transform_4, window_bounds = array<i64: 1, 8, 16, 256>}]} {
    %c0 = arith.constant 0 : index
    %c0_0 = arith.constant 0 : index
    %c0_1 = arith.constant 0 : index
    %c0_2 = arith.constant 0 : index
    %0 = vector.load %arg2[%c0, %c0_0, %c0_1, %c0_2] : memref<1x8x24x256xbf16, #tpu.memory_space<vmem>>, vector<1x8x24x256xbf16>
    %1 = vector.shape_cast %0 : vector<1x8x24x256xbf16> to vector<8x24x256xbf16>
    %c0_3 = arith.constant 0 : index
    %c0_4 = arith.constant 0 : index
    %c0_5 = arith.constant 0 : index
    %c0_6 = arith.constant 0 : index
    %2 = vector.load %arg3[%c0_3, %c0_4, %c0_5, %c0_6] : memref<1x2x24x256xbf16, #tpu.memory_space<vmem>>, vector<1x1x24x256xbf16>
    %3 = vector.shape_cast %2 : vector<1x1x24x256xbf16> to vector<24x256xbf16>
    %c0_7 = arith.constant 0 : index
    %c0_8 = arith.constant 0 : index
    %c0_9 = arith.constant 0 : index
    %4 = vector.load %arg7[%c0_7, %c0_8, %c0_9] : memref<8x24x768xbf16, #tpu.memory_space<vmem>>, vector<1x24x256xbf16>
    %5 = vector.shape_cast %4 : vector<1x24x256xbf16> to vector<24x256xbf16>
    %6 = vector.shape_cast %3 : vector<24x256xbf16> to vector<1x24x256xbf16>
    tpu.vector_store %arg7[%c0_7, %c0_8, %c0_9], %6 {strides = array<i32>} : memref<8x24x768xbf16, #tpu.memory_space<vmem>>, vector<1x24x256xbf16>,
    %c0_10 = arith.constant 0 : index
    %c0_11 = arith.constant 0 : index
    %c256 = arith.constant 256 : index
    %7 = vector.load %arg7[%c0_10, %c0_11, %c256] : memref<8x24x768xbf16, #tpu.memory_space<vmem>>, vector<8x24x256xbf16>
    tpu.vector_store %arg7[%c0_10, %c0_11, %c256], %1 {strides = array<i32>} : memref<8x24x768xbf16, #tpu.memory_space<vmem>>, vector<8x24x256xbf16>,
    %c0_12 = arith.constant 0 : index
    %c1 = arith.constant 1 : index
    %c0_13 = arith.constant 0 : index
    %c0_14 = arith.constant 0 : index
    %8 = vector.load %arg3[%c0_12, %c1, %c0_13, %c0_14] : memref<1x2x24x256xbf16, #tpu.memory_space<vmem>>, vector<1x1x24x256xbf16>
    %9 = vector.shape_cast %8 : vector<1x1x24x256xbf16> to vector<24x256xbf16>
    %c7 = arith.constant 7 : index
    %c0_15 = arith.constant 0 : index
    %c512 = arith.constant 512 : index
    %10 = vector.load %arg7[%c7, %c0_15, %c512] : memref<8x24x768xbf16, #tpu.memory_space<vmem>>, vector<1x24x256xbf16>
    %11 = vector.shape_cast %10 : vector<1x24x256xbf16> to vector<24x256xbf16>
    %12 = vector.shape_cast %9 : vector<24x256xbf16> to vector<1x24x256xbf16>
    tpu.vector_store %arg7[%c7, %c0_15, %c512], %12 {strides = array<i32>} : memref<8x24x768xbf16, #tpu.memory_space<vmem>>, vector<1x24x256xbf16>,
    %13 = vector.extract_strided_slice %1 {offsets = [0, 0, 0], sizes = [7, 24, 256], strides = [1, 1, 1]} : vector<8x24x256xbf16> to vector<7x24x256xbf16>
    %c1_16 = arith.constant 1 : index
    %c0_17 = arith.constant 0 : index
    %c0_18 = arith.constant 0 : index
    %14 = vector.load %arg7[%c1_16, %c0_17, %c0_18] : memref<8x24x768xbf16, #tpu.memory_space<vmem>>, vector<7x24x256xbf16>
    tpu.vector_store %arg7[%c1_16, %c0_17, %c0_18], %13 {strides = array<i32>} : memref<8x24x768xbf16, #tpu.memory_space<vmem>>, vector<7x24x256xbf16>,
    %15 = vector.extract_strided_slice %1 {offsets = [1, 0, 0], sizes = [7, 24, 256], strides = [1, 1, 1]} : vector<8x24x256xbf16> to vector<7x24x256xbf16>
    %c0_19 = arith.constant 0 : index
    %c0_20 = arith.constant 0 : index
    %c512_21 = arith.constant 512 : index
    %16 = vector.load %arg7[%c0_19, %c0_20, %c512_21] : memref<8x24x768xbf16, #tpu.memory_space<vmem>>, vector<7x24x256xbf16>
    tpu.vector_store %arg7[%c0_19, %c0_20, %c512_21], %15 {strides = array<i32>} : memref<8x24x768xbf16, #tpu.memory_space<vmem>>, vector<7x24x256xbf16>,
    %c0_22 = arith.constant 0 : index
    %c0_23 = arith.constant 0 : index
    %c0_24 = arith.constant 0 : index
    %17 = vector.load %arg7[%c0_22, %c0_23, %c0_24] : memref<8x24x768xbf16, #tpu.memory_space<vmem>>, vector<8x24x768xbf16>
    %18 = vector.shape_cast %17 : vector<8x24x768xbf16> to vector<192x768xbf16>
    %c0_25 = arith.constant 0 : index
    %c0_26 = arith.constant 0 : index
    %19 = vector.load %arg4[%c0_25, %c0_26] : memref<768x768xbf16, #tpu.memory_space<vmem>>, vector<768x768xbf16>
    %cst = arith.constant dense<0.000000e+00> : vector<192x768xf32>
    %20 = tpu.matmul %18, %19, %cst {dimension_numbers = #tpu.dot_dimension_numbers<[1], [0], [0], [1], [0, 0, 1, 1], [], []>} : vector<192x768xbf16>, vector<768x768xbf16>, vector<192x768xf32> -> vector<192x768xf32>
    %21 = vector.extract_strided_slice %20 {offsets = [0, 0], sizes = [192, 256], strides = [1, 1]} : vector<192x768xf32> to vector<192x256xf32>
    %22 = vector.extract_strided_slice %20 {offsets = [0, 256], sizes = [192, 256], strides = [1, 1]} : vector<192x768xf32> to vector<192x256xf32>
    %c191_i32 = arith.constant 191 : i32
    %23 = tpu.dynamic_rotate %22 by %c191_i32 dim 0 : vector<192x256xf32>, i32 -> vector<192x256xf32>
    %24 = arith.addf %21, %23 : vector<192x256xf32>
    %25 = vector.extract_strided_slice %20 {offsets = [0, 512], sizes = [192, 256], strides = [1, 1]} : vector<192x768xf32> to vector<192x256xf32>
    %c190_i32 = arith.constant 190 : i32
    %26 = tpu.dynamic_rotate %25 by %c190_i32 dim 0 : vector<192x256xf32>, i32 -> vector<192x256xf32>
    %27 = arith.addf %24, %26 : vector<192x256xf32>
    %28 = vector.shape_cast %27 : vector<192x256xf32> to vector<8x24x256xf32>
    %29 = vector.extract_strided_slice %28 {offsets = [0, 0, 0], sizes = [8, 16, 256], strides = [1, 1, 1]} : vector<8x24x256xf32> to vector<8x16x256xf32>
    %c0_27 = arith.constant 0 : index
    %c0_28 = arith.constant 0 : index
    %30 = vector.load %arg5[%c0_27, %c0_28] : memref<1x256xf32, #tpu.memory_space<vmem>>, vector<1x256xf32>
    %31 = vector.shape_cast %30 : vector<1x256xf32> to vector<256xf32>
    %32 = vector.shape_cast %31 : vector<256xf32> to vector<1x1x256xf32>
    %33 = vector.broadcast %32 : vector<1x1x256xf32> to vector<8x16x256xf32>
    %34 = arith.addf %29, %33 : vector<8x16x256xf32>
    %c0_29 = arith.constant 0 : index
    %c0_30 = arith.constant 0 : index
    %c0_31 = arith.constant 0 : index
    %c0_32 = arith.constant 0 : index
    %35 = vector.load %arg6[%c0_29, %c0_30, %c0_31, %c0_32] : memref<1x8x16x256xf32, #tpu.memory_space<vmem>>, vector<1x8x16x256xf32>
    %36 = vector.shape_cast %35 : vector<1x8x16x256xf32> to vector<8x16x256xf32>
    %37 = vector.shape_cast %34 : vector<8x16x256xf32> to vector<1x8x16x256xf32>
    tpu.vector_store %arg6[%c0_29, %c0_30, %c0_31, %c0_32], %37 {strides = array<i32>} : memref<1x8x16x256xf32, #tpu.memory_space<vmem>>, vector<1x8x16x256xf32>,
    return
  }
  func.func @transform_0(%arg0: i32, %arg1: i32) -> (i32, i32, i32, i32) {
    %c0_i32 = arith.constant 0 : i32
    %c0_i32_0 = arith.constant 0 : i32
    %c0_i32_1 = arith.constant 0 : i32
    return %arg0, %arg1, %c0_i32, %c0_i32_0 : i32, i32, i32, i32
  }
  func.func @transform_1(%arg0: i32, %arg1: i32) -> (i32, i32, i32, i32) {
    %c0_i32 = arith.constant 0 : i32
    %c0_i32_0 = arith.constant 0 : i32
    %c0_i32_1 = arith.constant 0 : i32
    return %arg0, %arg1, %c0_i32, %c0_i32_0 : i32, i32, i32, i32
  }
  func.func @transform_2(%arg0: i32, %arg1: i32) -> (i32, i32) {
    %c0_i32 = arith.constant 0 : i32
    %c0_i32_0 = arith.constant 0 : i32
    %c0_i32_1 = arith.constant 0 : i32
    return %c0_i32, %c0_i32_0 : i32, i32
  }
  func.func @transform_3(%arg0: i32, %arg1: i32) -> (i32, i32) {
    %c0_i32 = arith.constant 0 : i32
    %c0_i32_0 = arith.constant 0 : i32
    %c0_i32_1 = arith.constant 0 : i32
    return %c0_i32, %c0_i32_0 : i32, i32
  }
  func.func @transform_4(%arg0: i32, %arg1: i32) -> (i32, i32, i32, i32) {
    %c0_i32 = arith.constant 0 : i32
    %c0_i32_0 = arith.constant 0 : i32
    %c0_i32_1 = arith.constant 0 : i32
    return %arg0, %arg1, %c0_i32, %c0_i32_0 : i32, i32, i32, i32
  }
}

</mosaic_0001>

<bundles_post_ra>
// kernel: smooth_forward.1
= control target key start
LH: loop header
LB: loop body
LE: loop exit
PB: predicated region body
PF: predicated region fallthrough
CT: control target
= control target key end

     0   :  { %9 = vsyncpa [#allocation4], 0  ;;  %s7642_s0 = inlined_call_operand.vmem [shape: bf16[2,16,24,256], index: 0, kind: input, shape index: {}]   ;;  %s7643_s1 = inlined_call_operand.vmem [shape: bf16[2,4,24,256], index: 1, kind: input, shape index: {}]   ;;  %s7644_s2 = inlined_call_operand.vmem [shape: bf16[768,768], index: 2, kind: input, shape index: {}]   ;;  %s7645_s3 = inlined_call_operand.vmem [shape: f32[1,256], index: 3, kind: input, shape index: {}]   ;;  %s7646_s4 = inlined_call_operand.hbm [shape: f32[2,16,16,256], index: 4, kind: output, shape index: {}]  }
   0x1   :  { %11 = vsyncpa [#allocation4 + $0x1], 0  ;;  %s5390_s15 = smov 0   ;;  %s5392_s16 = smov 0  }
   0x2   :  { %s5394_s17 = smov 0   ;;  %s5396_s18 = smov 0  }
   0x3   :  { %s5398_s19 = smov 0   ;;  %s5400_s20 = smov 0  }
   0x4   :  { %s5402_s21 = smov 0   ;;  %s5404_s22 = smov 0  }
   0x5 LB: > { %7696 = sst [smem:[#allocation6_spill]] %s5356_s21  ;;  %s4290_s23 = sadd.s32 4294967295, %s5360_s22   ;;  %s5360_s22 = sphi %s5404_s22, %s17_s22   ;;  %s5356_s21 = sphi %s5402_s21, %s7969_s21   ;;  %s5352_s20 = sphi %s5400_s20, %s7974_s20   ;;  %s5348_s19 = sphi %s5398_s19, %s7967_s19   ;;  %s5344_s18 = sphi %s5396_s18, %s7973_s18   ;;  %s5340_s17 = sphi %s5394_s17, %s7972_s17   ;;  %s5336_s16 = sphi %s5392_s16, %s7971_s16   ;;  %s5332_s15 = sphi %s5390_s15, %s7970_s15  }
   0x6   : > { %s4291_s24 = sadd.s32 4294967294, %s5360_s22   ;;  %s26_s25 = sadd.s32 1, %s5352_s20 }
   0x7   : > { %p27_p0 = scmp.ge.s32.totalorder %s26_s25, 2  ;;  %s29_s26 = sadd.s32 1, %s5356_s21 }
   0x8   : > { %p146_p1 = scmp.ne.s32.totalorder %s5340_s17, %s5336_s16  ;;  %p147_p2 = scmp.eq.s32.totalorder %s4290_s23, 3 }
   0x9   : > { %s7976_s25 = smov (%p27_p0, %s26_s25), 0  ;;  %s7978_s26 = smov (!%p27_p0, %s29_s26), %s5356_s21 }
   0xa   : > { %7697 = sst [smem:[#allocation7_spill]] %s7976_s25  ;;  %s132_s27 = ssub.s32 %s5352_s20, %s7976_s25 }
   0xb   : > { %p5441_p3 = por %p147_p2, %p146_p1  ;;  %p31_p4 = scmp.ge.s32.totalorder %s7978_s26, 2 }
   0xc   : > { %p152_p5 = scmp.ne.s32.totalorder %s5336_s16, %s5332_s15  ;;  %p153_p6 = scmp.eq.s32.totalorder %s4291_s24, 3 }
   0xd   : > { %p4294_p7 = scmp.ge.s32.totalorder %s5360_s22, 1  ;;  %s7980_s26 = smov (%p31_p4, %s7978_s26), 0 }
   0xe   : > { %7699 = sst [smem:[#allocation8_spill]] %s7980_s26  ;;  %p5450_p8 = por %p153_p6, %p152_p5 }
   0xf   : > { %p205_p9 = scmp.lt.s32.totalorder %s5360_s22, 5  ;;  %s131_s30 = ssub.s32 %s5356_s21, %s7980_s26 }
  0x10   : > { %s136_s5 = sadd.s32 1, %s5340_s17  ;;  %s133_s6 = sor.u32 %s132_s27, %s131_s30 }
  0x11   : > { %p206_p10 = pnand %p4294_p7, %p205_p9  ;;  %p134_p11 = scmp.eq.s32.totalorder %s133_s6, 0 }
  0x13   : > { %s5459_s7 = scalar_select %p134_p11, %s5340_s17, %s136_s5  }
  0x14   : > { %209 = sbr.rel (%p206_p10) target bundleno = 738 (0x2e2), region = 36 }
  0x19   : > { %v4780_v0 = vld [vmem:[%s7644_s2 + $0x154] ss:$24 sps:$4 sm:$0xff]   ;;  %v4784_v2 = vld [vmem:[%s7644_s2 + $0x150] ss:$24 sps:$4 sm:$0xff]   ;;  %v4786_v4 = vld [vmem:[%s7644_s2 + $0x124] ss:$24 sps:$4 sm:$0xff]  }
  0x1a   : > { %v4782_v1 = vld [vmem:[%s7644_s2 + $0x454] ss:$24 sps:$4 sm:$0xff]   ;;  %2534 = vmatprep.subr.bf16.mxu0 %v4780_v0  ;;  %v4785_v3 = vld [vmem:[%s7644_s2 + $0x450] ss:$24 sps:$4 sm:$0xff]   ;;  %v4788_v5 = vld [vmem:[%s7644_s2 + $0x424] ss:$24 sps:$4 sm:$0xff]  }
  0x1b   : > { %2671 = vmatprep.subr.bf16.mxu1 %v4782_v1  ;;  %2535 = vmatpush1.bf16.msra.mxu0 %v4784_v2  ;;  %v4790_v6 = vld [vmem:[%s7644_s2 + $0x120] ss:$24 sps:$4 sm:$0xff]   ;;  %v4792_v8 = vld [vmem:[%s7644_s2 + $0xf4] ss:$24 sps:$4 sm:$0xff]   ;;  %v4796_v10 = vld [vmem:[%s7644_s2 + $0xf0] ss:$24 sps:$4 sm:$0xff]  }
  0x1c   : > { %2672 = vmatpush1.bf16.msra.mxu1 %v4785_v3  ;;  %2536 = vmatprep.subr.bf16.mxu0 %v4786_v4  ;;  %v4791_v7 = vld [vmem:[%s7644_s2 + $0x420] ss:$24 sps:$4 sm:$0xff]   ;;  %v4794_v9 = vld [vmem:[%s7644_s2 + $0x3f4] ss:$24 sps:$4 sm:$0xff]   ;;  %v4797_v11 = vld [vmem:[%s7644_s2 + $0x3f0] ss:$24 sps:$4 sm:$0xff]  }
  0x1d   : > { %2673 = vmatprep.subr.bf16.mxu1 %v4788_v5  ;;  %v4798_v12 = vld [vmem:[%s7644_s2 + $0xc4] ss:$24 sps:$4 sm:$0xff]   ;;  %v4802_v14 = vld [vmem:[%s7644_s2 + $0xc0] ss:$24 sps:$4 sm:$0xff]   ;;  %v4804_v16 = vld [vmem:[%s7644_s2 + $0x94] ss:$24 sps:$4 sm:$0xff]  }
  0x1e   : > { %v4800_v13 = vld [vmem:[%s7644_s2 + $0x3c4] ss:$24 sps:$4 sm:$0xff]   ;;  %v4803_v15 = vld [vmem:[%s7644_s2 + $0x3c0] ss:$24 sps:$4 sm:$0xff]   ;;  %v4806_v17 = vld [vmem:[%s7644_s2 + $0x394] ss:$24 sps:$4 sm:$0xff]  }
  0x1f   : > { %2537 = vmatpush1.bf16.msra.mxu0 %v4790_v6  ;;  %v4808_v18 = vld [vmem:[%s7644_s2 + $0x90] ss:$24 sps:$4 sm:$0xff]   ;;  %v4810_v20 = vld [vmem:[%s7644_s2 + $0x64] ss:$24 sps:$4 sm:$0xff]   ;;  %s4296_s13 = sshll.u32 %s5344_s18, 3  ;;  %p247_p12 = scmp.lt.s32.totalorder %s5348_s19, 1 }
  0x20   : > { %2674 = vmatpush1.bf16.msra.mxu1 %v4791_v7  ;;  %2538 = vmatprep.subr.bf16.mxu0 %v4792_v8  ;;  %v4809_v19 = vld [vmem:[%s7644_s2 + $0x390] ss:$24 sps:$4 sm:$0xff]   ;;  %v4812_v21 = vld [vmem:[%s7644_s2 + $0x364] ss:$24 sps:$4 sm:$0xff]   ;;  %v4814_v22 = vld [vmem:[%s7644_s2 + $0x60] ss:$24 sps:$4 sm:$0xff]  }
  0x21   : > { %2675 = vmatprep.subr.bf16.mxu1 %v4794_v9  ;;  %s4298_s24 = sshll.u32 %s5344_s18, 1  ;;  %v4815_v23 = vld [vmem:[%s7644_s2 + $0x360] ss:$24 sps:$4 sm:$0xff]   ;;  %v4816_v24 = vld [vmem:[%s7644_s2 + $0x34] ss:$24 sps:$4 sm:$0xff]   ;;  %p249_p13 = scmp.lt.s32.totalorder %s4296_s13, 15 }
  0x22   : > { %v4818_v25 = vld [vmem:[%s7644_s2 + $0x334] ss:$24 sps:$4 sm:$0xff]   ;;  %p260_p0 = scmp.lt.s32.totalorder %s4298_s24, 3  ;;  %v4820_v26 = vld [vmem:[%s7644_s2 + $0x30] ss:$24 sps:$4 sm:$0xff]   ;;  %s4670_s14 = sshll.u32 %s5344_s18, 5 }
  0x23   : > { %2539 = vmatpush1.bf16.msra.mxu0 %v4796_v10  ;;  %v4821_v27 = vld [vmem:[%s7644_s2 + $0x330] ss:$24 sps:$4 sm:$0xff]   ;;  %s5549_s23 = scalar_select %p247_p12, %s5348_s19, 1  ;;  %v4822_v28 = vld [vmem:[%s7644_s2 + $0x4] ss:$24 sps:$4 sm:$0xff]  }
  0x24   : > { %2676 = vmatpush1.bf16.msra.mxu1 %v4797_v11  ;;  %2540 = vmatprep.subr.bf16.mxu0 %v4798_v12  ;;  %s7982_s13 = smov (!%p249_p13, %s4296_s13), 15  ;;  %v4824_v29 = vld [vmem:[%s7644_s2 + $0x304] ss:$24 sps:$4 sm:$0xff]   ;;  %s7984_s24 = smov (!%p260_p0, %s4298_s24), 3  ;;  %v4826_v30 = vld [vmem:[%s7644_s2] ss:$24 sps:$4 sm:$0xff]  }
  0x25   : > { %2677 = vmatprep.subr.bf16.mxu1 %v4800_v13  ;;  %s4704_s10 = smul.u32 96, %s5549_s23  ;;  %v4827_v31 = vld [vmem:[%s7644_s2 + $0x300] ss:$24 sps:$4 sm:$0xff]   ;;  %v4828_v32 = vld [vmem:[%s7644_s2 + $0x2d4] ss:$24 sps:$4 sm:$0xff]   ;;  %s4666_s27 = sshll.u32 %s5348_s19, 6 }
  0x26   : > { %s4703_s30 = smul.u32 6, %s7982_s13  ;;  %v4830_v33 = vld [vmem:[%s7644_s2 + $0x5d4] ss:$24 sps:$4 sm:$0xff]   ;;  %v4832_v34 = vld [vmem:[%s7644_s2 + $0x2d0] ss:$24 sps:$4 sm:$0xff]   ;;  %s4181_s18 = sadd.s32 %s4670_s14, %s4666_s27 }
  0x27   : > { %2541 = vmatpush1.bf16.msra.mxu0 %v4802_v14  ;;  %s4706_s8 = smul.u32 24, %s5549_s23  ;;  %v4833_v35 = vld [vmem:[%s7644_s2 + $0x5d0] ss:$24 sps:$4 sm:$0xff]   ;;  %v4834_v36 = vld [vmem:[%s7644_s2 + $0x2a4] ss:$24 sps:$4 sm:$0xff]   ;;  %s4667_s25 = sshll.u32 %s4181_s18, 7 }
  0x28   : > { %2678 = vmatpush1.bf16.msra.mxu1 %v4803_v15  ;;  %2542 = vmatprep.subr.bf16.mxu0 %v4804_v16  ;;  %s4705_s9 = smul.u32 6, %s7984_s24  ;;  %v4836_v37 = vld [vmem:[%s7644_s2 + $0x5a4] ss:$24 sps:$4 sm:$0xff]   ;;  %s253_s24 = sadd.s32 %s4704_s10, %s4703_s30  ;;  %v4838_v38 = vld [vmem:[%s7644_s2 + $0x2a0] ss:$24 sps:$4 sm:$0xff]  }
  0x29   : > { %2679 = vmatprep.subr.bf16.mxu1 %v4806_v17  ;;  %v4839_v39 = vld [vmem:[%s7644_s2 + $0x5a0] ss:$24 sps:$4 sm:$0xff]   ;;  %v4840_v40 = vld [vmem:[%s7644_s2 + $0x274] ss:$24 sps:$4 sm:$0xff]   ;;  %s4297_s10 = sshll.u32 %s253_s24, 2  ;;  %s7583_s5 = scalar_lea.hbm %s7646_s4, %s4667_s25 }
  0x2a   : > { %s264_s23 = sadd.s32 %s4706_s8, %s4705_s9  ;;  %v4842_v41 = vld [vmem:[%s7644_s2 + $0x574] ss:$24 sps:$4 sm:$0xff]   ;;  %v4844_v42 = vld [vmem:[%s7644_s2 + $0x270] ss:$24 sps:$4 sm:$0xff]   ;;  %v4846_v44 = vld [vmem:[%s7644_s2 + $0x244] ss:$24 sps:$4 sm:$0xff]   ;;  %s5607_s6 = scalar_lea.vmem %s7642_s0, %s4297_s10 }
  0x2b   : > { %2543 = vmatpush1.bf16.msra.mxu0 %v4808_v18  ;;  %s4299_s30 = sshll.u32 %s264_s23, 2  ;;  %v4845_v43 = vld [vmem:[%s7644_s2 + $0x570] ss:$24 sps:$4 sm:$0xff]   ;;  %v4848_v45 = vld [vmem:[%s7644_s2 + $0x544] ss:$24 sps:$4 sm:$0xff]   ;;  %s243_s9 = sand.u32 1, %s5336_s16  }
  0x2c   : > { %2680 = vmatpush1.bf16.msra.mxu1 %v4809_v19  ;;  %2544 = vmatprep.subr.bf16.mxu0 %v4810_v20  ;;  %s5612_s11 = scalar_lea.vmem %s7643_s1, %s4299_s30  ;;  %v4850_v46 = vld [vmem:[%s7644_s2 + $0x240] ss:$24 sps:$4 sm:$0xff]   ;;  %v5630_v50 = vld [vmem:[%s5607_s6 + $0x8] sm:$0xff]  ;;  %v4858_v56 = vld [vmem:[%s7644_s2 + $0x1e4] ss:$24 sps:$4 sm:$0xff]   ;;  %s4295_s10 = sshll.u32 %s243_s9, 8 }
  0x2d   : > { %2681 = vmatprep.subr.bf16.mxu1 %v4812_v21  ;;  %v5621_v47 = vld [vmem:[%s5612_s11 + $0x4] ss:$8 sps:$4 sm:$0xff]   ;;  %v4851_v49 = vld [vmem:[%s7644_s2 + $0x540] ss:$24 sps:$4 sm:$0xff]   ;;  %v4856_v54 = vld [vmem:[%s7644_s2 + $0x210] ss:$24 sps:$4 sm:$0xff]  }
  0x2e   : > { %v5624_v48 = vld [vmem:[%s5607_s6] sm:$0xff]  ;;  %v4852_v51 = vld [vmem:[%s7644_s2 + $0x214] ss:$24 sps:$4 sm:$0xff]   ;;  %2566 = vmatprep.mubr.bf16.mxu0 %v5621_v47  ;;  %v4857_v55 = vld [vmem:[%s7644_s2 + $0x510] ss:$24 sps:$4 sm:$0xff]   ;;  %s7379_s30 = scalar_lea.vmem [#allocation3], %s4295_s10 }
  0x2f   : > { %2545 = vmatpush1.bf16.msra.mxu0 %v4814_v22  ;;  %v4854_v52 = vld [vmem:[%s7644_s2 + $0x514] ss:$24 sps:$4 sm:$0xff]   ;;  %v5640_v53 = vcombine.high %v5624_v48, %v5630_v50  ;;  %v4860_v57 = vld [vmem:[%s7644_s2 + $0x4e4] ss:$24 sps:$4 sm:$0xff]   ;;  %v4862_v58 = vld [vmem:[%s7644_s2 + $0x1e0] ss:$24 sps:$4 sm:$0xff]   ;;  %v5701_v9 = vcombine.low %v5624_v48, %v5630_v50 }
  0x30   : > { %2682 = vmatpush1.bf16.msra.mxu1 %v4815_v23  ;;  %2546 = vmatprep.subr.bf16.mxu0 %v4816_v24  ;;  %v4863_v59 = vld [vmem:[%s7644_s2 + $0x4e0] ss:$24 sps:$4 sm:$0xff]   ;;  %v4864_v60 = vld [vmem:[%s7644_s2 + $0x1b4] ss:$24 sps:$4 sm:$0xff]   ;;  %v4868_v62 = vld [vmem:[%s7644_s2 + $0x1b0] ss:$24 sps:$4 sm:$0xff]  }
  0x31   : > { %2683 = vmatprep.subr.bf16.mxu1 %v4818_v25  ;;  %2703 = vmatprep.mubr.bf16.mxu1 %v5640_v53  ;;  %v4866_v61 = vld [vmem:[%s7644_s2 + $0x4b4] ss:$24 sps:$4 sm:$0xff]   ;;  %v4869_v63 = vld [vmem:[%s7644_s2 + $0x4b0] ss:$24 sps:$4 sm:$0xff]   ;;  %v4870_v0 = vld [vmem:[%s7644_s2 + $0x184] ss:$24 sps:$4 sm:$0xff]  }
  0x32   : > { %v4872_v1 = vld [vmem:[%s7644_s2 + $0x484] ss:$24 sps:$4 sm:$0xff]   ;;  %v4874_v2 = vld [vmem:[%s7644_s2 + $0x180] ss:$24 sps:$4 sm:$0xff]   ;;  %v4883_v5 = vld [vmem:[%s7644_s2 + $0x754] ss:$24 sps:$4 sm:$0xff]  }
  0x33   : > { %2547 = vmatpush1.bf16.msra.mxu0 %v4820_v26  ;;  %v4875_v3 = vld [vmem:[%s7644_s2 + $0x480] ss:$24 sps:$4 sm:$0xff]   ;;  %v4886_v6 = vld [vmem:[%s7644_s2 + $0x15c] ss:$24 sps:$4 sm:$0xff]   ;;  %v4881_v7 = vld [vmem:[%s7644_s2 + $0x750] ss:$24 sps:$4 sm:$0xff]  }
  0x34   : > { %2684 = vmatpush1.bf16.msra.mxu1 %v4821_v27  ;;  %2548 = vmatprep.subr.bf16.mxu0 %v4822_v28  ;;  %v5687_v4 = vld [vmem:[%s5612_s11] ss:$8 sps:$4 sm:$0xff]   ;;  %v295_v8 = vld [vmem:[%s5612_s11 + $0x10] sm:$0xff]  ;;  %v5705_v11 = vld [vmem:[%s5607_s6 + $0x18] sm:$0xff]  ;;  %s4184_s19 = sshll.u32 %s7379_s30, 4  ;;  %s7591_s24 = scalar_lea.sflag [#allocation4], %s243_s9  ;;  %s7576_s19 = int_to_ptr.vmem [resolvable:$true] %s4184_s19 }
  0x35   : > { %2685 = vmatprep.subr.bf16.mxu1 %v4824_v29  ;;  %v271_v10 = vld [vmem:[%s5607_s6 + $0x10] sm:$0xff]  ;;  %v4889_v13 = vld [vmem:[%s7644_s2 + $0x724] ss:$24 sps:$4 sm:$0xff]   ;;  %v5717_v15 = vcombine.high %v295_v8, %v5624_v48  ;;  %v4887_v17 = vld [vmem:[%s7644_s2 + $0x720] ss:$24 sps:$4 sm:$0xff]   ;;  %v5743_v23 = vcombine.low %v295_v8, %v5624_v48  ;;  %s5268_s23 = scalar_lea.vmem %s7576_s19, 4096 }
  0x36   : > { %v4884_v12 = vld [vmem:[%s7644_s2 + $0x158] ss:$24 sps:$4 sm:$0xff]   ;;  %v4892_v14 = vld [vmem:[%s7644_s2 + $0x12c] ss:$24 sps:$4 sm:$0xff]   ;;  %v5720_v16 = vcombine.high %v271_v10, %v5705_v11  ;;  %v4890_v18 = vld [vmem:[%s7644_s2 + $0x128] ss:$24 sps:$4 sm:$0xff]   ;;  %v5746_v24 = vcombine.low %v271_v10, %v5705_v11  ;;  %v5755_v27 = vcombine.high %v5630_v50, %v271_v10  ;;  %p5269_p1 = scmp.ne.s32.totalorder %s7576_s19, %s5268_s23 }
  0x37   : > { %2549 = vmatpush1.bf16.msra.mxu0 %v4826_v30  ;;  %v4897_v19 = vld [vmem:[%s7644_s2 + $0x6f4] ss:$24 sps:$4 sm:$0xff]   ;;  %v273_v21 = vld [vmem:[%s5607_s6 + $0x20] sm:$0xff]  ;;  %v4895_v25 = vld [vmem:[%s7644_s2 + $0x6f0] ss:$24 sps:$4 sm:$0xff]   ;;  %s5362_s12 = smov [#allocation3]  }
  0x38   : > { %2686 = vmatpush1.bf16.msra.mxu1 %v4827_v31  ;;  %2550 = vmatprep.subr.bf16.mxu0 %v4828_v32  ;;  %v4900_v20 = vld [vmem:[%s7644_s2 + $0xfc] ss:$24 sps:$4 sm:$0xff]   ;;  %v5740_v22 = vld [vmem:[%s5607_s6 + $0x28] sm:$0xff]  ;;  %v4898_v26 = vld [vmem:[%s7644_s2 + $0xf8] ss:$24 sps:$4 sm:$0xff]   ;;  %p5270_p2 = pnand %p5269_p1, %p5441_p3  ;;  %s5272_s13 = sshll.u32 %s5362_s12, 4  ;;  %s5273_s13 = int_to_ptr.vmem [resolvable:$false] %s5272_s13 }
  0x39   : > { %2687 = vmatprep.subr.bf16.mxu1 %v4830_v33  ;;  %v5758_v28 = vcombine.high %v273_v21, %v5740_v22  ;;  %v4909_v29 = vld [vmem:[%s7644_s2 + $0x6c4] ss:$24 sps:$4 sm:$0xff]   ;;  %v4907_v31 = vld [vmem:[%s7644_s2 + $0x6c0] ss:$24 sps:$4 sm:$0xff]   ;;  %v275_v33 = vld [vmem:[%s5607_s6 + $0x30] sm:$0xff]  ;;  %p5275_p5 = scmp.lt.s32.totalorder %s7576_s19, %s5273_s13 }
  0x3a   : > { %v4912_v30 = vld [vmem:[%s7644_s2 + $0xcc] ss:$24 sps:$4 sm:$0xff]   ;;  %v4910_v32 = vld [vmem:[%s7644_s2 + $0xc8] ss:$24 sps:$4 sm:$0xff]   ;;  %p5271_p4 = pneg %p5270_p2 }
  0x3b   : > { %2551 = vmatpush2.bf16.msra.mxu0 %v4832_v34  ;;  %v5776_v34 = vld [vmem:[%s5607_s6 + $0x38] sm:$0xff]  ;;  %v277_v48 = vld [vmem:[%s5607_s6 + $0x40] sm:$0xff] }
  0x3c   : > { %2688 = vmatpush2.bf16.msra.mxu1 %v4833_v35  ;;  %2552 = vmatprep.subr.bf16.mxu0 %v4834_v36  ;;  %v4919_v35 = vld [vmem:[%s7644_s2 + $0x694] ss:$24 sps:$4 sm:$0xff]  }
  0x3d   : > { %2689 = vmatprep.subr.bf16.mxu1 %v4836_v37  ;;  %v4922_v36 = vld [vmem:[%s7644_s2 + $0x9c] ss:$24 sps:$4 sm:$0xff]   ;;  %v5787_v37 = vcombine.low %v5630_v50, %v271_v10  ;;  %v4956_v10 = vld [vmem:[%s7644_s2 + $0x2d8] ss:$24 sps:$4 sm:$0xff]  }
  0x3e   : > { %v4935_v50 = vld [vmem:[%s7644_s2 + $0x634] ss:$24 sps:$4 sm:$0xff]  }
  0x3f   : > { %2553 = vmatpush2.bf16.msra.mxu0 %v4838_v38  ;;  %v5790_v38 = vcombine.low %v273_v21, %v5740_v22 }
  0x40   : > { %2690 = vmatpush2.bf16.msra.mxu1 %v4839_v39  ;;  %2554 = vmatprep.subr.bf16.mxu0 %v4840_v40  ;;  %v5793_v39 = vcombine.high %v5705_v11, %v273_v21  ;;  %v5796_v40 = vcombine.high %v275_v33, %v5776_v34 }
  0x41   : > { %2691 = vmatprep.subr.bf16.mxu1 %v4842_v41  ;;  %7701 = vst [vmem:[#allocation9_spill] sm:$0xff] %v5790_v38  ;;  %v4917_v41 = vld [vmem:[%s7644_s2 + $0x690] ss:$24 sps:$4 sm:$0xff]  }
  0x42   : > { %7702 = vst [vmem:[#allocation10_spill] sm:$0xff] %v5793_v39 }
  0x43   : > { %2555 = vmatpush2.bf16.msra.mxu0 %v4844_v42  ;;  %v4920_v42 = vld [vmem:[%s7644_s2 + $0x98] ss:$24 sps:$4 sm:$0xff]  }
  0x44   : > { %2692 = vmatpush2.bf16.msra.mxu1 %v4845_v43  ;;  %2556 = vmatprep.subr.bf16.mxu0 %v4846_v44  ;;  %v4925_v43 = vld [vmem:[%s7644_s2 + $0x664] ss:$24 sps:$4 sm:$0xff]  }
  0x45   : > { %2693 = vmatprep.subr.bf16.mxu1 %v4848_v45  ;;  %v4928_v44 = vld [vmem:[%s7644_s2 + $0x6c] ss:$24 sps:$4 sm:$0xff]   ;;  %v4923_v45 = vld [vmem:[%s7644_s2 + $0x660] ss:$24 sps:$4 sm:$0xff]  }
  0x47   : > { %2557 = vmatpush2.bf16.msra.mxu0 %v4850_v46  ;;  %v4926_v46 = vld [vmem:[%s7644_s2 + $0x68] ss:$24 sps:$4 sm:$0xff]  }
  0x48   : > { %2694 = vmatpush2.bf16.msra.mxu1 %v4851_v49  ;;  %2558 = vmatprep.subr.bf16.mxu0 %v4852_v51  ;;  %v5822_v49 = vld [vmem:[%s5607_s6 + $0x48] sm:$0xff]  ;;  %v4938_v51 = vld [vmem:[%s7644_s2 + $0x3c] ss:$24 sps:$4 sm:$0xff]  }
  0x49   : > { %2695 = vmatprep.subr.bf16.mxu1 %v4854_v52  ;;  %v5831_v52 = vcombine.low %v5705_v11, %v273_v21  ;;  %v4961_v11 = vld [vmem:[%s7644_s2 + $0x8a4] ss:$24 sps:$4 sm:$0xff]   ;;  %v4959_v21 = vld [vmem:[%s7644_s2 + $0x8a0] ss:$24 sps:$4 sm:$0xff]  }
  0x4b   : > { %2559 = vmatpush2.bf16.msra.mxu0 %v4856_v54  ;;  %7703 = vst [vmem:[#allocation11_spill] sm:$0xff] %v5831_v52  ;;  %v5834_v54 = vcombine.low %v275_v33, %v5776_v34 }
  0x4c   : > { %2696 = vmatpush2.bf16.msra.mxu1 %v4857_v55  ;;  %2560 = vmatprep.subr.bf16.mxu0 %v4858_v56  ;;  %v5837_v55 = vcombine.high %v5740_v22, %v275_v33  ;;  %v5840_v56 = vcombine.high %v277_v48, %v5822_v49 }
  0x4d   : > { %2697 = vmatprep.subr.bf16.mxu1 %v4860_v57  ;;  %v4933_v57 = vld [vmem:[%s7644_s2 + $0x630] ss:$24 sps:$4 sm:$0xff]  }
  0x4e   : > { %7704 = vst [vmem:[#allocation12_spill] sm:$0xff] %v5837_v55  ;;  %7705 = vst [vmem:[#allocation13_spill] sm:$0xff] %v5840_v56 }
  0x4f   : > { %2561 = vmatpush2.bf16.msra.mxu0 %v4862_v58  ;;  %v4936_v58 = vld [vmem:[%s7644_s2 + $0x38] ss:$24 sps:$4 sm:$0xff]  }
  0x50   : > { %2698 = vmatpush2.bf16.msra.mxu1 %v4863_v59  ;;  %2562 = vmatprep.subr.bf16.mxu0 %v4864_v60  ;;  %v4945_v59 = vld [vmem:[%s7644_s2 + $0x604] ss:$24 sps:$4 sm:$0xff]  }
  0x51   : > { %2699 = vmatprep.subr.bf16.mxu1 %v4866_v61  ;;  %v4948_v60 = vld [vmem:[%s7644_s2 + $0xc] ss:$24 sps:$4 sm:$0xff]   ;;  %v5857_v61 = vld [vmem:[%s5607_s6 + $0x50] sm:$0xff] }
  0x53   : > { %2563 = vmatpush2.bf16.msra.mxu0 %v4868_v62  ;;  %v5862_v62 = vld [vmem:[%s5607_s6 + $0x58] sm:$0xff] }
  0x54   : > { %2700 = vmatpush2.bf16.msra.mxu1 %v4869_v63  ;;  %2564 = vmatprep.subr.bf16.mxu0 %v4870_v0  ;;  %v4943_v63 = vld [vmem:[%s7644_s2 + $0x600] ss:$24 sps:$4 sm:$0xff]   ;;  %v5890_v8 = vcombine.high %v5857_v61, %v5862_v62 }
  0x55   : > { %2701 = vmatprep.subr.bf16.mxu1 %v4872_v1  ;;  %v4946_v0 = vld [vmem:[%s7644_s2 + $0x8] ss:$24 sps:$4 sm:$0xff]   ;;  %v4955_v1 = vld [vmem:[%s7644_s2 + $0x8d4] ss:$24 sps:$4 sm:$0xff]  }
  0x57   : > { %2565 = vmatpush2.bf16.msra.mxu0 %v4874_v2  ;;  %v4958_v2 = vld [vmem:[%s7644_s2 + $0x2dc] ss:$24 sps:$4 sm:$0xff]  }
  0x58   : > { %2702 = vmatpush2.bf16.msra.mxu1 %v4875_v3  ;;  %2808 = vmatprep.subr.bf16.mxu0 %v4883_v5  ;;  %v5877_v3 = vcombine.low %v5740_v22, %v275_v33  ;;  %v5880_v5 = vcombine.low %v277_v48, %v5822_v49  ;;  %v4962_v22 = vld [vmem:[%s7644_s2 + $0x2a8] ss:$24 sps:$4 sm:$0xff]  }
  0x59   : > { %2945 = vmatprep.subr.bf16.mxu1 %v4886_v6  ;;  %v4953_v6 = vld [vmem:[%s7644_s2 + $0x8d0] ss:$24 sps:$4 sm:$0xff]  }
  0x5a   : > { %2567 = vmatmul.mubr.bf16.vlgmr.msra.gmra.mxu0 %v5687_v4  ;;  %7706 = vst [vmem:[#allocation14_spill] sm:$0xff] %v5877_v3  ;;  %v4969_v33 = vld [vmem:[%s7644_s2 + $0x870] ss:$24 sps:$4 sm:$0xff]  }
  0x5b   : > { %2704 = vmatmul.mubr.bf16.vlgmr.msra.gmra.mxu1 %v5701_v9  ;;  %2809 = vmatpush1.bf16.msra.mxu0 %v4881_v7  ;;  %v5886_v7 = vcombine.high %v5776_v34, %v277_v48 }
  0x5c   : > { %2946 = vmatpush1.bf16.msra.mxu1 %v4884_v12  ;;  %2810 = vmatprep.subr.bf16.mxu0 %v4889_v13  ;;  %v4964_v12 = vld [vmem:[%s7644_s2 + $0x2ac] ss:$24 sps:$4 sm:$0xff]  }
  0x5d   : > { %2947 = vmatprep.subr.bf16.mxu1 %v4892_v14  ;;  %2576 = vmatprep.mubr.bf16.mxu0 %v5717_v15  ;;  %7707 = vst [vmem:[#allocation15_spill] sm:$0xff] %v5886_v7  ;;  %v5902_v13 = vld [vmem:[%s5607_s6 + $0xa8] sm:$0xff]  ;;  %v5905_v14 = vld [vmem:[%s5607_s6 + $0xb0] sm:$0xff] }
  0x5e   : > { %2713 = vmatprep.mubr.bf16.mxu1 %v5720_v16 }
  0x5f   : > { %2811 = vmatpush1.bf16.msra.mxu0 %v4887_v17  ;;  %v5910_v17 = vld [vmem:[%s5607_s6 + $0x60] sm:$0xff] }
  0x60   : > { %2948 = vmatpush1.bf16.msra.mxu1 %v4890_v18  ;;  %2812 = vmatprep.subr.bf16.mxu0 %v4897_v19  ;;  %v5914_v18 = vcombine.high %v5902_v13, %v5905_v14  ;;  %v5919_v19 = vld [vmem:[%s5607_s6 + $0x68] sm:$0xff] }
  0x61   : > { %2949 = vmatprep.subr.bf16.mxu1 %v4900_v20  ;;  %v5923_v20 = vcombine.low %v5902_v13, %v5905_v14 }
  0x62   : > { %2577 = vmatmul.mubr.bf16.gmra.mxu0 %v5743_v23  ;;  %7708 = vst [vmem:[#allocation16_spill] sm:$0xff] %v5914_v18 }
  0x63   : > { %2714 = vmatmul.mubr.bf16.gmra.mxu1 %v5746_v24  ;;  %2813 = vmatpush1.bf16.msra.mxu0 %v4895_v25  ;;  %7709 = vst [vmem:[#allocation17_spill] sm:$0xff] %v5923_v20  ;;  %v4971_v25 = vld [vmem:[%s7644_s2 + $0x874] ss:$24 sps:$4 sm:$0xff]  }
  0x64   : > { %2950 = vmatpush1.bf16.msra.mxu1 %v4898_v26  ;;  %2584 = vmatprep.mubr.bf16.mxu0 %v5755_v27  ;;  %v4974_v26 = vld [vmem:[%s7644_s2 + $0x27c] ss:$24 sps:$4 sm:$0xff]  }
  0x65   : > { %2721 = vmatprep.mubr.bf16.mxu1 %v5758_v28  ;;  %2814 = vmatprep.subr.bf16.mxu0 %v4909_v29  ;;  %v5938_v29 = vcombine.low %v5776_v34, %v277_v48  ;;  %v4972_v34 = vld [vmem:[%s7644_s2 + $0x278] ss:$24 sps:$4 sm:$0xff]   ;;  %v5988_v48 = vcombine.low %v5822_v49, %v5857_v61 }
  0x66   : > { %2951 = vmatprep.subr.bf16.mxu1 %v4912_v30  ;;  %v5942_v30 = vcombine.low %v5857_v61, %v5862_v62 }
  0x67   : > { %2815 = vmatpush1.bf16.msra.mxu0 %v4907_v31  ;;  %7710 = vst [vmem:[#allocation18_spill] sm:$0xff] %v5938_v29  ;;  %v5946_v31 = vcombine.high %v5822_v49, %v5857_v61  ;;  %7713 = vst [vmem:[#allocation21_spill] sm:$0xff] %v5988_v48  ;;  %v4989_v49 = vld [vmem:[%s7644_s2 + $0x810] ss:$24 sps:$4 sm:$0xff]   ;;  %v285_v61 = vld [vmem:[%s5607_s6 + $0x80] sm:$0xff] }
  0x68   : > { %2952 = vmatpush1.bf16.msra.mxu1 %v4910_v32  ;;  %2816 = vmatprep.subr.bf16.mxu0 %v4919_v35  ;;  %7711 = vst [vmem:[#allocation19_spill] sm:$0xff] %v5942_v30  ;;  %v5950_v32 = vcombine.high %v5910_v17, %v5919_v19  ;;  %v4981_v35 = vld [vmem:[%s7644_s2 + $0x844] ss:$24 sps:$4 sm:$0xff]  }
  0x69   : > { %2953 = vmatprep.subr.bf16.mxu1 %v4922_v36  ;;  %7712 = vst [vmem:[#allocation20_spill] sm:$0xff] %v5946_v31  ;;  %v4984_v36 = vld [vmem:[%s7644_s2 + $0x24c] ss:$24 sps:$4 sm:$0xff]  }
  0x6a   : > { %2585 = vmatmul.mubr.bf16.gmra.mxu0 %v5787_v37 }
  0x6b   : > { %2722 = vmatmul.mubr.bf16.gmra.mxu1 %v5790_v38  ;;  %2592 = vmatprep.mubr.bf16.mxu0 %v5793_v39 }
  0x6c   : > { %2729 = vmatprep.mubr.bf16.mxu1 %v5796_v40  ;;  %2817 = vmatpush1.bf16.msra.mxu0 %v4917_v41  ;;  %v5967_v41 = vld [vmem:[%s5607_s6 + $0x70] sm:$0xff] }
  0x6d   : > { %2954 = vmatpush1.bf16.msra.mxu1 %v4920_v42  ;;  %2818 = vmatprep.subr.bf16.mxu0 %v4925_v43  ;;  %v5972_v42 = vld [vmem:[%s5607_s6 + $0x78] sm:$0xff] }
  0x6e   : > { %2955 = vmatprep.subr.bf16.mxu1 %v4928_v44  ;;  %v4979_v43 = vld [vmem:[%s7644_s2 + $0x840] ss:$24 sps:$4 sm:$0xff]  }
  0x6f   : > { %v4982_v44 = vld [vmem:[%s7644_s2 + $0x248] ss:$24 sps:$4 sm:$0xff]  }
  0x70   : > { %2819 = vmatpush1.bf16.msra.mxu0 %v4923_v45  ;;  %v4991_v45 = vld [vmem:[%s7644_s2 + $0x814] ss:$24 sps:$4 sm:$0xff]  }
  0x71   : > { %2956 = vmatpush1.bf16.msra.mxu1 %v4926_v46  ;;  %2820 = vmatprep.subr.bf16.mxu0 %v4935_v50  ;;  %v4994_v46 = vld [vmem:[%s7644_s2 + $0x21c] ss:$24 sps:$4 sm:$0xff]   ;;  %v5992_v50 = vcombine.low %v5910_v17, %v5919_v19 }
  0x72   : > { %2957 = vmatprep.subr.bf16.mxu1 %v4938_v51  ;;  %2593 = vmatmul.mubr.bf16.gmra.mxu0 %v5831_v52  ;;  %v5996_v51 = vcombine.high %v5862_v62, %v5910_v17 }
  0x73   : > { %2730 = vmatmul.mubr.bf16.gmra.mxu1 %v5834_v54  ;;  %2602 = vmatprep.mubr.bf16.mxu0 %v5837_v55 }
  0x74   : > { %2739 = vmatprep.mubr.bf16.mxu1 %v5840_v56  ;;  %2821 = vmatpush1.bf16.msra.mxu0 %v4933_v57  ;;  %7714 = vst [vmem:[#allocation22_spill] sm:$0xff] %v5996_v51  ;;  %v6000_v57 = vcombine.high %v5967_v41, %v5972_v42 }
  0x75   : > { %2958 = vmatpush1.bf16.msra.mxu1 %v4936_v58  ;;  %2822 = vmatprep.subr.bf16.mxu0 %v4945_v59  ;;  %v4992_v58 = vld [vmem:[%s7644_s2 + $0x218] ss:$24 sps:$4 sm:$0xff]   ;;  %v4997_v59 = vld [vmem:[%s7644_s2 + $0x7e4] ss:$24 sps:$4 sm:$0xff]  }
  0x76   : > { %2959 = vmatprep.subr.bf16.mxu1 %v4948_v60  ;;  %7715 = vst [vmem:[#allocation23_spill] sm:$0xff] %v6000_v57  ;;  %v5000_v60 = vld [vmem:[%s7644_s2 + $0x1ec] ss:$24 sps:$4 sm:$0xff]  }
  0x78   : > { %2823 = vmatpush1.bf16.msra.mxu0 %v4943_v63  ;;  %v286_v63 = vld [vmem:[%s5607_s6 + $0x88] sm:$0xff] }
  0x79   : > { %2960 = vmatpush1.bf16.msra.mxu1 %v4946_v0  ;;  %2824 = vmatprep.subr.bf16.mxu0 %v4955_v1  ;;  %v4995_v0 = vld [vmem:[%s7644_s2 + $0x7e0] ss:$24 sps:$4 sm:$0xff]  }
  0x7a   : > { %2961 = vmatprep.subr.bf16.mxu1 %v4958_v2  ;;  %2603 = vmatmul.mubr.bf16.gmra.mxu0 %v5877_v3  ;;  %v4998_v1 = vld [vmem:[%s7644_s2 + $0x1e8] ss:$24 sps:$4 sm:$0xff]   ;;  %v5007_v2 = vld [vmem:[%s7644_s2 + $0x7b4] ss:$24 sps:$4 sm:$0xff]  }
  0x7b   : > { %2740 = vmatmul.mubr.bf16.gmra.mxu1 %v5880_v5  ;;  %2610 = vmatprep.mubr.bf16.mxu0 %v5886_v7 }
  0x7c   : > { %2747 = vmatprep.mubr.bf16.mxu1 %v5890_v8  ;;  %2825 = vmatpush2.bf16.msra.mxu0 %v4953_v6  ;;  %v5010_v6 = vld [vmem:[%s7644_s2 + $0x1bc] ss:$24 sps:$4 sm:$0xff]  }
  0x7d   : > { %2962 = vmatpush2.bf16.msra.mxu1 %v4956_v10  ;;  %2826 = vmatprep.subr.bf16.mxu0 %v4961_v11  ;;  %v6034_v10 = vcombine.low %v5862_v62, %v5910_v17  ;;  %v6038_v11 = vcombine.low %v5967_v41, %v5972_v42  ;;  %v5008_v62 = vld [vmem:[%s7644_s2 + $0x1b8] ss:$24 sps:$4 sm:$0xff]   ;;  %v5015_v17 = vld [vmem:[%s7644_s2 + $0x784] ss:$24 sps:$4 sm:$0xff]  }
  0x7e   : > { %2963 = vmatprep.subr.bf16.mxu1 %v4964_v12  ;;  %v6042_v12 = vcombine.high %v5919_v19, %v5967_v41 }
  0x7f   : > { %7716 = vst [vmem:[#allocation24_spill] sm:$0xff] %v6034_v10 }
  0x80   : > { %2827 = vmatpush2.bf16.msra.mxu0 %v4959_v21  ;;  %7717 = vst [vmem:[#allocation25_spill] sm:$0xff] %v6042_v12  ;;  %v6044_v21 = vcombine.high %v285_v61, %v286_v63 }
  0x81   : > { %2964 = vmatpush2.bf16.msra.mxu1 %v4962_v22  ;;  %2828 = vmatprep.subr.bf16.mxu0 %v4971_v25  ;;  %v5005_v22 = vld [vmem:[%s7644_s2 + $0x7b0] ss:$24 sps:$4 sm:$0xff]   ;;  %v5018_v25 = vld [vmem:[%s7644_s2 + $0x18c] ss:$24 sps:$4 sm:$0xff]  }
  0x82   : > { %2965 = vmatprep.subr.bf16.mxu1 %v4974_v26  ;;  %2611 = vmatmul.mubr.bf16.gmra.mxu0 %v5938_v29  ;;  %v287_v26 = vld [vmem:[%s5607_s6 + $0x90] sm:$0xff] }
  0x83   : > { %2748 = vmatmul.mubr.bf16.gmra.mxu1 %v5942_v30  ;;  %2618 = vmatprep.mubr.bf16.mxu0 %v5946_v31 }
  0x84   : > { %2755 = vmatprep.mubr.bf16.mxu1 %v5950_v32  ;;  %2829 = vmatpush2.bf16.msra.mxu0 %v4969_v33  ;;  %v288_v33 = vld [vmem:[%s5607_s6 + $0x98] sm:$0xff] }
  0x85   : > { %2966 = vmatpush2.bf16.msra.mxu1 %v4972_v34  ;;  %2830 = vmatprep.subr.bf16.mxu0 %v4981_v35  ;;  %v5013_v34 = vld [vmem:[%s7644_s2 + $0x780] ss:$24 sps:$4 sm:$0xff]  }
  0x86   : > { %2967 = vmatprep.subr.bf16.mxu1 %v4984_v36  ;;  %v5016_v35 = vld [vmem:[%s7644_s2 + $0x188] ss:$24 sps:$4 sm:$0xff]   ;;  %v5021_v36 = vld [vmem:[%s7644_s2 + $0x45c] ss:$24 sps:$4 sm:$0xff]  }
  0x88   : > { %2831 = vmatpush2.bf16.msra.mxu0 %v4979_v43  ;;  %v5024_v43 = vld [vmem:[%s7644_s2 + $0x75c] ss:$24 sps:$4 sm:$0xff]  }
  0x89   : > { %2968 = vmatpush2.bf16.msra.mxu1 %v4982_v44  ;;  %2832 = vmatprep.subr.bf16.mxu0 %v4991_v45  ;;  %v6078_v44 = vcombine.low %v5919_v19, %v5967_v41  ;;  %v6080_v45 = vcombine.low %v285_v61, %v286_v63  ;;  %v289_v19 = vld [vmem:[%s5607_s6 + $0xa0] sm:$0xff]  ;;  %v6093_v41 = vcombine.low %v5972_v42, %v285_v61 }
  0x8a   : > { %2969 = vmatprep.subr.bf16.mxu1 %v4994_v46  ;;  %2619 = vmatmul.mubr.bf16.gmra.mxu0 %v5988_v48  ;;  %v6083_v46 = vcombine.high %v5972_v42, %v285_v61  ;;  %v6112_v42 = vcombine.low %v289_v19, %v5902_v13  ;;  %v6114_v61 = vcombine.high %v288_v33, %v289_v19 }
  0x8b   : > { %2756 = vmatmul.mubr.bf16.gmra.mxu1 %v5992_v50  ;;  %2628 = vmatprep.mubr.bf16.mxu0 %v5996_v51  ;;  %7718 = vst [vmem:[#allocation26_spill] sm:$0xff] %v6078_v44  ;;  %7720 = vst [vmem:[#allocation28_spill] sm:$0xff] %v6093_v41 }
  0x8c   : > { %2765 = vmatprep.mubr.bf16.mxu1 %v6000_v57  ;;  %2833 = vmatpush2.bf16.msra.mxu0 %v4989_v49  ;;  %7719 = vst [vmem:[#allocation27_spill] sm:$0xff] %v6083_v46  ;;  %v6085_v49 = vcombine.high %v287_v26, %v288_v33  ;;  %7724 = vst [vmem:[#allocation32_spill] sm:$0xff] %v6114_v61 }
  0x8d   : > { %2970 = vmatpush2.bf16.msra.mxu1 %v4992_v58  ;;  %2834 = vmatprep.subr.bf16.mxu0 %v4997_v59  ;;  %v6095_v58 = vcombine.low %v287_v26, %v288_v33  ;;  %v6097_v59 = vcombine.high %v286_v63, %v287_v26 }
  0x8e   : > { %2971 = vmatprep.subr.bf16.mxu1 %v5000_v60  ;;  %v6100_v60 = vcombine.high %v289_v19, %v5902_v13 }
  0x8f   : > { %7721 = vst [vmem:[#allocation29_spill] sm:$0xff] %v6095_v58  ;;  %7722 = vst [vmem:[#allocation30_spill] sm:$0xff] %v6097_v59 }
  0x90   : > { %2835 = vmatpush2.bf16.msra.mxu0 %v4995_v0  ;;  %v6107_v0 = vld [vmem:[%s5607_s6 + $0xb8] sm:$0xff]  ;;  %s5274_s6 = scalar_lea.vmem %s5273_s13, 8192 }
  0x91   : > { %2972 = vmatpush2.bf16.msra.mxu1 %v4998_v1  ;;  %2836 = vmatprep.subr.bf16.mxu0 %v5007_v2  ;;  %v6109_v1 = vcombine.low %v286_v63, %v287_v26  ;;  %v6118_v2 = vcombine.high %v5905_v14, %v6107_v0  ;;  %v6128_v13 = vcombine.low %v5905_v14, %v6107_v0  ;;  %v5019_v63 = vld [vmem:[%s7644_s2 + $0x458] ss:$24 sps:$4 sm:$0xff]   ;;  %v5027_v14 = vld [vmem:[%s7644_s2 + $0x42c] ss:$24 sps:$4 sm:$0xff]   ;;  %v5036_v26 = vld [vmem:[%s7644_s2 + $0x6fc] ss:$24 sps:$4 sm:$0xff]   ;;  %p5276_p6 = scmp.lt.s32.totalorder %s5274_s6, %s5268_s23 }
  0x92   : > { %2973 = vmatprep.subr.bf16.mxu1 %v5010_v6  ;;  %2629 = vmatmul.mubr.bf16.gmra.mxu0 %v6034_v10  ;;  %v6124_v6 = vcombine.low %v288_v33, %v289_v19  ;;  %v5034_v33 = vld [vmem:[%s7644_s2 + $0x6f8] ss:$24 sps:$4 sm:$0xff]   ;;  %v5045_v19 = vld [vmem:[%s7644_s2 + $0x39c] ss:$24 sps:$4 sm:$0xff]  }
  0x93   : > { %2766 = vmatmul.mubr.bf16.gmra.mxu1 %v6038_v11  ;;  %2636 = vmatprep.mubr.bf16.mxu0 %v6042_v12  ;;  %7723 = vst [vmem:[#allocation31_spill] sm:$0xff] %v6109_v1  ;;  %7726 = vst [vmem:[#allocation34_spill] sm:$0xff] %v6128_v13  ;;  %p5277_p7 = por %p5276_p6, %p5275_p5 }
  0x94   : > { %2773 = vmatprep.mubr.bf16.mxu1 %v6044_v21  ;;  %2837 = vmatpush2.bf16.msra.mxu0 %v5005_v22  ;;  %7725 = vst [vmem:[#allocation33_spill] sm:$0xff] %v6124_v6  ;;  %v5022_v22 = vld [vmem:[%s7644_s2 + $0x758] ss:$24 sps:$4 sm:$0xff]  }
  0x95   : > { %2974 = vmatpush2.bf16.msra.mxu1 %v5008_v62  ;;  %2838 = vmatprep.subr.bf16.mxu0 %v5015_v17  ;;  %v5030_v62 = vld [vmem:[%s7644_s2 + $0x72c] ss:$24 sps:$4 sm:$0xff]   ;;  %v5028_v17 = vld [vmem:[%s7644_s2 + $0x728] ss:$24 sps:$4 sm:$0xff]   ;;  %p5278_p9 = pnand %p5277_p7, %p5271_p4 }
  0x96   : > { %2975 = vmatprep.subr.bf16.mxu1 %v5018_v25  ;;  %v5033_v25 = vld [vmem:[%s7644_s2 + $0x3fc] ss:$24 sps:$4 sm:$0xff]  }
  0x98   : > { %2839 = vmatpush2.bf16.msra.mxu0 %v5013_v34  ;;  %v5039_v34 = vld [vmem:[%s7644_s2 + $0x3cc] ss:$24 sps:$4 sm:$0xff]  }
  0x99   : > { %2976 = vmatpush2.bf16.msra.mxu1 %v5016_v35  ;;  %3098 = vmatprep.subr.bf16.mxu0 %v5021_v36  ;;  %v5042_v35 = vld [vmem:[%s7644_s2 + $0x6cc] ss:$24 sps:$4 sm:$0xff]   ;;  %v5037_v36 = vld [vmem:[%s7644_s2 + $0x3c8] ss:$24 sps:$4 sm:$0xff]  }
  0x9a   : > { %3251 = vmatprep.subr.bf16.mxu1 %v5024_v43  ;;  %2637 = vmatmul.mubr.bf16.gmra.mxu0 %v6078_v44  ;;  %v5040_v43 = vld [vmem:[%s7644_s2 + $0x6c8] ss:$24 sps:$4 sm:$0xff]  }
  0x9b   : > { %2774 = vmatmul.mubr.bf16.gmra.mxu1 %v6080_v45  ;;  %2644 = vmatprep.mubr.bf16.mxu0 %v6083_v46 }
  0x9c   : > { %2781 = vmatprep.mubr.bf16.mxu1 %v6085_v49 }
  0xa2   : > { %2645 = vmatmul.mubr.bf16.gmra.mxu0 %v6093_v41 }
  0xa3   : > { %2782 = vmatmul.mubr.bf16.gmra.mxu1 %v6095_v58  ;;  %2654 = vmatprep.mubr.bf16.mxu0 %v6097_v59 }
  0xa4   : > { %2791 = vmatprep.mubr.bf16.mxu1 %v6100_v60 }
  0xaa   : > { %2655 = vmatmul.mubr.bf16.gmra.mxu0 %v6109_v1 }
  0xab   : > { %2792 = vmatmul.mubr.bf16.gmra.mxu1 %v6112_v42  ;;  %2662 = vmatprep.mubr.bf16.mxu0 %v6114_v61 }
  0xac   : > { %2799 = vmatprep.mubr.bf16.mxu1 %v6118_v2 }
  0xb2   : > { %2663 = vmatmul.mubr.bf16.gmra.mxu0 %v6124_v6 }
  0xb3   : > { %2800 = vmatmul.mubr.bf16.gmra.mxu1 %v6128_v13  ;;  %2840 = vmatprep.mubr.bf16.mxu0 %v5793_v39 }
  0xb4   : > { %2977 = vmatprep.mubr.bf16.mxu1 %v5621_v47  ;;  %v5025_v47 = vld [vmem:[%s7644_s2 + $0x428] ss:$24 sps:$4 sm:$0xff]  }
  0xba   : > { %2841 = vmatmul.mubr.bf16.vlgmr.msra.gmra.mxu0 %v5831_v52 }
  0xbb   : > { %2978 = vmatmul.mubr.bf16.vlgmr.msra.gmra.mxu1 %v5687_v4  ;;  %3099 = vmatpush1.bf16.msra.mxu0 %v5019_v63  ;;  %v5031_v4 = vld [vmem:[%s7644_s2 + $0x3f8] ss:$24 sps:$4 sm:$0xff]   ;;  %v5048_v63 = vld [vmem:[%s7644_s2 + $0x69c] ss:$24 sps:$4 sm:$0xff]  }
  0xbc   : > { %3252 = vmatpush1.bf16.msra.mxu1 %v5022_v22  ;;  %3100 = vmatprep.subr.bf16.mxu0 %v5027_v14  ;;  %v5043_v22 = vld [vmem:[%s7644_s2 + $0x398] ss:$24 sps:$4 sm:$0xff]  }
  0xbd   : > { %3253 = vmatprep.subr.bf16.mxu1 %v5030_v62  ;;  %2850 = vmatprep.mubr.bf16.mxu0 %v5837_v55  ;;  %v5046_v14 = vld [vmem:[%s7644_s2 + $0x698] ss:$24 sps:$4 sm:$0xff]   ;;  %v5051_v62 = vld [vmem:[%s7644_s2 + $0x36c] ss:$24 sps:$4 sm:$0xff]  }
  0xbe   : > { %2987 = vmatprep.mubr.bf16.mxu1 %v5717_v15 }
  0xbf   : > { %3101 = vmatpush1.bf16.msra.mxu0 %v5025_v47  ;;  %v5054_v47 = vld [vmem:[%s7644_s2 + $0x66c] ss:$24 sps:$4 sm:$0xff]  }
  0xc0   : > { %3254 = vmatpush1.bf16.msra.mxu1 %v5028_v17  ;;  %3102 = vmatprep.subr.bf16.mxu0 %v5033_v25  ;;  %v5049_v17 = vld [vmem:[%s7644_s2 + $0x368] ss:$24 sps:$4 sm:$0xff]  }
  0xc1   : > { %3255 = vmatprep.subr.bf16.mxu1 %v5036_v26  ;;  %v5052_v25 = vld [vmem:[%s7644_s2 + $0x668] ss:$24 sps:$4 sm:$0xff]   ;;  %v5057_v26 = vld [vmem:[%s7644_s2 + $0x33c] ss:$24 sps:$4 sm:$0xff]  }
  0xc2   : > { %2851 = vmatmul.mubr.bf16.gmra.mxu0 %v5877_v3 }
  0xc3   : > { %2988 = vmatmul.mubr.bf16.gmra.mxu1 %v5743_v23  ;;  %3103 = vmatpush1.bf16.msra.mxu0 %v5031_v4  ;;  %v5060_v4 = vld [vmem:[%s7644_s2 + $0x63c] ss:$24 sps:$4 sm:$0xff]  }
  0xc4   : > { %3256 = vmatpush1.bf16.msra.mxu1 %v5034_v33  ;;  %2858 = vmatprep.mubr.bf16.mxu0 %v5886_v7  ;;  %v5055_v33 = vld [vmem:[%s7644_s2 + $0x338] ss:$24 sps:$4 sm:$0xff]  }
  0xc5   : > { %2997 = vmatprep.mubr.bf16.mxu1 %v5755_v27  ;;  %3104 = vmatprep.subr.bf16.mxu0 %v5039_v34  ;;  %v5058_v34 = vld [vmem:[%s7644_s2 + $0x638] ss:$24 sps:$4 sm:$0xff]  }
  0xc6   : > { %3257 = vmatprep.subr.bf16.mxu1 %v5042_v35  ;;  %v5063_v35 = vld [vmem:[%s7644_s2 + $0x30c] ss:$24 sps:$4 sm:$0xff]  }
  0xc7   : > { %3105 = vmatpush1.bf16.msra.mxu0 %v5037_v36  ;;  %v5066_v36 = vld [vmem:[%s7644_s2 + $0x60c] ss:$24 sps:$4 sm:$0xff]  }
  0xc8   : > { %3258 = vmatpush1.bf16.msra.mxu1 %v5040_v43  ;;  %3106 = vmatprep.subr.bf16.mxu0 %v5045_v19  ;;  %v5061_v43 = vld [vmem:[%s7644_s2 + $0x308] ss:$24 sps:$4 sm:$0xff]  }
  0xc9   : > { %3259 = vmatprep.subr.bf16.mxu1 %v5048_v63  ;;  %v5064_v19 = vld [vmem:[%s7644_s2 + $0x608] ss:$24 sps:$4 sm:$0xff]   ;;  %v5069_v63 = vld [vmem:[%s7644_s2 + $0x5dc] ss:$24 sps:$4 sm:$0xff]  }
  0xca   : > { %2859 = vmatmul.mubr.bf16.gmra.mxu0 %v5938_v29 }
  0xcb   : > { %2998 = vmatmul.mubr.bf16.gmra.mxu1 %v5787_v37  ;;  %2866 = vmatprep.mubr.bf16.mxu0 %v5946_v31 }
  0xcc   : > { %3007 = vmatprep.mubr.bf16.mxu1 %v5793_v39  ;;  %3107 = vmatpush1.bf16.msra.mxu0 %v5043_v22  ;;  %v5072_v22 = vld [vmem:[%s7644_s2 + $0x8dc] ss:$24 sps:$4 sm:$0xff]  }
  0xcd   : > { %3260 = vmatpush1.bf16.msra.mxu1 %v5046_v14  ;;  %3108 = vmatprep.subr.bf16.mxu0 %v5051_v62  ;;  %v5067_v14 = vld [vmem:[%s7644_s2 + $0x5d8] ss:$24 sps:$4 sm:$0xff]  }
  0xce   : > { %3261 = vmatprep.subr.bf16.mxu1 %v5054_v47  ;;  %v5070_v62 = vld [vmem:[%s7644_s2 + $0x8d8] ss:$24 sps:$4 sm:$0xff]   ;;  %v5075_v47 = vld [vmem:[%s7644_s2 + $0x5ac] ss:$24 sps:$4 sm:$0xff]  }
  0xd0   : > { %3109 = vmatpush1.bf16.msra.mxu0 %v5049_v17  ;;  %v5078_v17 = vld [vmem:[%s7644_s2 + $0x8ac] ss:$24 sps:$4 sm:$0xff]  }
  0xd1   : > { %3262 = vmatpush1.bf16.msra.mxu1 %v5052_v25  ;;  %3110 = vmatprep.subr.bf16.mxu0 %v5057_v26  ;;  %v5073_v25 = vld [vmem:[%s7644_s2 + $0x5a8] ss:$24 sps:$4 sm:$0xff]  }
  0xd2   : > { %3263 = vmatprep.subr.bf16.mxu1 %v5060_v4  ;;  %2867 = vmatmul.mubr.bf16.gmra.mxu0 %v5988_v48  ;;  %v5076_v26 = vld [vmem:[%s7644_s2 + $0x8a8] ss:$24 sps:$4 sm:$0xff]   ;;  %v5081_v4 = vld [vmem:[%s7644_s2 + $0x57c] ss:$24 sps:$4 sm:$0xff]  }
  0xd3   : > { %3008 = vmatmul.mubr.bf16.gmra.mxu1 %v5831_v52  ;;  %2876 = vmatprep.mubr.bf16.mxu0 %v5996_v51 }
  0xd4   : > { %3017 = vmatprep.mubr.bf16.mxu1 %v5837_v55  ;;  %3111 = vmatpush1.bf16.msra.mxu0 %v5055_v33  ;;  %v5084_v33 = vld [vmem:[%s7644_s2 + $0x87c] ss:$24 sps:$4 sm:$0xff]  }
  0xd5   : > { %3264 = vmatpush1.bf16.msra.mxu1 %v5058_v34  ;;  %3112 = vmatprep.subr.bf16.mxu0 %v5063_v35  ;;  %v5079_v34 = vld [vmem:[%s7644_s2 + $0x578] ss:$24 sps:$4 sm:$0xff]  }
  0xd6   : > { %3265 = vmatprep.subr.bf16.mxu1 %v5066_v36  ;;  %v5082_v35 = vld [vmem:[%s7644_s2 + $0x878] ss:$24 sps:$4 sm:$0xff]   ;;  %v5087_v36 = vld [vmem:[%s7644_s2 + $0x54c] ss:$24 sps:$4 sm:$0xff]  }
  0xd8   : > { %3113 = vmatpush1.bf16.msra.mxu0 %v5061_v43  ;;  %v5090_v43 = vld [vmem:[%s7644_s2 + $0x84c] ss:$24 sps:$4 sm:$0xff]  }
  0xd9   : > { %3266 = vmatpush1.bf16.msra.mxu1 %v5064_v19  ;;  %3114 = vmatprep.subr.bf16.mxu0 %v5069_v63  ;;  %v5085_v19 = vld [vmem:[%s7644_s2 + $0x548] ss:$24 sps:$4 sm:$0xff]  }
  0xda   : > { %3267 = vmatprep.subr.bf16.mxu1 %v5072_v22  ;;  %2877 = vmatmul.mubr.bf16.gmra.mxu0 %v6034_v10  ;;  %v5088_v63 = vld [vmem:[%s7644_s2 + $0x848] ss:$24 sps:$4 sm:$0xff]   ;;  %v5095_v22 = vld [vmem:[%s7644_s2 + $0x51c] ss:$24 sps:$4 sm:$0xff]  }
  0xdb   : > { %3018 = vmatmul.mubr.bf16.gmra.mxu1 %v5877_v3  ;;  %2884 = vmatprep.mubr.bf16.mxu0 %v6042_v12 }
  0xdc   : > { %3027 = vmatprep.mubr.bf16.mxu1 %v5886_v7  ;;  %3115 = vmatpush2.bf16.msra.mxu0 %v5067_v14  ;;  %v5098_v14 = vld [vmem:[%s7644_s2 + $0x81c] ss:$24 sps:$4 sm:$0xff]  }
  0xdd   : > { %3268 = vmatpush2.bf16.msra.mxu1 %v5070_v62  ;;  %3116 = vmatprep.subr.bf16.mxu0 %v5075_v47  ;;  %v5093_v62 = vld [vmem:[%s7644_s2 + $0x518] ss:$24 sps:$4 sm:$0xff]  }
  0xde   : > { %3269 = vmatprep.subr.bf16.mxu1 %v5078_v17  ;;  %v5096_v47 = vld [vmem:[%s7644_s2 + $0x818] ss:$24 sps:$4 sm:$0xff]   ;;  %v5101_v17 = vld [vmem:[%s7644_s2 + $0x4ec] ss:$24 sps:$4 sm:$0xff]  }
  0xe0   : > { %3117 = vmatpush2.bf16.msra.mxu0 %v5073_v25  ;;  %v5104_v25 = vld [vmem:[%s7644_s2 + $0x7ec] ss:$24 sps:$4 sm:$0xff]  }
  0xe1   : > { %3270 = vmatpush2.bf16.msra.mxu1 %v5076_v26  ;;  %3118 = vmatprep.subr.bf16.mxu0 %v5081_v4  ;;  %v5099_v26 = vld [vmem:[%s7644_s2 + $0x4e8] ss:$24 sps:$4 sm:$0xff]  }
  0xe2   : > { %3271 = vmatprep.subr.bf16.mxu1 %v5084_v33  ;;  %2885 = vmatmul.mubr.bf16.gmra.mxu0 %v6078_v44  ;;  %v5102_v4 = vld [vmem:[%s7644_s2 + $0x7e8] ss:$24 sps:$4 sm:$0xff]   ;;  %v5107_v33 = vld [vmem:[%s7644_s2 + $0x4bc] ss:$24 sps:$4 sm:$0xff]  }
  0xe3   : > { %3028 = vmatmul.mubr.bf16.gmra.mxu1 %v5938_v29  ;;  %2892 = vmatprep.mubr.bf16.mxu0 %v6083_v46 }
  0xe4   : > { %3037 = vmatprep.mubr.bf16.mxu1 %v5946_v31  ;;  %3119 = vmatpush2.bf16.msra.mxu0 %v5079_v34  ;;  %v5110_v34 = vld [vmem:[%s7644_s2 + $0x7bc] ss:$24 sps:$4 sm:$0xff]  }
  0xe5   : > { %3272 = vmatpush2.bf16.msra.mxu1 %v5082_v35  ;;  %3120 = vmatprep.subr.bf16.mxu0 %v5087_v36  ;;  %v5105_v35 = vld [vmem:[%s7644_s2 + $0x4b8] ss:$24 sps:$4 sm:$0xff]  }
  0xe6   : > { %3273 = vmatprep.subr.bf16.mxu1 %v5090_v43  ;;  %v5108_v36 = vld [vmem:[%s7644_s2 + $0x7b8] ss:$24 sps:$4 sm:$0xff]   ;;  %v5116_v43 = vld [vmem:[%s7644_s2 + $0x48c] ss:$24 sps:$4 sm:$0xff]  }
  0xe8   : > { %3121 = vmatpush2.bf16.msra.mxu0 %v5085_v19  ;;  %v5119_v19 = vld [vmem:[%s7644_s2 + $0x78c] ss:$24 sps:$4 sm:$0xff]  }
  0xe9   : > { %3274 = vmatpush2.bf16.msra.mxu1 %v5088_v63  ;;  %3122 = vmatprep.subr.bf16.mxu0 %v5095_v22  ;;  %v5114_v63 = vld [vmem:[%s7644_s2 + $0x488] ss:$24 sps:$4 sm:$0xff]  }
  0xea   : > { %3275 = vmatprep.subr.bf16.mxu1 %v5098_v14  ;;  %2893 = vmatmul.mubr.bf16.gmra.mxu0 %v6093_v41  ;;  %v5117_v22 = vld [vmem:[%s7644_s2 + $0x788] ss:$24 sps:$4 sm:$0xff]   ;;  %v5122_v14 = vld [vmem:[%s7644_s2 + $0x164] ss:$24 sps:$4 sm:$0xff]  }
  0xeb   : > { %3038 = vmatmul.mubr.bf16.gmra.mxu1 %v5988_v48  ;;  %2902 = vmatprep.mubr.bf16.mxu0 %v6097_v59 }
  0xec   : > { %3047 = vmatprep.mubr.bf16.mxu1 %v5996_v51  ;;  %3123 = vmatpush2.bf16.msra.mxu0 %v5093_v62  ;;  %v5125_v62 = vld [vmem:[%s7644_s2 + $0x464] ss:$24 sps:$4 sm:$0xff]  }
  0xed   : > { %3276 = vmatpush2.bf16.msra.mxu1 %v5096_v47  ;;  %3124 = vmatprep.subr.bf16.mxu0 %v5101_v17  ;;  %v4300_v47 = vld [vmem:[%s5612_s11 + $0x18] sm:$0xff] }
  0xee   : > { %3277 = vmatprep.subr.bf16.mxu1 %v5104_v25  ;;  %v6364_v17 = vcombine.high %v6107_v0, %v4300_v47  ;;  %v6371_v25 = vcombine.low %v6107_v0, %v4300_v47  ;;  %v5120_v0 = vld [vmem:[%s7644_s2 + $0x160] ss:$24 sps:$4 sm:$0xff]   ;;  %v5134_v47 = vld [vmem:[%s7644_s2 + $0x104] ss:$24 sps:$4 sm:$0xff]  }
  0xf0   : > { %3125 = vmatpush2.bf16.msra.mxu0 %v5099_v26  ;;  %7727 = vst [vmem:[#allocation35_spill] sm:$0xff] %v6364_v17  ;;  %7728 = vst [vmem:[#allocation36_spill] sm:$0xff] %v6371_v25  ;;  %v6374_v26 = vld [vmem:[%s5612_s11 + $0x24] ss:$8 sps:$4 sm:$0xff]  }
  0xf1   : > { %3278 = vmatpush2.bf16.msra.mxu1 %v5102_v4  ;;  %3126 = vmatprep.subr.bf16.mxu0 %v5107_v33  ;;  %v6381_v4 = vld [vmem:[%s5612_s11 + $0x20] ss:$8 sps:$4 sm:$0xff]  }
  0xf2   : > { %3279 = vmatprep.subr.bf16.mxu1 %v5110_v34  ;;  %2903 = vmatmul.mubr.bf16.gmra.mxu0 %v6109_v1  ;;  %v5123_v33 = vld [vmem:[%s7644_s2 + $0x460] ss:$24 sps:$4 sm:$0xff]   ;;  %v5128_v34 = vld [vmem:[%s7644_s2 + $0x134] ss:$24 sps:$4 sm:$0xff]  }
  0xf3   : > { %3048 = vmatmul.mubr.bf16.gmra.mxu1 %v6034_v10  ;;  %2910 = vmatprep.mubr.bf16.mxu0 %v6114_v61 }
  0xf4   : > { %3057 = vmatprep.mubr.bf16.mxu1 %v6042_v12  ;;  %3127 = vmatpush2.bf16.msra.mxu0 %v5105_v35  ;;  %v5131_v35 = vld [vmem:[%s7644_s2 + $0x434] ss:$24 sps:$4 sm:$0xff]  }
  0xf5   : > { %3280 = vmatpush2.bf16.msra.mxu1 %v5108_v36  ;;  %3128 = vmatprep.subr.bf16.mxu0 %v5116_v43 }
  0xf6   : > { %3281 = vmatprep.subr.bf16.mxu1 %v5119_v19 }
  0xf8   : > { %3129 = vmatpush2.bf16.msra.mxu0 %v5114_v63  ;;  %v5126_v63 = vld [vmem:[%s7644_s2 + $0x130] ss:$24 sps:$4 sm:$0xff]  }
  0xf9   : > { %3282 = vmatpush2.bf16.msra.mxu1 %v5117_v22  ;;  %3404 = vmatprep.subr.bf16.mxu0 %v5122_v14  ;;  %v5129_v22 = vld [vmem:[%s7644_s2 + $0x430] ss:$24 sps:$4 sm:$0xff]  }
  0xfa   : > { %3557 = vmatprep.subr.bf16.mxu1 %v5125_v62  ;;  %2911 = vmatmul.mubr.bf16.gmra.mxu0 %v6124_v6 }
  0xfb   : > { %3058 = vmatmul.mubr.bf16.gmra.mxu1 %v6078_v44  ;;  %2918 = vmatprep.mubr.bf16.mxu0 %v5914_v18 }
  0xfc   : > { %3067 = vmatprep.mubr.bf16.mxu1 %v6083_v46 }
 0x102   : > { %2919 = vmatmul.mubr.bf16.gmra.mxu0 %v5923_v20 }
 0x103   : > { %3068 = vmatmul.mubr.bf16.gmra.mxu1 %v6093_v41  ;;  %2928 = vmatprep.mubr.bf16.mxu0 %v6364_v17 }
 0x104   : > { %3077 = vmatprep.mubr.bf16.mxu1 %v6097_v59 }
 0x10a   : > { %2929 = vmatmul.mubr.bf16.gmra.mxu0 %v6371_v25 }
 0x10b   : > { %3078 = vmatmul.mubr.bf16.gmra.mxu1 %v6109_v1  ;;  %2936 = vmatprep.mubr.bf16.mxu0 %v6374_v26 }
 0x10c   : > { %3087 = vmatprep.mubr.bf16.mxu1 %v6114_v61 }
 0x112   : > { %2937 = vmatmul.mubr.bf16.gmra.mxu0 %v6381_v4 }
 0x113   : > { %3088 = vmatmul.mubr.bf16.gmra.mxu1 %v6124_v6  ;;  %3130 = vmatprep.mubr.bf16.mxu0 %v5640_v53 }
 0x114   : > { %3283 = vmatprep.mubr.bf16.mxu1 %v5793_v39 }
 0x11a   : > { %v2568_v36 = vpop.f32.mrf.mxu0  ;;  %3131 = vmatmul.mubr.bf16.vlgmr.msra.gmra.mxu0 %v5701_v9 }
 0x11b   : > { %v2705_v43 = vpop.f32.mrf.mxu1  ;;  %3284 = vmatmul.mubr.bf16.vlgmr.msra.gmra.mxu1 %v5831_v52  ;;  %3405 = vmatpush1.bf16.msra.mxu0 %v5120_v0  ;;  %v5137_v0 = vld [vmem:[%s7644_s2 + $0x404] ss:$24 sps:$4 sm:$0xff]  }
 0x11c   : > { %v6401_v19 = vadd.f32 %v2705_v43, %v2568_v36  ;;  %3558 = vmatpush1.bf16.msra.mxu1 %v5123_v33  ;;  %v2570_v14 = vpop.f32.mrf.mxu0  ;;  %3406 = vmatprep.subr.bf16.mxu0 %v5128_v34  ;;  %v5132_v34 = vld [vmem:[%s7644_s2 + $0x100] ss:$24 sps:$4 sm:$0xff]  }
 0x11d   : > { %v2707_v62 = vpop.f32.mrf.mxu1  ;;  %3559 = vmatprep.subr.bf16.mxu1 %v5131_v35  ;;  %3140 = vmatprep.mubr.bf16.mxu0 %v5720_v16  ;;  %v5135_v35 = vld [vmem:[%s7644_s2 + $0x400] ss:$24 sps:$4 sm:$0xff]  }
 0x11e   : > { %v6415_v33 = vadd.f32 %v2707_v62, %v2570_v14  ;;  %3293 = vmatprep.mubr.bf16.mxu1 %v5837_v55  ;;  %v2572_v36 = vpop.f32.mrf.mxu0  ;;  %v5147_v55 = vld [vmem:[%s7644_s2 + $0x3a0] ss:$24 sps:$4 sm:$0xff]  }
 0x11f   : > { %v2709_v43 = vpop.f32.mrf.mxu1  ;;  %3407 = vmatpush1.bf16.msra.mxu0 %v5126_v63  ;;  %v5143_v63 = vld [vmem:[%s7644_s2 + $0x3d4] ss:$24 sps:$4 sm:$0xff]  }
 0x120   : > { %v6419_v52 = vadd.f32 %v2709_v43, %v2572_v36  ;;  %3560 = vmatpush1.bf16.msra.mxu1 %v5129_v22  ;;  %v2574_v14 = vpop.f32.mrf.mxu0  ;;  %3408 = vmatprep.subr.bf16.mxu0 %v5134_v47  ;;  %v5140_v36 = vld [vmem:[%s7644_s2 + $0xd4] ss:$24 sps:$4 sm:$0xff]   ;;  %v5138_v47 = vld [vmem:[%s7644_s2 + $0xd0] ss:$24 sps:$4 sm:$0xff]  }
 0x121   : > { %v2711_v62 = vpop.f32.mrf.mxu1  ;;  %3561 = vmatprep.subr.bf16.mxu1 %v5137_v0  ;;  %v5141_v0 = vld [vmem:[%s7644_s2 + $0x3d0] ss:$24 sps:$4 sm:$0xff]  }
 0x122   : > { %v6427_v39 = vadd.f32 %v2711_v62, %v2574_v14  ;;  %v2578_v22 = vpop.f32.mrf.mxu0  ;;  %3141 = vmatmul.mubr.bf16.gmra.mxu0 %v5746_v24 }
 0x123   : > { %v2715_v43 = vpop.f32.mrf.mxu1  ;;  %3294 = vmatmul.mubr.bf16.gmra.mxu1 %v5877_v3  ;;  %3409 = vmatpush1.bf16.msra.mxu0 %v5132_v34  ;;  %v5146_v22 = vld [vmem:[%s7644_s2 + $0xa4] ss:$24 sps:$4 sm:$0xff]  }
 0x124   : > { %3562 = vmatpush1.bf16.msra.mxu1 %v5135_v35  ;;  %v2579_v14 = vpop.f32.mrf.mxu0  ;;  %3150 = vmatprep.mubr.bf16.mxu0 %v5758_v28  ;;  %v5149_v34 = vld [vmem:[%s7644_s2 + $0x3a4] ss:$24 sps:$4 sm:$0xff]  }
 0x125   : > { %v2716_v62 = vpop.f32.mrf.mxu1  ;;  %3303 = vmatprep.mubr.bf16.mxu1 %v5886_v7  ;;  %3410 = vmatprep.subr.bf16.mxu0 %v5140_v36  ;;  %v5144_v7 = vld [vmem:[%s7644_s2 + $0xa0] ss:$24 sps:$4 sm:$0xff]  }
 0x126   : > { %3563 = vmatprep.subr.bf16.mxu1 %v5143_v63  ;;  %v2580_v35 = vpop.f32.mrf.mxu0  ;;  %v5152_v63 = vld [vmem:[%s7644_s2 + $0x74] ss:$24 sps:$4 sm:$0xff]  }
 0x127   : > { %v2717_v43 = vpop.f32.mrf.mxu1  ;;  %3411 = vmatpush1.bf16.msra.mxu0 %v5138_v47  ;;  %v5155_v47 = vld [vmem:[%s7644_s2 + $0x374] ss:$24 sps:$4 sm:$0xff]  }
 0x128   : > { %v6451_v3 = vadd.f32 %v2717_v43, %v2580_v35  ;;  %3564 = vmatpush1.bf16.msra.mxu1 %v5141_v0  ;;  %v2582_v14 = vpop.f32.mrf.mxu0  ;;  %3412 = vmatprep.subr.bf16.mxu0 %v5146_v22 }
 0x129   : > { %v2719_v62 = vpop.f32.mrf.mxu1  ;;  %3565 = vmatprep.subr.bf16.mxu1 %v5149_v34 }
 0x12a   : > { %v6459_v36 = vadd.f32 %v2719_v62, %v2582_v14  ;;  %v2586_v0 = vpop.f32.mrf.mxu0  ;;  %3151 = vmatmul.mubr.bf16.gmra.mxu0 %v5790_v38  ;;  %v5150_v14 = vld [vmem:[%s7644_s2 + $0x70] ss:$24 sps:$4 sm:$0xff]  }
 0x12b   : > { %v2723_v35 = vpop.f32.mrf.mxu1  ;;  %3304 = vmatmul.mubr.bf16.gmra.mxu1 %v5938_v29  ;;  %3160 = vmatprep.mubr.bf16.mxu0 %v5796_v40  ;;  %v5153_v62 = vld [vmem:[%s7644_s2 + $0x370] ss:$24 sps:$4 sm:$0xff]  }
 0x12c   : > { %v6469_v22 = vadd.f32 %v2723_v35, %v2586_v0  ;;  %3313 = vmatprep.mubr.bf16.mxu1 %v5946_v31  ;;  %v2588_v34 = vpop.f32.mrf.mxu0  ;;  %3413 = vmatpush1.bf16.msra.mxu0 %v5144_v7  ;;  %v5158_v0 = vld [vmem:[%s7644_s2 + $0x44] ss:$24 sps:$4 sm:$0xff]  }
 0x12d   : > { %v2725_v43 = vpop.f32.mrf.mxu1  ;;  %3566 = vmatpush1.bf16.msra.mxu1 %v5147_v55  ;;  %3414 = vmatprep.subr.bf16.mxu0 %v5152_v63  ;;  %v5161_v55 = vld [vmem:[%s7644_s2 + $0x344] ss:$24 sps:$4 sm:$0xff]   ;;  %v5159_v63 = vld [vmem:[%s7644_s2 + $0x340] ss:$24 sps:$4 sm:$0xff]  }
 0x12e   : > { %v6479_v38 = vadd.f32 %v2725_v43, %v2588_v34  ;;  %3567 = vmatprep.subr.bf16.mxu1 %v5155_v47  ;;  %v2590_v7 = vpop.f32.mrf.mxu0  ;;  %v5156_v34 = vld [vmem:[%s7644_s2 + $0x40] ss:$24 sps:$4 sm:$0xff]   ;;  %v5164_v47 = vld [vmem:[%s7644_s2 + $0x14] ss:$24 sps:$4 sm:$0xff]  }
 0x12f   : > { %v2727_v35 = vpop.f32.mrf.mxu1  ;;  %v5165_v7 = vld [vmem:[%s7644_s2 + $0x310] ss:$24 sps:$4 sm:$0xff]  }
 0x130   : > { %v2591_v31 = vpop.f32.mrf.mxu0  ;;  %3415 = vmatpush1.bf16.msra.mxu0 %v5150_v14 }
 0x131   : > { %v2728_v29 = vpop.f32.mrf.mxu1  ;;  %3568 = vmatpush1.bf16.msra.mxu1 %v5153_v62  ;;  %3416 = vmatprep.subr.bf16.mxu0 %v5158_v0 }
 0x132   : > { %3569 = vmatprep.subr.bf16.mxu1 %v5161_v55  ;;  %v5167_v29 = vld [vmem:[%s7644_s2 + $0x314] ss:$24 sps:$4 sm:$0xff]   ;;  %v2594_v31 = vpop.f32.mrf.mxu0  ;;  %3161 = vmatmul.mubr.bf16.gmra.mxu0 %v5834_v54  ;;  %v5162_v55 = vld [vmem:[%s7644_s2 + $0x10] ss:$24 sps:$4 sm:$0xff]  }
 0x133   : > { %v2731_v43 = vpop.f32.mrf.mxu1  ;;  %3314 = vmatmul.mubr.bf16.gmra.mxu1 %v5988_v48  ;;  %3170 = vmatprep.mubr.bf16.mxu0 %v5840_v56 }
 0x134   : > { %v6501_v14 = vadd.f32 %v2731_v43, %v2594_v31  ;;  %3323 = vmatprep.mubr.bf16.mxu1 %v5996_v51  ;;  %v2596_v62 = vpop.f32.mrf.mxu0  ;;  %3417 = vmatpush1.bf16.msra.mxu0 %v5156_v34  ;;  %v5170_v31 = vld [vmem:[%s7644_s2 + $0x2e4] ss:$24 sps:$4 sm:$0xff]  }
 0x135   : > { %v2733_v0 = vpop.f32.mrf.mxu1  ;;  %3570 = vmatpush1.bf16.msra.mxu1 %v5159_v63  ;;  %3418 = vmatprep.subr.bf16.mxu0 %v5164_v47  ;;  %v5173_v34 = vld [vmem:[%s7644_s2 + $0x5e4] ss:$24 sps:$4 sm:$0xff]   ;;  %v5168_v47 = vld [vmem:[%s7644_s2 + $0x2e0] ss:$24 sps:$4 sm:$0xff]  }
 0x136   : > { %v6511_v35 = vadd.f32 %v2733_v0, %v2596_v62  ;;  %3571 = vmatprep.subr.bf16.mxu1 %v5167_v29  ;;  %v2598_v63 = vpop.f32.mrf.mxu0  ;;  %v5171_v29 = vld [vmem:[%s7644_s2 + $0x5e0] ss:$24 sps:$4 sm:$0xff]   ;;  %v5176_v0 = vld [vmem:[%s7644_s2 + $0x2b4] ss:$24 sps:$4 sm:$0xff]  }
 0x137   : > { %v2735_v43 = vpop.f32.mrf.mxu1 }
 0x138   : > { %v6519_v51 = vadd.f32 %v2735_v43, %v2598_v63  ;;  %v2600_v48 = vpop.f32.mrf.mxu0  ;;  %3419 = vmatpush1.bf16.msra.mxu0 %v5162_v55  ;;  %v5179_v55 = vld [vmem:[%s7644_s2 + $0x5b4] ss:$24 sps:$4 sm:$0xff]   ;;  %v5182_v43 = vld [vmem:[%s7644_s2 + $0x284] ss:$24 sps:$4 sm:$0xff]  }
 0x139   : > { %v2737_v56 = vpop.f32.mrf.mxu1  ;;  %3572 = vmatpush1.bf16.msra.mxu1 %v5165_v7  ;;  %3420 = vmatprep.subr.bf16.mxu0 %v5170_v31  ;;  %v5174_v31 = vld [vmem:[%s7644_s2 + $0x2b0] ss:$24 sps:$4 sm:$0xff]  }
 0x13a   : > { %v6527_v62 = vadd.f32 %v2737_v56, %v2600_v48  ;;  %3573 = vmatprep.subr.bf16.mxu1 %v5173_v34  ;;  %v2604_v7 = vpop.f32.mrf.mxu0  ;;  %3171 = vmatmul.mubr.bf16.gmra.mxu0 %v5880_v5  ;;  %v5177_v34 = vld [vmem:[%s7644_s2 + $0x5b0] ss:$24 sps:$4 sm:$0xff]  }
 0x13b   : > { %v2741_v63 = vpop.f32.mrf.mxu1  ;;  %3324 = vmatmul.mubr.bf16.gmra.mxu1 %v6034_v10  ;;  %3180 = vmatprep.mubr.bf16.mxu0 %v5890_v8  ;;  %v5185_v7 = vld [vmem:[%s7644_s2 + $0x584] ss:$24 sps:$4 sm:$0xff]  }
 0x13c   : > { %3333 = vmatprep.mubr.bf16.mxu1 %v6042_v12  ;;  %v2605_v56 = vpop.f32.mrf.mxu0  ;;  %3421 = vmatpush2.bf16.msra.mxu0 %v5168_v47 }
 0x13d   : > { %v2742_v48 = vpop.f32.mrf.mxu1  ;;  %3574 = vmatpush2.bf16.msra.mxu1 %v5171_v29  ;;  %3422 = vmatprep.subr.bf16.mxu0 %v5176_v0  ;;  %v5180_v0 = vld [vmem:[%s7644_s2 + $0x280] ss:$24 sps:$4 sm:$0xff]  }
 0x13e   : > { %3575 = vmatprep.subr.bf16.mxu1 %v5179_v55  ;;  %v2606_v47 = vpop.f32.mrf.mxu0  ;;  %v5183_v55 = vld [vmem:[%s7644_s2 + $0x580] ss:$24 sps:$4 sm:$0xff]  }
 0x13f   : > { %v2743_v29 = vpop.f32.mrf.mxu1 }
 0x140   : > { %v6551_v63 = vadd.f32 %v2743_v29, %v2606_v47  ;;  %v2608_v56 = vpop.f32.mrf.mxu0  ;;  %3423 = vmatpush2.bf16.msra.mxu0 %v5174_v31  ;;  %v5188_v47 = vld [vmem:[%s7644_s2 + $0x254] ss:$24 sps:$4 sm:$0xff]  }
 0x141   : > { %v2745_v48 = vpop.f32.mrf.mxu1  ;;  %3576 = vmatpush2.bf16.msra.mxu1 %v5177_v34  ;;  %3424 = vmatprep.subr.bf16.mxu0 %v5182_v43  ;;  %v5191_v31 = vld [vmem:[%s7644_s2 + $0x554] ss:$24 sps:$4 sm:$0xff]  }
 0x142   : > { %v6559_v12 = vadd.f32 %v2745_v48, %v2608_v56  ;;  %3577 = vmatprep.subr.bf16.mxu1 %v5185_v7  ;;  %v2612_v34 = vpop.f32.mrf.mxu0  ;;  %3181 = vmatmul.mubr.bf16.gmra.mxu0 %v5942_v30  ;;  %v5186_v56 = vld [vmem:[%s7644_s2 + $0x250] ss:$24 sps:$4 sm:$0xff]  }
 0x143   : > { %v2749_v29 = vpop.f32.mrf.mxu1  ;;  %3334 = vmatmul.mubr.bf16.gmra.mxu1 %v6078_v44  ;;  %3190 = vmatprep.mubr.bf16.mxu0 %v5950_v32  ;;  %v5189_v48 = vld [vmem:[%s7644_s2 + $0x550] ss:$24 sps:$4 sm:$0xff]  }
 0x144   : > { %v6569_v10 = vadd.f32 %v2749_v29, %v2612_v34  ;;  %3343 = vmatprep.mubr.bf16.mxu1 %v6083_v46  ;;  %v2614_v43 = vpop.f32.mrf.mxu0  ;;  %3425 = vmatpush2.bf16.msra.mxu0 %v5180_v0  ;;  %v5194_v34 = vld [vmem:[%s7644_s2 + $0x224] ss:$24 sps:$4 sm:$0xff]  }
 0x145   : > { %v2751_v7 = vpop.f32.mrf.mxu1  ;;  %3578 = vmatpush2.bf16.msra.mxu1 %v5183_v55  ;;  %3426 = vmatprep.subr.bf16.mxu0 %v5188_v47  ;;  %v5197_v0 = vld [vmem:[%s7644_s2 + $0x524] ss:$24 sps:$4 sm:$0xff]   ;;  %v5195_v47 = vld [vmem:[%s7644_s2 + $0x520] ss:$24 sps:$4 sm:$0xff]  }
 0x146   : > { %v6579_v30 = vadd.f32 %v2751_v7, %v2614_v43  ;;  %3579 = vmatprep.subr.bf16.mxu1 %v5191_v31  ;;  %v2616_v55 = vpop.f32.mrf.mxu0  ;;  %v5192_v43 = vld [vmem:[%s7644_s2 + $0x220] ss:$24 sps:$4 sm:$0xff]   ;;  %v5200_v31 = vld [vmem:[%s7644_s2 + $0x1f4] ss:$24 sps:$4 sm:$0xff]  }
 0x147   : > { %v2753_v29 = vpop.f32.mrf.mxu1  ;;  %v5201_v55 = vld [vmem:[%s7644_s2 + $0x4f0] ss:$24 sps:$4 sm:$0xff]  }
 0x148   : > { %v2617_v46 = vpop.f32.mrf.mxu0  ;;  %3427 = vmatpush2.bf16.msra.mxu0 %v5186_v56 }
 0x149   : > { %v2754_v44 = vpop.f32.mrf.mxu1  ;;  %3580 = vmatpush2.bf16.msra.mxu1 %v5189_v48  ;;  %3428 = vmatprep.subr.bf16.mxu0 %v5194_v34 }
 0x14a   : > { %3581 = vmatprep.subr.bf16.mxu1 %v5197_v0  ;;  %v5203_v44 = vld [vmem:[%s7644_s2 + $0x4f4] ss:$24 sps:$4 sm:$0xff]   ;;  %v2620_v46 = vpop.f32.mrf.mxu0  ;;  %3191 = vmatmul.mubr.bf16.gmra.mxu0 %v5992_v50  ;;  %v5198_v0 = vld [vmem:[%s7644_s2 + $0x1f0] ss:$24 sps:$4 sm:$0xff]  }
 0x14b   : > { %v2757_v7 = vpop.f32.mrf.mxu1  ;;  %3344 = vmatmul.mubr.bf16.gmra.mxu1 %v6093_v41  ;;  %3200 = vmatprep.mubr.bf16.mxu0 %v6000_v57 }
 0x14c   : > { %v6601_v56 = vadd.f32 %v2757_v7, %v2620_v46  ;;  %3353 = vmatprep.mubr.bf16.mxu1 %v6097_v59  ;;  %v2622_v48 = vpop.f32.mrf.mxu0  ;;  %3429 = vmatpush2.bf16.msra.mxu0 %v5192_v43  ;;  %v5206_v46 = vld [vmem:[%s7644_s2 + $0x1c4] ss:$24 sps:$4 sm:$0xff]  }
 0x14d   : > { %v2759_v34 = vpop.f32.mrf.mxu1  ;;  %3582 = vmatpush2.bf16.msra.mxu1 %v5195_v47  ;;  %3430 = vmatprep.subr.bf16.mxu0 %v5200_v31  ;;  %v5209_v43 = vld [vmem:[%s7644_s2 + $0x4c4] ss:$24 sps:$4 sm:$0xff]   ;;  %v5204_v31 = vld [vmem:[%s7644_s2 + $0x1c0] ss:$24 sps:$4 sm:$0xff]  }
 0x14e   : > { %v6611_v29 = vadd.f32 %v2759_v34, %v2622_v48  ;;  %3583 = vmatprep.subr.bf16.mxu1 %v5203_v44  ;;  %v2624_v47 = vpop.f32.mrf.mxu0  ;;  %v5207_v44 = vld [vmem:[%s7644_s2 + $0x4c0] ss:$24 sps:$4 sm:$0xff]   ;;  %v5212_v34 = vld [vmem:[%s7644_s2 + $0x194] ss:$24 sps:$4 sm:$0xff]  }
 0x14f   : > { %v2761_v7 = vpop.f32.mrf.mxu1 }
 0x150   : > { %v6619_v59 = vadd.f32 %v2761_v7, %v2624_v47  ;;  %v2626_v41 = vpop.f32.mrf.mxu0  ;;  %3431 = vmatpush2.bf16.msra.mxu0 %v5198_v0  ;;  %v5215_v0 = vld [vmem:[%s7644_s2 + $0x494] ss:$24 sps:$4 sm:$0xff]   ;;  %v5218_v7 = vld [vmem:[%s7644_s2 + $0x764] ss:$24 sps:$4 sm:$0xff]  }
 0x151   : > { %v2763_v57 = vpop.f32.mrf.mxu1  ;;  %3584 = vmatpush2.bf16.msra.mxu1 %v5201_v55  ;;  %3432 = vmatprep.subr.bf16.mxu0 %v5206_v46  ;;  %v5210_v46 = vld [vmem:[%s7644_s2 + $0x190] ss:$24 sps:$4 sm:$0xff]  }
 0x152   : > { %v6627_v48 = vadd.f32 %v2763_v57, %v2626_v41  ;;  %3585 = vmatprep.subr.bf16.mxu1 %v5209_v43  ;;  %v2630_v55 = vpop.f32.mrf.mxu0  ;;  %3201 = vmatmul.mubr.bf16.gmra.mxu0 %v6038_v11  ;;  %v5213_v43 = vld [vmem:[%s7644_s2 + $0x490] ss:$24 sps:$4 sm:$0xff]  }
 0x153   : > { %v2767_v47 = vpop.f32.mrf.mxu1  ;;  %3354 = vmatmul.mubr.bf16.gmra.mxu1 %v6109_v1  ;;  %3210 = vmatprep.mubr.bf16.mxu0 %v6044_v21 }
 0x154   : > { %3363 = vmatprep.mubr.bf16.mxu1 %v6114_v61  ;;  %v2631_v57 = vpop.f32.mrf.mxu0  ;;  %3433 = vmatpush2.bf16.msra.mxu0 %v5204_v31 }
 0x155   : > { %v2768_v41 = vpop.f32.mrf.mxu1  ;;  %3586 = vmatpush2.bf16.msra.mxu1 %v5207_v44  ;;  %3434 = vmatprep.subr.bf16.mxu0 %v5212_v34 }
 0x156   : > { %3587 = vmatprep.subr.bf16.mxu1 %v5215_v0  ;;  %v2632_v55 = vpop.f32.mrf.mxu0 }
 0x157   : > { %v2769_v47 = vpop.f32.mrf.mxu1 }
 0x158   : > { %v6648_v57 = vadd.f32 %v2769_v47, %v2632_v55  ;;  %v2634_v31 = vpop.f32.mrf.mxu0  ;;  %3435 = vmatpush2.bf16.msra.mxu0 %v5210_v46 }
 0x159   : > { %v2771_v44 = vpop.f32.mrf.mxu1  ;;  %3588 = vmatpush2.bf16.msra.mxu1 %v5213_v43  ;;  %3710 = vmatprep.subr.bf16.mxu0 %v5218_v7 }
 0x15a   : > { %v6650_v41 = vadd.f32 %v2771_v44, %v2634_v31  ;;  %4671 = vmatprep.subr.bf16.mxu1 %v5218_v7  ;;  %v2638_v61 = vpop.f32.mrf.mxu0  ;;  %3211 = vmatmul.mubr.bf16.gmra.mxu0 %v6080_v45 }
 0x15b   : > { %v2775_v1 = vpop.f32.mrf.mxu1  ;;  %3364 = vmatmul.mubr.bf16.gmra.mxu1 %v6124_v6  ;;  %3220 = vmatprep.mubr.bf16.mxu0 %v6085_v49 }
 0x15c   : > { %7729 = vst [vmem:[#allocation37_spill] sm:$0xff] %v6650_v41  ;;  %v6654_v34 = vadd.f32 %v2775_v1, %v2638_v61  ;;  %3373 = vmatprep.mubr.bf16.mxu1 %v5914_v18  ;;  %v2640_v0 = vpop.f32.mrf.mxu0 }
 0x15d   : > { %v2777_v55 = vpop.f32.mrf.mxu1 }
 0x15e   : > { %v6658_v46 = vadd.f32 %v2777_v55, %v2640_v0  ;;  %v2642_v43 = vpop.f32.mrf.mxu0 }
 0x15f   : > { %v2779_v47 = vpop.f32.mrf.mxu1 }
 0x160   : > { %v2643_v31 = vpop.f32.mrf.mxu0 }
 0x161   : > { %v2780_v7 = vpop.f32.mrf.mxu1 }
 0x162   : > { %v2646_v44 = vpop.f32.mrf.mxu0  ;;  %3221 = vmatmul.mubr.bf16.gmra.mxu0 %v6095_v58 }
 0x163   : > { %v2783_v41 = vpop.f32.mrf.mxu1  ;;  %3374 = vmatmul.mubr.bf16.gmra.mxu1 %v5923_v20  ;;  %3230 = vmatprep.mubr.bf16.mxu0 %v6100_v60 }
 0x164   : > { %v6662_v1 = vadd.f32 %v2783_v41, %v2646_v44  ;;  %3383 = vmatprep.mubr.bf16.mxu1 %v6364_v17  ;;  %v2648_v61 = vpop.f32.mrf.mxu0 }
 0x165   : > { %v2785_v18 = vpop.f32.mrf.mxu1 }
 0x166   : > { %v6666_v0 = vadd.f32 %v2785_v18, %v2648_v61  ;;  %v2650_v55 = vpop.f32.mrf.mxu0 }
 0x167   : > { %v2787_v43 = vpop.f32.mrf.mxu1 }
 0x168   : > { %v6668_v47 = vadd.f32 %v2787_v43, %v2650_v55  ;;  %v2652_v31 = vpop.f32.mrf.mxu0 }
 0x169   : > { %v2789_v7 = vpop.f32.mrf.mxu1 }
 0x16a   : > { %v6670_v6 = vadd.f32 %v2789_v7, %v2652_v31  ;;  %v2656_v58 = vpop.f32.mrf.mxu0  ;;  %3231 = vmatmul.mubr.bf16.gmra.mxu0 %v6112_v42 }
 0x16b   : > { %v2793_v20 = vpop.f32.mrf.mxu1  ;;  %3384 = vmatmul.mubr.bf16.gmra.mxu1 %v6371_v25  ;;  %3240 = vmatprep.mubr.bf16.mxu0 %v6118_v2 }
 0x16c   : > { %3393 = vmatprep.mubr.bf16.mxu1 %v6374_v26  ;;  %v2657_v18 = vpop.f32.mrf.mxu0  ;;  %v5264_v26 = vld [vmem:[%s5612_s11 + $0x4] ss:$8 sps:$4 sm:$0xff]  }
 0x16d   : > { %v2794_v41 = vpop.f32.mrf.mxu1 }
 0x16e   : > { %v2658_v44 = vpop.f32.mrf.mxu0 }
 0x16f   : > { %v2795_v61 = vpop.f32.mrf.mxu1 }
 0x170   : > { %v6676_v55 = vadd.f32 %v2795_v61, %v2658_v44  ;;  %v2660_v43 = vpop.f32.mrf.mxu0 }
 0x171   : > { %v2797_v31 = vpop.f32.mrf.mxu1 }
 0x172   : > { %v6678_v7 = vadd.f32 %v2797_v31, %v2660_v43  ;;  %v2664_v20 = vpop.f32.mrf.mxu0  ;;  %3241 = vmatmul.mubr.bf16.gmra.mxu0 %v6128_v13  ;;  %v5216_v31 = vld [vmem:[%s7644_s2 + $0x760] ss:$24 sps:$4 sm:$0xff]  }
 0x173   : > { %v2801_v58 = vpop.f32.mrf.mxu1  ;;  %3394 = vmatmul.mubr.bf16.gmra.mxu1 %v6381_v4  ;;  %3436 = vmatprep.mubr.bf16.mxu0 %v5264_v26  ;;  %v5221_v4 = vld [vmem:[%s7644_s2 + $0x734] ss:$24 sps:$4 sm:$0xff]  }
 0x174   : > { %v6682_v25 = vadd.f32 %v2801_v58, %v2664_v20  ;;  %3589 = vmatprep.mubr.bf16.mxu1 %v5640_v53  ;;  %v2666_v18 = vpop.f32.mrf.mxu0  ;;  %v5265_v53 = vld [vmem:[%s5612_s11] ss:$8 sps:$4 sm:$0xff]  }
 0x175   : > { %v2803_v41 = vpop.f32.mrf.mxu1 }
 0x176   : > { %v6686_v44 = vadd.f32 %v2803_v41, %v2666_v18  ;;  %v2668_v61 = vpop.f32.mrf.mxu0  ;;  %v5224_v41 = vld [vmem:[%s7644_s2 + $0x704] ss:$24 sps:$4 sm:$0xff]  }
 0x177   : > { %v2805_v43 = vpop.f32.mrf.mxu1 }
 0x178   : > { %v2669_v17 = vpop.f32.mrf.mxu0 }
 0x179   : > { %v2806_v13 = vpop.f32.mrf.mxu1 }
 0x17a   : > { %v2842_v20 = vpop.f32.mrf.mxu0  ;;  %3437 = vmatmul.mubr.bf16.vlgmr.msra.gmra.mxu0 %v5265_v53  ;;  %v5219_v13 = vld [vmem:[%s7644_s2 + $0x730] ss:$24 sps:$4 sm:$0xff]  }
 0x17b   : > { %v6694_v58 = vpop.f32.mrf.mxu1  ;;  %3590 = vmatmul.mubr.bf16.vlgmr.msra.gmra.mxu1 %v5701_v9  ;;  %v6699_v26 = vadd.f32 %v2842_v20, %v6401_v19  ;;  %3711 = vmatpush1.bf16.msra.mxu0 %v5216_v31  ;;  %v5225_v53 = vld [vmem:[%s7644_s2 + $0x6d0] ss:$24 sps:$4 sm:$0xff]  }
 0x17c   : > { %4687 = vmatpush1.bf16.msra.mxu1 %v5216_v31  ;;  %v2844_v17 = vpop.f32.mrf.mxu0  ;;  %3712 = vmatprep.subr.bf16.mxu0 %v5221_v4  ;;  %v5222_v31 = vld [vmem:[%s7644_s2 + $0x700] ss:$24 sps:$4 sm:$0xff]  }
 0x17d   : > { %v6704_v18 = vpop.f32.mrf.mxu1  ;;  %4672 = vmatprep.subr.bf16.mxu1 %v5221_v4  ;;  %v6710_v9 = vadd.f32 %v2844_v17, %v6415_v33  ;;  %3446 = vmatprep.mubr.bf16.mxu0 %v5717_v15  ;;  %v5230_v17 = vld [vmem:[%s7644_s2 + $0x6a4] ss:$24 sps:$4 sm:$0xff]  }
 0x17e   : > { %3599 = vmatprep.mubr.bf16.mxu1 %v5720_v16  ;;  %v2846_v19 = vpop.f32.mrf.mxu0  ;;  %v5227_v16 = vld [vmem:[%s7644_s2 + $0x6d4] ss:$24 sps:$4 sm:$0xff]  }
 0x17f   : > { %v6714_v61 = vpop.f32.mrf.mxu1  ;;  %v6717_v43 = vadd.f32 %v2846_v19, %v6419_v52  ;;  %3713 = vmatpush1.bf16.msra.mxu0 %v5219_v13 }
 0x180   : > { %4688 = vmatpush1.bf16.msra.mxu1 %v5219_v13  ;;  %v2848_v4 = vpop.f32.mrf.mxu0  ;;  %3714 = vmatprep.subr.bf16.mxu0 %v5224_v41 }
 0x181   : > { %v6722_v20 = vpop.f32.mrf.mxu1  ;;  %4673 = vmatprep.subr.bf16.mxu1 %v5224_v41  ;;  %v6725_v15 = vadd.f32 %v2848_v4, %v6427_v39  ;;  %v5233_v4 = vld [vmem:[%s7644_s2 + $0x674] ss:$24 sps:$4 sm:$0xff]  }
 0x182   : > { %v2852_v52 = vpop.f32.mrf.mxu0  ;;  %3447 = vmatmul.mubr.bf16.gmra.mxu0 %v5743_v23 }
 0x183   : > { %v6730_v33 = vpop.f32.mrf.mxu1  ;;  %3600 = vmatmul.mubr.bf16.gmra.mxu1 %v5746_v24  ;;  %3715 = vmatpush1.bf16.msra.mxu0 %v5222_v31  ;;  %v7731_v52 = vld [vmem:[#allocation9_spill] sm:$0xff] }
 0x184   : > { %4689 = vmatpush1.bf16.msra.mxu1 %v5222_v31  ;;  %v2853_v13 = vpop.f32.mrf.mxu0  ;;  %3456 = vmatprep.mubr.bf16.mxu0 %v5755_v27  ;;  %v5228_v27 = vld [vmem:[%s7644_s2 + $0x6a0] ss:$24 sps:$4 sm:$0xff]  }
 0x185   : > { %v6737_v39 = vpop.f32.mrf.mxu1  ;;  %3609 = vmatprep.mubr.bf16.mxu1 %v5758_v28  ;;  %3716 = vmatprep.subr.bf16.mxu0 %v5227_v16  ;;  %v7733_v13 = vld [vmem:[#allocation10_spill] sm:$0xff] }
 0x186   : > { %4674 = vmatprep.subr.bf16.mxu1 %v5227_v16  ;;  %v2854_v23 = vpop.f32.mrf.mxu0 }
 0x187   : > { %v6744_v24 = vpop.f32.mrf.mxu1  ;;  %v6747_v41 = vadd.f32 %v2854_v23, %v6451_v3  ;;  %3717 = vmatpush1.bf16.msra.mxu0 %v5225_v53  ;;  %v5231_v23 = vld [vmem:[%s7644_s2 + $0x670] ss:$24 sps:$4 sm:$0xff]  }
 0x188   : > { %4690 = vmatpush1.bf16.msra.mxu1 %v5225_v53  ;;  %v2856_v19 = vpop.f32.mrf.mxu0  ;;  %3718 = vmatprep.subr.bf16.mxu0 %v5230_v17 }
 0x189   : > { %v6749_v31 = vpop.f32.mrf.mxu1  ;;  %4675 = vmatprep.subr.bf16.mxu1 %v5230_v17  ;;  %v6755_v28 = vadd.f32 %v2856_v19, %v6459_v36 }
 0x18a   : > { %v2860_v3 = vpop.f32.mrf.mxu0  ;;  %3457 = vmatmul.mubr.bf16.gmra.mxu0 %v5787_v37 }
 0x18b   : > { %7730 = vst [vmem:[#allocation38_spill] sm:$0xff] %v6755_v28  ;;  %v6760_v16 = vpop.f32.mrf.mxu1  ;;  %3610 = vmatmul.mubr.bf16.gmra.mxu1 %v7731_v52  ;;  %v6765_v53 = vadd.f32 %v2860_v3, %v6469_v22  ;;  %3466 = vmatprep.mubr.bf16.mxu0 %v7733_v13  ;;  %v5236_v22 = vld [vmem:[%s7644_s2 + $0x644] ss:$24 sps:$4 sm:$0xff]   ;;  %v5237_v28 = vld [vmem:[%s7644_s2 + $0x610] ss:$24 sps:$4 sm:$0xff]  }
 0x18c   : > { %3619 = vmatprep.mubr.bf16.mxu1 %v5796_v40  ;;  %v2862_v36 = vpop.f32.mrf.mxu0  ;;  %3719 = vmatpush1.bf16.msra.mxu0 %v5228_v27 }
 0x18d   : > { %7732 = vst [vmem:[#allocation9_spill] sm:$0xff] %v6765_v53  ;;  %v6769_v17 = vpop.f32.mrf.mxu1  ;;  %4691 = vmatpush1.bf16.msra.mxu1 %v5228_v27  ;;  %v6775_v37 = vadd.f32 %v2862_v36, %v6479_v38  ;;  %3720 = vmatprep.subr.bf16.mxu0 %v5233_v4  ;;  %v5234_v27 = vld [vmem:[%s7644_s2 + $0x640] ss:$24 sps:$4 sm:$0xff]   ;;  %v5239_v38 = vld [vmem:[%s7644_s2 + $0x614] ss:$24 sps:$4 sm:$0xff]  }
 0x18e   : > { %4676 = vmatprep.subr.bf16.mxu1 %v5233_v4  ;;  %v2864_v19 = vpop.f32.mrf.mxu0 }
 0x18f   : > { %7734 = vst [vmem:[#allocation10_spill] sm:$0xff] %v6775_v37  ;;  %v6780_v40 = vpop.f32.mrf.mxu1  ;;  %v7736_v19 = vld [vmem:[#allocation11_spill] sm:$0xff]  ;;  %v7739_v37 = vld [vmem:[#allocation13_spill] sm:$0xff] }
 0x190   : > { %v2865_v3 = vpop.f32.mrf.mxu0  ;;  %3721 = vmatpush1.bf16.msra.mxu0 %v5231_v23 }
 0x191   : > { %v6782_v52 = vpop.f32.mrf.mxu1  ;;  %4692 = vmatpush1.bf16.msra.mxu1 %v5231_v23  ;;  %3722 = vmatprep.subr.bf16.mxu0 %v5236_v22  ;;  %v7738_v23 = vld [vmem:[#allocation12_spill] sm:$0xff] }
 0x192   : > { %4677 = vmatprep.subr.bf16.mxu1 %v5236_v22  ;;  %v2868_v4 = vpop.f32.mrf.mxu0  ;;  %3467 = vmatmul.mubr.bf16.gmra.mxu0 %v7736_v19 }
 0x193   : > { %v6790_v36 = vpop.f32.mrf.mxu1  ;;  %3620 = vmatmul.mubr.bf16.gmra.mxu1 %v5834_v54  ;;  %v6795_v3 = vadd.f32 %v2868_v4, %v6501_v14  ;;  %3476 = vmatprep.mubr.bf16.mxu0 %v7738_v23  ;;  %v5242_v54 = vld [vmem:[%s7644_s2 + $0x8e4] ss:$24 sps:$4 sm:$0xff]  }
 0x194   : > { %7735 = vst [vmem:[#allocation39_spill] sm:$0xff] %v6790_v36  ;;  %3629 = vmatprep.mubr.bf16.mxu1 %v7739_v37  ;;  %v2870_v53 = vpop.f32.mrf.mxu0  ;;  %3723 = vmatpush1.bf16.msra.mxu0 %v5234_v27 }
 0x195   : > { %7737 = vst [vmem:[#allocation11_spill] sm:$0xff] %v6795_v3  ;;  %v6799_v22 = vpop.f32.mrf.mxu1  ;;  %4693 = vmatpush1.bf16.msra.mxu1 %v5234_v27  ;;  %v6805_v36 = vadd.f32 %v2870_v53, %v6511_v35  ;;  %3724 = vmatprep.subr.bf16.mxu0 %v5239_v38  ;;  %v5240_v35 = vld [vmem:[%s7644_s2 + $0x8e0] ss:$24 sps:$4 sm:$0xff]  }
 0x196   : > { %4678 = vmatprep.subr.bf16.mxu1 %v5239_v38  ;;  %v2872_v14 = vpop.f32.mrf.mxu0  ;;  %v5245_v38 = vld [vmem:[%s7644_s2 + $0x8b4] ss:$24 sps:$4 sm:$0xff]  }
 0x197   : > { %7740 = vst [vmem:[#allocation12_spill] sm:$0xff] %v6805_v36  ;;  %v6810_v37 = vpop.f32.mrf.mxu1  ;;  %v6813_v4 = vadd.f32 %v2872_v14, %v6519_v51 }
 0x198   : > { %v2874_v27 = vpop.f32.mrf.mxu0  ;;  %3725 = vmatpush1.bf16.msra.mxu0 %v5237_v28 }
 0x199   : > { %7741 = vst [vmem:[#allocation13_spill] sm:$0xff] %v6813_v4  ;;  %v6815_v3 = vpop.f32.mrf.mxu1  ;;  %4694 = vmatpush1.bf16.msra.mxu1 %v5237_v28  ;;  %v6821_v53 = vadd.f32 %v2874_v27, %v6527_v62  ;;  %3726 = vmatprep.subr.bf16.mxu0 %v5242_v54  ;;  %v7743_v4 = vld [vmem:[#allocation14_spill] sm:$0xff]  ;;  %v7744_v28 = vld [vmem:[#allocation15_spill] sm:$0xff]  ;;  %v5248_v27 = vld [vmem:[%s7644_s2 + $0x884] ss:$24 sps:$4 sm:$0xff]  }
 0x19a   : > { %4679 = vmatprep.subr.bf16.mxu1 %v5242_v54  ;;  %v2878_v51 = vpop.f32.mrf.mxu0  ;;  %3477 = vmatmul.mubr.bf16.gmra.mxu0 %v7743_v4  ;;  %v5243_v54 = vld [vmem:[%s7644_s2 + $0x8b0] ss:$24 sps:$4 sm:$0xff]  }
 0x19b   : > { %7742 = vst [vmem:[#allocation40_spill] sm:$0xff] %v6821_v53  ;;  %v6826_v14 = vpop.f32.mrf.mxu1  ;;  %3630 = vmatmul.mubr.bf16.gmra.mxu1 %v5880_v5  ;;  %3486 = vmatprep.mubr.bf16.mxu0 %v7744_v28 }
 0x19c   : > { %3639 = vmatprep.mubr.bf16.mxu1 %v5890_v8  ;;  %v2879_v36 = vpop.f32.mrf.mxu0  ;;  %3727 = vmatpush2.bf16.msra.mxu0 %v5240_v35 }
 0x19d   : > { %v6832_v62 = vpop.f32.mrf.mxu1  ;;  %4695 = vmatpush2.bf16.msra.mxu1 %v5240_v35  ;;  %3728 = vmatprep.subr.bf16.mxu0 %v5245_v38  ;;  %v5246_v35 = vld [vmem:[%s7644_s2 + $0x880] ss:$24 sps:$4 sm:$0xff]  }
 0x19e   : > { %7745 = vst [vmem:[#allocation14_spill] sm:$0xff] %v6832_v62  ;;  %4680 = vmatprep.subr.bf16.mxu1 %v5245_v38  ;;  %v2880_v5 = vpop.f32.mrf.mxu0  ;;  %v7753_v62 = vld [vmem:[#allocation20_spill] sm:$0xff] }
 0x19f   : > { %v6840_v51 = vpop.f32.mrf.mxu1  ;;  %v6843_v8 = vadd.f32 %v2880_v5, %v6551_v63 }
 0x1a0   : > { %7746 = vst [vmem:[#allocation15_spill] sm:$0xff] %v6840_v51  ;;  %v2882_v36 = vpop.f32.mrf.mxu0  ;;  %3729 = vmatpush2.bf16.msra.mxu0 %v5243_v54  ;;  %v5251_v51 = vld [vmem:[%s7644_s2 + $0x854] ss:$24 sps:$4 sm:$0xff]  }
 0x1a1   : > { %7747 = vst [vmem:[#allocation41_spill] sm:$0xff] %v6843_v8  ;;  %v6845_v53 = vpop.f32.mrf.mxu1  ;;  %4696 = vmatpush2.bf16.msra.mxu1 %v5243_v54  ;;  %v6851_v38 = vadd.f32 %v2882_v36, %v6559_v12  ;;  %3730 = vmatprep.subr.bf16.mxu0 %v5248_v27  ;;  %v7750_v8 = vld [vmem:[#allocation18_spill] sm:$0xff] }
 0x1a2   : > { %7748 = vst [vmem:[#allocation42_spill] sm:$0xff] %v6845_v53  ;;  %4681 = vmatprep.subr.bf16.mxu1 %v5248_v27  ;;  %v2886_v63 = vpop.f32.mrf.mxu0  ;;  %3487 = vmatmul.mubr.bf16.gmra.mxu0 %v7750_v8  ;;  %v7751_v53 = vld [vmem:[#allocation19_spill] sm:$0xff] }
 0x1a3   : > { %7749 = vst [vmem:[#allocation43_spill] sm:$0xff] %v6851_v38  ;;  %v6856_v5 = vpop.f32.mrf.mxu1  ;;  %3640 = vmatmul.mubr.bf16.gmra.mxu1 %v7751_v53  ;;  %v6861_v54 = vadd.f32 %v2886_v63, %v6569_v10  ;;  %3496 = vmatprep.mubr.bf16.mxu0 %v7753_v62  ;;  %v5249_v36 = vld [vmem:[%s7644_s2 + $0x850] ss:$24 sps:$4 sm:$0xff]   ;;  %v5254_v10 = vld [vmem:[%s7644_s2 + $0x824] ss:$24 sps:$4 sm:$0xff]  }
 0x1a4   : > { %3649 = vmatprep.mubr.bf16.mxu1 %v5950_v32  ;;  %v2888_v12 = vpop.f32.mrf.mxu0  ;;  %3731 = vmatpush2.bf16.msra.mxu0 %v5246_v35 }
 0x1a5   : > { %7752 = vst [vmem:[#allocation18_spill] sm:$0xff] %v6861_v54  ;;  %v6865_v27 = vpop.f32.mrf.mxu1  ;;  %4697 = vmatpush2.bf16.msra.mxu1 %v5246_v35  ;;  %v6871_v38 = vadd.f32 %v2888_v12, %v6579_v30  ;;  %3732 = vmatprep.subr.bf16.mxu0 %v5251_v51  ;;  %v5252_v35 = vld [vmem:[%s7644_s2 + $0x820] ss:$24 sps:$4 sm:$0xff]   ;;  %v5257_v30 = vld [vmem:[%s7644_s2 + $0x7f4] ss:$24 sps:$4 sm:$0xff]  }
 0x1a6   : > { %4682 = vmatprep.subr.bf16.mxu1 %v5251_v51  ;;  %v2890_v53 = vpop.f32.mrf.mxu0 }
 0x1a7   : > { %7754 = vst [vmem:[#allocation19_spill] sm:$0xff] %v6871_v38  ;;  %v6876_v32 = vpop.f32.mrf.mxu1  ;;  %v7758_v53 = vld [vmem:[#allocation21_spill] sm:$0xff]  ;;  %v7761_v38 = vld [vmem:[#allocation23_spill] sm:$0xff] }
 0x1a8   : > { %7755 = vst [vmem:[#allocation20_spill] sm:$0xff] %v6876_v32  ;;  %v2891_v63 = vpop.f32.mrf.mxu0  ;;  %3733 = vmatpush2.bf16.msra.mxu0 %v5249_v36 }
 0x1a9   : > { %v6878_v54 = vpop.f32.mrf.mxu1  ;;  %4698 = vmatpush2.bf16.msra.mxu1 %v5249_v36  ;;  %3734 = vmatprep.subr.bf16.mxu0 %v5254_v10  ;;  %v7760_v36 = vld [vmem:[#allocation22_spill] sm:$0xff] }
 0x1aa   : > { %7756 = vst [vmem:[#allocation44_spill] sm:$0xff] %v6878_v54  ;;  %4683 = vmatprep.subr.bf16.mxu1 %v5254_v10  ;;  %v2894_v51 = vpop.f32.mrf.mxu0  ;;  %3497 = vmatmul.mubr.bf16.gmra.mxu0 %v7758_v53 }
 0x1ab   : > { %v6886_v12 = vpop.f32.mrf.mxu1  ;;  %3650 = vmatmul.mubr.bf16.gmra.mxu1 %v5992_v50  ;;  %v6891_v63 = vadd.f32 %v2894_v51, %v6601_v56  ;;  %3506 = vmatprep.mubr.bf16.mxu0 %v7760_v36  ;;  %v5260_v50 = vld [vmem:[%s7644_s2 + $0x7c4] ss:$24 sps:$4 sm:$0xff]  }
 0x1ac   : > { %7757 = vst [vmem:[#allocation45_spill] sm:$0xff] %v6886_v12  ;;  %3659 = vmatprep.mubr.bf16.mxu1 %v7761_v38  ;;  %v2896_v54 = vpop.f32.mrf.mxu0  ;;  %3735 = vmatpush2.bf16.msra.mxu0 %v5252_v35  ;;  %v5255_v12 = vld [vmem:[%s7644_s2 + $0x7f0] ss:$24 sps:$4 sm:$0xff]  }
 0x1ad   : > { %7759 = vst [vmem:[#allocation21_spill] sm:$0xff] %v6891_v63  ;;  %v6895_v10 = vpop.f32.mrf.mxu1  ;;  %4699 = vmatpush2.bf16.msra.mxu1 %v5252_v35  ;;  %v6901_v32 = vadd.f32 %v2896_v54, %v6611_v29  ;;  %3736 = vmatprep.subr.bf16.mxu0 %v5257_v30  ;;  %v5258_v29 = vld [vmem:[%s7644_s2 + $0x7c0] ss:$24 sps:$4 sm:$0xff]  }
 0x1ae   : > { %4684 = vmatprep.subr.bf16.mxu1 %v5257_v30  ;;  %v2898_v56 = vpop.f32.mrf.mxu0  ;;  %v5263_v30 = vld [vmem:[%s7644_s2 + $0x794] ss:$24 sps:$4 sm:$0xff]  }
 0x1af   : > { %7762 = vst [vmem:[#allocation22_spill] sm:$0xff] %v6901_v32  ;;  %v6906_v38 = vpop.f32.mrf.mxu1  ;;  %v6909_v51 = vadd.f32 %v2898_v56, %v6619_v59 }
 0x1b0   : > { %v2900_v35 = vpop.f32.mrf.mxu0  ;;  %3737 = vmatpush2.bf16.msra.mxu0 %v5255_v12 }
 0x1b1   : > { %7763 = vst [vmem:[#allocation23_spill] sm:$0xff] %v6909_v51  ;;  %v6911_v63 = vpop.f32.mrf.mxu1  ;;  %4700 = vmatpush2.bf16.msra.mxu1 %v5255_v12  ;;  %v6917_v54 = vadd.f32 %v2900_v35, %v6627_v48  ;;  %3738 = vmatprep.subr.bf16.mxu0 %v5260_v50  ;;  %v7767_v51 = vld [vmem:[#allocation24_spill] sm:$0xff]  ;;  %v7768_v12 = vld [vmem:[#allocation25_spill] sm:$0xff] }
 0x1b2   : > { %7764 = vst [vmem:[#allocation46_spill] sm:$0xff] %v6911_v63  ;;  %4685 = vmatprep.subr.bf16.mxu1 %v5260_v50  ;;  %v2904_v59 = vpop.f32.mrf.mxu0  ;;  %3507 = vmatmul.mubr.bf16.gmra.mxu0 %v7767_v51  ;;  %v5261_v50 = vld [vmem:[%s7644_s2 + $0x790] ss:$24 sps:$4 sm:$0xff]  }
 0x1b3   : > { %7765 = vst [vmem:[#allocation47_spill] sm:$0xff] %v6917_v54  ;;  %v6922_v56 = vpop.f32.mrf.mxu1  ;;  %3660 = vmatmul.mubr.bf16.gmra.mxu1 %v6038_v11  ;;  %3516 = vmatprep.mubr.bf16.mxu0 %v7768_v12  ;;  %v7775_v63 = vld [vmem:[#allocation26_spill] sm:$0xff] }
 0x1b4   : > { %7766 = vst [vmem:[#allocation48_spill] sm:$0xff] %v6922_v56  ;;  %3669 = vmatprep.mubr.bf16.mxu1 %v6044_v21  ;;  %v2905_v32 = vpop.f32.mrf.mxu0  ;;  %3739 = vmatpush2.bf16.msra.mxu0 %v5258_v29  ;;  %v7772_v21 = vld [vmem:[#allocation37_spill] sm:$0xff] }
 0x1b5   : > { %v6928_v48 = vpop.f32.mrf.mxu1  ;;  %4701 = vmatpush2.bf16.msra.mxu1 %v5258_v29  ;;  %3740 = vmatprep.subr.bf16.mxu0 %v5263_v30 }
 0x1b6   : > { %7769 = vst [vmem:[#allocation24_spill] sm:$0xff] %v6928_v48  ;;  %4686 = vmatprep.subr.bf16.mxu1 %v5263_v30  ;;  %v2906_v35 = vpop.f32.mrf.mxu0 }
 0x1b7   : > { %v6933_v59 = vpop.f32.mrf.mxu1  ;;  %v6936_v11 = vadd.f32 %v2906_v35, %v6648_v57  ;;  %v7777_v57 = vld [vmem:[#allocation27_spill] sm:$0xff] }
 0x1b8   : > { %v2908_v54 = vpop.f32.mrf.mxu0  ;;  %3741 = vmatpush2.bf16.msra.mxu0 %v5261_v50 }
 0x1b9   : > { %7770 = vst [vmem:[#allocation25_spill] sm:$0xff] %v6936_v11  ;;  %v6938_v56 = vpop.f32.mrf.mxu1  ;;  %4702 = vmatpush2.bf16.msra.mxu1 %v5261_v50  ;;  %v6941_v32 = vadd.f32 %v2908_v54, %v7772_v21 }
 0x1ba   : > { %7771 = vst [vmem:[#allocation49_spill] sm:$0xff] %v6938_v56  ;;  %v2912_v29 = vpop.f32.mrf.mxu0  ;;  %3517 = vmatmul.mubr.bf16.gmra.mxu0 %v7775_v63 }
 0x1bb   : > { %7773 = vst [vmem:[#allocation37_spill] sm:$0xff] %v6941_v32  ;;  %v6943_v48 = vpop.f32.mrf.mxu1  ;;  %3670 = vmatmul.mubr.bf16.gmra.mxu1 %v6080_v45  ;;  %v6948_v30 = vadd.f32 %v2912_v29, %v6654_v34  ;;  %3526 = vmatprep.mubr.bf16.mxu0 %v7777_v57  ;;  %v7781_v34 = vld [vmem:[#allocation28_spill] sm:$0xff]  ;;  %v7782_v29 = vld [vmem:[#allocation29_spill] sm:$0xff] }
 0x1bc   : > { %7774 = vst [vmem:[#allocation50_spill] sm:$0xff] %v6943_v48  ;;  %3679 = vmatprep.mubr.bf16.mxu1 %v6085_v49  ;;  %v2914_v35 = vpop.f32.mrf.mxu0 }
 0x1bd   : > { %7776 = vst [vmem:[#allocation26_spill] sm:$0xff] %v6948_v30  ;;  %v6952_v11 = vpop.f32.mrf.mxu1  ;;  %v6955_v54 = vadd.f32 %v2914_v35, %v6658_v46  ;;  %v7784_v30 = vld [vmem:[#allocation30_spill] sm:$0xff] }
 0x1be   : > { %v2916_v50 = vpop.f32.mrf.mxu0 }
 0x1bf   : > { %7778 = vst [vmem:[#allocation27_spill] sm:$0xff] %v6955_v54  ;;  %v6957_v21 = vpop.f32.mrf.mxu1 }
 0x1c0   : > { %v2917_v32 = vpop.f32.mrf.mxu0 }
 0x1c1   : > { %v6959_v48 = vpop.f32.mrf.mxu1 }
 0x1c2   : > { %7779 = vst [vmem:[#allocation51_spill] sm:$0xff] %v6959_v48  ;;  %v2920_v45 = vpop.f32.mrf.mxu0  ;;  %3527 = vmatmul.mubr.bf16.gmra.mxu0 %v7781_v34 }
 0x1c3   : > { %v6961_v56 = vpop.f32.mrf.mxu1  ;;  %3680 = vmatmul.mubr.bf16.gmra.mxu1 %v7782_v29  ;;  %v6966_v49 = vadd.f32 %v2920_v45, %v6662_v1  ;;  %3536 = vmatprep.mubr.bf16.mxu0 %v7784_v30 }
 0x1c4   : > { %7780 = vst [vmem:[#allocation52_spill] sm:$0xff] %v6961_v56  ;;  %3689 = vmatprep.mubr.bf16.mxu1 %v6100_v60  ;;  %v2922_v46 = vpop.f32.mrf.mxu0 }
 0x1c5   : > { %7783 = vst [vmem:[#allocation28_spill] sm:$0xff] %v6966_v49  ;;  %v6970_v35 = vpop.f32.mrf.mxu1  ;;  %v6973_v32 = vadd.f32 %v2922_v46, %v6666_v0  ;;  %v7789_v49 = vld [vmem:[#allocation31_spill] sm:$0xff]  ;;  %v7790_v0 = vld [vmem:[#allocation32_spill] sm:$0xff] }
 0x1c6   : > { %v2924_v50 = vpop.f32.mrf.mxu0 }
 0x1c7   : > { %7785 = vst [vmem:[#allocation29_spill] sm:$0xff] %v6973_v32  ;;  %v6975_v54 = vpop.f32.mrf.mxu1  ;;  %v6978_v56 = vadd.f32 %v2924_v50, %v6668_v47 }
 0x1c8   : > { %v2926_v29 = vpop.f32.mrf.mxu0 }
 0x1c9   : > { %7786 = vst [vmem:[#allocation30_spill] sm:$0xff] %v6978_v56  ;;  %v6980_v48 = vpop.f32.mrf.mxu1  ;;  %v6983_v1 = vadd.f32 %v2926_v29, %v6670_v6 }
 0x1ca   : > { %v2930_v45 = vpop.f32.mrf.mxu0  ;;  %3537 = vmatmul.mubr.bf16.gmra.mxu0 %v7789_v49 }
 0x1cb   : > { %7787 = vst [vmem:[#allocation53_spill] sm:$0xff] %v6983_v1  ;;  %v6985_v60 = vpop.f32.mrf.mxu1  ;;  %3690 = vmatmul.mubr.bf16.gmra.mxu1 %v6112_v42  ;;  %3546 = vmatprep.mubr.bf16.mxu0 %v7790_v0 }
 0x1cc   : > { %7788 = vst [vmem:[#allocation54_spill] sm:$0xff] %v6985_v60  ;;  %3699 = vmatprep.mubr.bf16.mxu1 %v6118_v2  ;;  %v2931_v46 = vpop.f32.mrf.mxu0  ;;  %v7795_v60 = vld [vmem:[#allocation33_spill] sm:$0xff]  ;;  %v7796_v2 = vld [vmem:[#allocation34_spill] sm:$0xff] }
 0x1cd   : > { %v6991_v47 = vpop.f32.mrf.mxu1 }
 0x1ce   : > { %v2932_v50 = vpop.f32.mrf.mxu0 }
 0x1cf   : > { %v6993_v56 = vpop.f32.mrf.mxu1  ;;  %v6996_v6 = vadd.f32 %v2932_v50, %v6676_v55 }
 0x1d0   : > { %v2934_v29 = vpop.f32.mrf.mxu0 }
 0x1d1   : > { %7791 = vst [vmem:[#allocation31_spill] sm:$0xff] %v6996_v6  ;;  %v6998_v45 = vpop.f32.mrf.mxu1  ;;  %v7001_v1 = vadd.f32 %v2934_v29, %v6678_v7 }
 0x1d2   : > { %7792 = vst [vmem:[#allocation32_spill] sm:$0xff] %v6998_v45  ;;  %v2938_v42 = vpop.f32.mrf.mxu0  ;;  %3547 = vmatmul.mubr.bf16.gmra.mxu0 %v7795_v60 }
 0x1d3   : > { %7793 = vst [vmem:[#allocation55_spill] sm:$0xff] %v7001_v1  ;;  %v7003_v32 = vpop.f32.mrf.mxu1  ;;  %3700 = vmatmul.mubr.bf16.gmra.mxu1 %v7796_v2  ;;  %v7008_v46 = vadd.f32 %v2938_v42, %v6682_v25  ;;  %3742 = vmatprep.mubr.bf16.mxu0 %v7733_v13  ;;  %v3911_v25 = vlaneseq }
 0x1d4   : > { %7794 = vst [vmem:[#allocation56_spill] sm:$0xff] %v7003_v32  ;;  %3802 = vmatprep.mubr.bf16.mxu1 %v7777_v57  ;;  %v2940_v55 = vpop.f32.mrf.mxu0 }
 0x1d5   : > { %7797 = vst [vmem:[#allocation33_spill] sm:$0xff] %v7008_v46  ;;  %v7012_v50 = vpop.f32.mrf.mxu1  ;;  %v7015_v7 = vadd.f32 %v2940_v55, %v6686_v44 }
 0x1d6   : > { %v2942_v29 = vpop.f32.mrf.mxu0 }
 0x1d7   : > { %7798 = vst [vmem:[#allocation34_spill] sm:$0xff] %v7015_v7  ;;  %v7017_v1 = vpop.f32.mrf.mxu1  ;;  %v7027_v7 = vshrl.u32 %v3911_v25, 7 }
 0x1d8   : > { %7799 = vst [vmem:[#allocation57_spill] sm:$0xff] %v7017_v1  ;;  %v2943_v6 = vpop.f32.mrf.mxu0 }
 0x1d9   : > { %v7019_v32 = vpop.f32.mrf.mxu1  ;;  %vm3913_vm0 = vcmp.lt.s32.totalorder %v7027_v7, 7  ;;  %vm4026_vm1 = vcmp.lt.s32.totalorder %v7027_v7, 6 }
 0x1da   : > { %7800 = vst [vmem:[#allocation58_spill] sm:$0xff] %v7019_v32  ;;  %v3132_v2 = vpop.f32.mrf.mxu0  ;;  %3743 = vmatmul.mubr.bf16.vlgmr.msra.gmra.mxu0 %v7736_v19 }
 0x1db   : > { %v3285_v45 = vpop.f32.mrf.mxu1  ;;  %3803 = vmatmul.mubr.bf16.vlgmr.msra.gmra.mxu1 %v7781_v34  ;;  %v3133_v13 = vadd.f32 %v3132_v2, %v6694_v58  ;;  %3752 = vmatprep.mubr.bf16.mxu0 %v7738_v23 }
 0x1dc   : > { %3812 = vmatprep.mubr.bf16.mxu1 %v7784_v30  ;;  %v3134_v44 = vpop.f32.mrf.mxu0 }
 0x1dd   : > { %v3287_v57 = vpop.f32.mrf.mxu1  ;;  %v3286_v42 = vadd.f32 %v3285_v45, %v3133_v13  ;;  %v3135_v6 = vadd.f32 %v3134_v44, %v6704_v18 }
 0x1de   : > { %v3136_v55 = vpop.f32.mrf.mxu0 }
 0x1df   : > { %v3289_v29 = vpop.f32.mrf.mxu1  ;;  %v3288_v46 = vadd.f32 %v3287_v57, %v3135_v6  ;;  %v3137_v19 = vadd.f32 %v3136_v55, %v6714_v61  ;;  %v3863_v18 = vrot.slane %v3286_v42, 1 }
 0x1e0   : > { %v3138_v34 = vpop.f32.mrf.mxu0 }
 0x1e1   : > { %v3291_v32 = vpop.f32.mrf.mxu1  ;;  %v3290_v1 = vadd.f32 %v3289_v29, %v3137_v19  ;;  %v3139_v58 = vadd.f32 %v3138_v34, %v6722_v20  ;;  %v3864_v61 = vrot.slane %v3288_v46, 1 }
 0x1e2   : > { %v3142_v23 = vpop.f32.mrf.mxu0  ;;  %3753 = vmatmul.mubr.bf16.gmra.mxu0 %v7743_v4 }
 0x1e3   : > { %v3295_v30 = vpop.f32.mrf.mxu1  ;;  %3813 = vmatmul.mubr.bf16.gmra.mxu1 %v7789_v49  ;;  %v3865_v45 = vrot.slane %v3290_v1, 1  ;;  %v3292_v2 = vadd.f32 %v3291_v32, %v3139_v58  ;;  %v3143_v25 = vadd.f32 %v3142_v23, %v6730_v33  ;;  %3762 = vmatprep.mubr.bf16.mxu0 %v7744_v28 }
 0x1e4   : > { %3822 = vmatprep.mubr.bf16.mxu1 %v7790_v0  ;;  %v3144_v13 = vpop.f32.mrf.mxu0 }
 0x1e5   : > { %v3297_v20 = vpop.f32.mrf.mxu1  ;;  %v3944_v44 = vsel %vm3913_vm0, %v3863_v18, %v3865_v45  ;;  %v3866_v57 = vrot.slane %v3292_v2, 1  ;;  %v3296_v6 = vadd.f32 %v3295_v30, %v3143_v25  ;;  %v3145_v4 = vadd.f32 %v3144_v13, %v6737_v39 }
 0x1e6   : > { %v7041_v49 = vadd.f32 %v3944_v44, %v6699_v26  ;;  %v3146_v32 = vpop.f32.mrf.mxu0 }
 0x1e7   : > { %v3299_v1 = vpop.f32.mrf.mxu1  ;;  %v3945_v33 = vsel %vm3913_vm0, %v3864_v61, %v3866_v57  ;;  %v3867_v28 = vrot.slane %v3296_v6, 1  ;;  %v3298_v0 = vadd.f32 %v3297_v20, %v3145_v4  ;;  %v3147_v46 = vadd.f32 %v3146_v32, %v6744_v24 }
 0x1e8   : > { %v7047_v42 = vadd.f32 %v3945_v33, %v6710_v9  ;;  %v3148_v55 = vpop.f32.mrf.mxu0 }
 0x1e9   : > { %v3301_v29 = vpop.f32.mrf.mxu1  ;;  %v3942_v39 = vsel %vm3913_vm0, %v3865_v45, %v3867_v28  ;;  %v3868_v19 = vrot.slane %v3298_v0, 1  ;;  %v3300_v26 = vadd.f32 %v3299_v1, %v3147_v46  ;;  %v3149_v34 = vadd.f32 %v3148_v55, %v6749_v31  ;;  %v7803_v45 = vld [vmem:[#allocation16_spill] sm:$0xff]  ;;  %v7806_v0 = vld [vmem:[#allocation17_spill] sm:$0xff] }
 0x1ea   : > { %7801 = vst [vmem:[#allocation59_spill] sm:$0xff] %v7047_v42  ;;  %v7053_v58 = vadd.f32 %v3942_v39, %v6717_v43  ;;  %v3152_v23 = vpop.f32.mrf.mxu0  ;;  %3763 = vmatmul.mubr.bf16.gmra.mxu0 %v7750_v8 }
 0x1eb   : > { %v3305_v30 = vpop.f32.mrf.mxu1  ;;  %3823 = vmatmul.mubr.bf16.gmra.mxu1 %v7795_v60  ;;  %v3943_v9 = vsel %vm3913_vm0, %v3866_v57, %v3868_v19  ;;  %v3302_v24 = vadd.f32 %v3301_v29, %v3149_v34  ;;  %v3153_v18 = vadd.f32 %v3152_v23, %v6760_v16  ;;  %3772 = vmatprep.mubr.bf16.mxu0 %v7753_v62  ;;  %v3869_v13 = vrot.slane %v3300_v26, 1  ;;  %v7807_v29 = vld [vmem:[#allocation39_spill] sm:$0xff] }
 0x1ec   : > { %7802 = vst [vmem:[#allocation60_spill] sm:$0xff] %v7053_v58  ;;  %3832 = vmatprep.mubr.bf16.mxu1 %v7803_v45  ;;  %v7063_v31 = vadd.f32 %v3943_v9, %v6725_v15  ;;  %v3154_v43 = vpop.f32.mrf.mxu0  ;;  %v7808_v19 = vld [vmem:[#allocation35_spill] sm:$0xff] }
 0x1ed   : > { %v3307_v2 = vpop.f32.mrf.mxu1  ;;  %v3306_v25 = vadd.f32 %v3305_v30, %v3153_v18  ;;  %v3155_v8 = vadd.f32 %v3154_v43, %v6769_v17  ;;  %v3870_v16 = vrot.slane %v3302_v24, 1  ;;  %v7811_v24 = vld [vmem:[#allocation9_spill] sm:$0xff] }
 0x1ee   : > { %7804 = vst [vmem:[#allocation16_spill] sm:$0xff] %v7063_v31  ;;  %v3156_v61 = vpop.f32.mrf.mxu0 }
 0x1ef   : > { %v3309_v60 = vpop.f32.mrf.mxu1  ;;  %v3871_v20 = vrot.slane %v3306_v25, 1  ;;  %v3308_v44 = vadd.f32 %v3307_v2, %v3155_v8  ;;  %v3157_v57 = vadd.f32 %v3156_v61, %v6780_v40  ;;  %v7813_v8 = vld [vmem:[#allocation10_spill] sm:$0xff] }
 0x1f0   : > { %v3158_v6 = vpop.f32.mrf.mxu0 }
 0x1f1   : > { %v3311_v62 = vpop.f32.mrf.mxu1  ;;  %v3940_v4 = vsel %vm3913_vm0, %v3869_v13, %v3871_v20  ;;  %v3872_v15 = vrot.slane %v3308_v44, 1  ;;  %v3310_v32 = vadd.f32 %v3309_v60, %v3157_v57  ;;  %v3159_v1 = vadd.f32 %v3158_v6, %v6782_v52  ;;  %v7809_v52 = vld [vmem:[#allocation38_spill] sm:$0xff] }
 0x1f2   : > { %v7071_v33 = vadd.f32 %v3940_v4, %v6747_v41  ;;  %v3162_v17 = vpop.f32.mrf.mxu0  ;;  %3773 = vmatmul.mubr.bf16.gmra.mxu0 %v7758_v53 }
 0x1f3   : > { %v3315_v28 = vpop.f32.mrf.mxu1  ;;  %3833 = vmatmul.mubr.bf16.gmra.mxu1 %v7806_v0  ;;  %v3941_v40 = vsel %vm3913_vm0, %v3870_v16, %v3872_v15  ;;  %v3873_v46 = vrot.slane %v3310_v32, 1  ;;  %v3312_v55 = vadd.f32 %v3311_v62, %v3159_v1  ;;  %v3163_v39 = vadd.f32 %v3162_v17, %v7807_v29  ;;  %3782 = vmatprep.mubr.bf16.mxu0 %v7760_v36  ;;  %v7815_v16 = vld [vmem:[#allocation36_spill] sm:$0xff] }
 0x1f4   : > { %7805 = vst [vmem:[#allocation61_spill] sm:$0xff] %v7071_v33  ;;  %3842 = vmatprep.mubr.bf16.mxu1 %v7808_v19  ;;  %v7081_v41 = vadd.f32 %v3941_v40, %v7809_v52  ;;  %v3164_v26 = vpop.f32.mrf.mxu0  ;;  %v7819_v52 = vld [vmem:[#allocation15_spill] sm:$0xff] }
 0x1f5   : > { %v3317_v34 = vpop.f32.mrf.mxu1  ;;  %v3938_v53 = vsel %vm3913_vm0, %v3871_v20, %v3873_v46  ;;  %v3874_v23 = vrot.slane %v3312_v55, 1  ;;  %v3316_v30 = vadd.f32 %v3315_v28, %v3163_v39  ;;  %v3165_v9 = vadd.f32 %v3164_v26, %v6799_v22  ;;  %v7817_v46 = vld [vmem:[#allocation11_spill] sm:$0xff] }
 0x1f6   : > { %7810 = vst [vmem:[#allocation17_spill] sm:$0xff] %v7081_v41  ;;  %v7087_v18 = vadd.f32 %v3938_v53, %v7811_v24  ;;  %v3166_v45 = vpop.f32.mrf.mxu0 }
 0x1f7   : > { %v3319_v43 = vpop.f32.mrf.mxu1  ;;  %v3939_v36 = vsel %vm3913_vm0, %v3872_v15, %v3874_v23  ;;  %v3318_v2 = vadd.f32 %v3317_v34, %v3165_v9  ;;  %v3167_v25 = vadd.f32 %v3166_v45, %v6810_v37  ;;  %v3875_v6 = vrot.slane %v3316_v30, 1  ;;  %v5266_v37 = vld [vmem:[%s5612_s11 + $0x24] ss:$8 sps:$4 sm:$0xff]   ;;  %v7820_v34 = vld [vmem:[#allocation12_spill] sm:$0xff] }
 0x1f8   : > { %7812 = vst [vmem:[#allocation39_spill] sm:$0xff] %v7087_v18  ;;  %v7093_v61 = vadd.f32 %v3939_v36, %v7813_v8  ;;  %v3168_v60 = vpop.f32.mrf.mxu0 }
 0x1f9   : > { %v3321_v13 = vpop.f32.mrf.mxu1  ;;  %v3320_v20 = vadd.f32 %v3319_v43, %v3167_v25  ;;  %v3169_v22 = vadd.f32 %v3168_v60, %v6815_v3  ;;  %v3876_v32 = vrot.slane %v3318_v2, 1  ;;  %v7822_v43 = vld [vmem:[#allocation42_spill] sm:$0xff]  ;;  %v7823_v2 = vld [vmem:[#allocation13_spill] sm:$0xff] }
 0x1fa   : > { %7814 = vst [vmem:[#allocation35_spill] sm:$0xff] %v7093_v61  ;;  %v3172_v44 = vpop.f32.mrf.mxu0  ;;  %3783 = vmatmul.mubr.bf16.gmra.mxu0 %v7767_v51  ;;  %v7816_v51 = vld [vmem:[#allocation14_spill] sm:$0xff] }
 0x1fb   : > { %v3325_v57 = vpop.f32.mrf.mxu1  ;;  %3843 = vmatmul.mubr.bf16.gmra.mxu1 %v7815_v16  ;;  %v3877_v62 = vrot.slane %v3320_v20, 1  ;;  %v3322_v4 = vadd.f32 %v3321_v13, %v3169_v22  ;;  %v3173_v15 = vadd.f32 %v3172_v44, %v6826_v14  ;;  %3792 = vmatprep.mubr.bf16.mxu0 %v7768_v12  ;;  %v5267_v13 = vld [vmem:[%s5612_s11 + $0x20] ss:$8 sps:$4 sm:$0xff]  }
 0x1fc   : > { %3852 = vmatprep.mubr.bf16.mxu1 %v5266_v37  ;;  %v3174_v1 = vpop.f32.mrf.mxu0 }
 0x1fd   : > { %v3327_v17 = vpop.f32.mrf.mxu1  ;;  %v3936_v3 = vsel %vm3913_vm0, %v3875_v6, %v3877_v62  ;;  %v3878_v28 = vrot.slane %v3322_v4, 1  ;;  %v3326_v0 = vadd.f32 %v3325_v57, %v3173_v15  ;;  %v3175_v40 = vadd.f32 %v3174_v1, %v7816_v51  ;;  %v7825_v57 = vld [vmem:[#allocation40_spill] sm:$0xff] }
 0x1fe   : > { %v7105_v55 = vadd.f32 %v3936_v3, %v7817_v46  ;;  %v3176_v29 = vpop.f32.mrf.mxu0  ;;  %v7827_v3 = vld [vmem:[#allocation20_spill] sm:$0xff] }
 0x1ff   : > { %v3329_v39 = vpop.f32.mrf.mxu1  ;;  %v3937_v14 = vsel %vm3913_vm0, %v3876_v32, %v3878_v28  ;;  %v3879_v12 = vrot.slane %v3326_v0, 1  ;;  %v3328_v19 = vadd.f32 %v3327_v17, %v3175_v40  ;;  %v3177_v26 = vadd.f32 %v3176_v29, %v7819_v52 }
 0x200   : > { %7818 = vst [vmem:[#allocation38_spill] sm:$0xff] %v7105_v55  ;;  %v7111_v53 = vadd.f32 %v3937_v14, %v7820_v34  ;;  %v3178_v23 = vpop.f32.mrf.mxu0 }
 0x201   : > { %v3331_v30 = vpop.f32.mrf.mxu1  ;;  %v3934_v9 = vsel %vm3913_vm0, %v3877_v62, %v3879_v12  ;;  %v3880_v24 = vrot.slane %v3328_v19, 1  ;;  %v3330_v45 = vadd.f32 %v3329_v39, %v3177_v26  ;;  %v3179_v36 = vadd.f32 %v3178_v23, %v7822_v43  ;;  %v7828_v39 = vld [vmem:[#allocation44_spill] sm:$0xff]  ;;  %v7829_v12 = vld [vmem:[#allocation41_spill] sm:$0xff] }
 0x202   : > { %7821 = vst [vmem:[#allocation9_spill] sm:$0xff] %v7111_v53  ;;  %v7117_v25 = vadd.f32 %v3934_v9, %v7823_v2  ;;  %v3182_v8 = vpop.f32.mrf.mxu0  ;;  %3793 = vmatmul.mubr.bf16.gmra.mxu0 %v7775_v63 }
 0x203   : > { %v3335_v60 = vpop.f32.mrf.mxu1  ;;  %3853 = vmatmul.mubr.bf16.gmra.mxu1 %v5267_v13  ;;  %v3935_v20 = vsel %vm3913_vm0, %v3878_v28, %v3880_v24  ;;  %v3332_v22 = vadd.f32 %v3331_v30, %v3179_v36  ;;  %v3183_v44 = vadd.f32 %v3182_v8, %v6856_v5  ;;  %v3881_v1 = vrot.slane %v3330_v45, 1  ;;  %v7831_v30 = vld [vmem:[#allocation45_spill] sm:$0xff]  ;;  %v7832_v24 = vld [vmem:[#allocation43_spill] sm:$0xff] }
 0x204   : > { %7824 = vst [vmem:[#allocation10_spill] sm:$0xff] %v7117_v25  ;;  %v7125_v16 = vadd.f32 %v3935_v20, %v7825_v57  ;;  %v3184_v6 = vpop.f32.mrf.mxu0  ;;  %v7834_v20 = vld [vmem:[#allocation18_spill] sm:$0xff] }
 0x205   : > { %v3337_v62 = vpop.f32.mrf.mxu1  ;;  %v3336_v4 = vadd.f32 %v3335_v60, %v3183_v44  ;;  %v3185_v15 = vadd.f32 %v3184_v6, %v6865_v27  ;;  %v3882_v51 = vrot.slane %v3332_v22, 1 }
 0x206   : > { %7826 = vst [vmem:[#allocation36_spill] sm:$0xff] %v7125_v16  ;;  %v3186_v37 = vpop.f32.mrf.mxu0 }
 0x207   : > { %v3339_v32 = vpop.f32.mrf.mxu1  ;;  %v3883_v63 = vrot.slane %v3336_v4, 1  ;;  %v3338_v17 = vadd.f32 %v3337_v62, %v3185_v15  ;;  %v3187_v0 = vadd.f32 %v3186_v37, %v7827_v3  ;;  %v7836_v15 = vld [vmem:[#allocation19_spill] sm:$0xff] }
 0x208   : > { %v3188_v28 = vpop.f32.mrf.mxu0 }
 0x209   : > { %v3341_v40 = vpop.f32.mrf.mxu1  ;;  %v3932_v5 = vsel %vm3913_vm0, %v3881_v1, %v3883_v63  ;;  %v3884_v46 = vrot.slane %v3338_v17, 1  ;;  %v3340_v29 = vadd.f32 %v3339_v32, %v3187_v0  ;;  %v3189_v14 = vadd.f32 %v3188_v28, %v7828_v39  ;;  %v7838_v17 = vld [vmem:[#allocation46_spill] sm:$0xff] }
 0x20a   : > { %v7133_v19 = vadd.f32 %v3932_v5, %v7829_v12  ;;  %v3192_v27 = vpop.f32.mrf.mxu0  ;;  %v7839_v5 = vld [vmem:[#allocation48_spill] sm:$0xff] }
 0x20b   : > { %v3345_v52 = vpop.f32.mrf.mxu1  ;;  %v3933_v26 = vsel %vm3913_vm0, %v3882_v51, %v3884_v46  ;;  %v3885_v34 = vrot.slane %v3340_v29, 1  ;;  %v3342_v23 = vadd.f32 %v3341_v40, %v3189_v14  ;;  %v3193_v9 = vadd.f32 %v3192_v27, %v7831_v30 }
 0x20c   : > { %7830 = vst [vmem:[#allocation14_spill] sm:$0xff] %v7133_v19  ;;  %v7139_v45 = vadd.f32 %v3933_v26, %v7832_v24  ;;  %v3194_v43 = vpop.f32.mrf.mxu0 }
 0x20d   : > { %v3347_v36 = vpop.f32.mrf.mxu1  ;;  %v3930_v2 = vsel %vm3913_vm0, %v3883_v63, %v3885_v34  ;;  %v3886_v8 = vrot.slane %v3342_v23, 1  ;;  %v3346_v60 = vadd.f32 %v3345_v52, %v3193_v9  ;;  %v3195_v13 = vadd.f32 %v3194_v43, %v6895_v10  ;;  %v7840_v52 = vld [vmem:[#allocation24_spill] sm:$0xff]  ;;  %v7841_v34 = vld [vmem:[#allocation21_spill] sm:$0xff] }
 0x20e   : > { %7833 = vst [vmem:[#allocation11_spill] sm:$0xff] %v7139_v45  ;;  %v7145_v22 = vadd.f32 %v3930_v2, %v7834_v20  ;;  %v3196_v44 = vpop.f32.mrf.mxu0 }
 0x20f   : > { %v3349_v57 = vpop.f32.mrf.mxu1  ;;  %v3931_v6 = vsel %vm3913_vm0, %v3884_v46, %v3886_v8  ;;  %v3348_v62 = vadd.f32 %v3347_v36, %v3195_v13  ;;  %v3197_v4 = vadd.f32 %v3196_v44, %v6906_v38  ;;  %v3887_v51 = vrot.slane %v3346_v60, 1  ;;  %v7842_v8 = vld [vmem:[#allocation22_spill] sm:$0xff] }
 0x210   : > { %7835 = vst [vmem:[#allocation15_spill] sm:$0xff] %v7145_v22  ;;  %v7151_v37 = vadd.f32 %v3931_v6, %v7836_v15  ;;  %v3198_v32 = vpop.f32.mrf.mxu0  ;;  %v7845_v15 = vld [vmem:[#allocation23_spill] sm:$0xff] }
 0x211   : > { %v3351_v1 = vpop.f32.mrf.mxu1  ;;  %v3350_v63 = vadd.f32 %v3349_v57, %v3197_v4  ;;  %v3199_v3 = vadd.f32 %v3198_v32, %v7838_v17  ;;  %v3888_v39 = vrot.slane %v3348_v62, 1  ;;  %v7844_v62 = vld [vmem:[#allocation49_spill] sm:$0xff] }
 0x212   : > { %7837 = vst [vmem:[#allocation12_spill] sm:$0xff] %v7151_v37  ;;  %v3202_v10 = vpop.f32.mrf.mxu0 }
 0x213   : > { %v3355_v0 = vpop.f32.mrf.mxu1  ;;  %v3889_v28 = vrot.slane %v3350_v63, 1  ;;  %v3352_v40 = vadd.f32 %v3351_v1, %v3199_v3  ;;  %v3203_v29 = vadd.f32 %v3202_v10, %v7839_v5  ;;  %v7847_v3 = vld [vmem:[#allocation50_spill] sm:$0xff] }
 0x214   : > { %v3204_v46 = vpop.f32.mrf.mxu0 }
 0x215   : > { %v3357_v14 = vpop.f32.mrf.mxu1  ;;  %v3928_v38 = vsel %vm3913_vm0, %v3887_v51, %v3889_v28  ;;  %v3890_v12 = vrot.slane %v3352_v40, 1  ;;  %v3356_v27 = vadd.f32 %v3355_v0, %v3203_v29  ;;  %v3205_v26 = vadd.f32 %v3204_v46, %v7840_v52  ;;  %v7848_v0 = vld [vmem:[#allocation47_spill] sm:$0xff] }
 0x216   : > { %v7159_v23 = vadd.f32 %v3928_v38, %v7841_v34  ;;  %v3206_v30 = vpop.f32.mrf.mxu0 }
 0x217   : > { %v3359_v9 = vpop.f32.mrf.mxu1  ;;  %v3929_v24 = vsel %vm3913_vm0, %v3888_v39, %v3890_v12  ;;  %v3891_v43 = vrot.slane %v3356_v27, 1  ;;  %v3358_v36 = vadd.f32 %v3357_v14, %v3205_v26  ;;  %v3207_v2 = vadd.f32 %v3206_v30, %v6933_v59 }
 0x218   : > { %v7165_v60 = vadd.f32 %v3929_v24, %v7842_v8  ;;  %v3208_v13 = vpop.f32.mrf.mxu0 }
 0x219   : > { %v3361_v20 = vpop.f32.mrf.mxu1  ;;  %v3926_v44 = vsel %vm3913_vm0, %v3889_v28, %v3891_v43  ;;  %v3892_v57 = vrot.slane %v3358_v36, 1  ;;  %v3360_v6 = vadd.f32 %v3359_v9, %v3207_v2  ;;  %v3209_v4 = vadd.f32 %v3208_v13, %v7844_v62  ;;  %v7850_v43 = vld [vmem:[#allocation51_spill] sm:$0xff]  ;;  %v7851_v2 = vld [vmem:[#allocation25_spill] sm:$0xff] }
 0x21a   : > { %7843 = vst [vmem:[#allocation42_spill] sm:$0xff] %v7165_v60  ;;  %v7171_v32 = vadd.f32 %v3926_v44, %v7845_v15  ;;  %v3212_v1 = vpop.f32.mrf.mxu0  ;;  %v7854_v62 = vld [vmem:[#allocation37_spill] sm:$0xff] }
 0x21b   : > { %v3365_v63 = vpop.f32.mrf.mxu1  ;;  %v3927_v59 = vsel %vm3913_vm0, %v3890_v12, %v3892_v57  ;;  %v3362_v17 = vadd.f32 %v3361_v20, %v3209_v4  ;;  %v3213_v10 = vadd.f32 %v3212_v1, %v7847_v3  ;;  %v3893_v14 = vrot.slane %v3360_v6, 1  ;;  %v7853_v57 = vld [vmem:[#allocation52_spill] sm:$0xff] }
 0x21c   : > { %7846 = vst [vmem:[#allocation13_spill] sm:$0xff] %v7171_v32  ;;  %v7177_v51 = vadd.f32 %v3927_v59, %v7848_v0  ;;  %v3214_v40 = vpop.f32.mrf.mxu0 }
 0x21d   : > { %v3367_v28 = vpop.f32.mrf.mxu1  ;;  %v3366_v5 = vadd.f32 %v3365_v63, %v3213_v10  ;;  %v3215_v29 = vadd.f32 %v3214_v40, %v6952_v11  ;;  %v3894_v26 = vrot.slane %v3362_v17, 1  ;;  %v7856_v10 = vld [vmem:[#allocation26_spill] sm:$0xff] }
 0x21e   : > { %7849 = vst [vmem:[#allocation40_spill] sm:$0xff] %v7177_v51  ;;  %v3216_v39 = vpop.f32.mrf.mxu0  ;;  %v4091_v51 = vld [vmem:[%s7645_s3] sm:$0x3] }
 0x21f   : > { %v3369_v46 = vpop.f32.mrf.mxu1  ;;  %v3895_v38 = vrot.slane %v3366_v5, 1  ;;  %v3368_v27 = vadd.f32 %v3367_v28, %v3215_v29  ;;  %v3217_v52 = vadd.f32 %v3216_v39, %v6957_v21 }
 0x220   : > { %v3218_v12 = vpop.f32.mrf.mxu0 }
 0x221   : > { %v3371_v34 = vpop.f32.mrf.mxu1  ;;  %v3924_v30 = vsel %vm3913_vm0, %v3893_v14, %v3895_v38  ;;  %v3896_v9 = vrot.slane %v3368_v27, 1  ;;  %v3370_v24 = vadd.f32 %v3369_v46, %v3217_v52  ;;  %v3219_v36 = vadd.f32 %v3218_v12, %v7850_v43  ;;  %v7858_v46 = vld [vmem:[#allocation27_spill] sm:$0xff]  ;;  %v7860_v43 = vld [vmem:[#allocation54_spill] sm:$0xff] }
 0x222   : > { %v7185_v8 = vadd.f32 %v3924_v30, %v7851_v2  ;;  %v3222_v11 = vpop.f32.mrf.mxu0 }
 0x223   : > { %v3375_v13 = vpop.f32.mrf.mxu1  ;;  %v3925_v20 = vsel %vm3913_vm0, %v3894_v26, %v3896_v9  ;;  %v3897_v44 = vrot.slane %v3370_v24, 1  ;;  %v3372_v21 = vadd.f32 %v3371_v34, %v3219_v36  ;;  %v3223_v6 = vadd.f32 %v3222_v11, %v7853_v57 }
 0x224   : > { %7852 = vst [vmem:[#allocation20_spill] sm:$0xff] %v7185_v8  ;;  %v7191_v4 = vadd.f32 %v3925_v20, %v7854_v62  ;;  %v3224_v15 = vpop.f32.mrf.mxu0 }
 0x225   : > { %v3377_v1 = vpop.f32.mrf.mxu1  ;;  %v3922_v63 = vsel %vm3913_vm0, %v3895_v38, %v3897_v44  ;;  %v3898_v59 = vrot.slane %v3372_v21, 1  ;;  %v3376_v17 = vadd.f32 %v3375_v13, %v3223_v6  ;;  %v3225_v3 = vadd.f32 %v3224_v15, %v6970_v35  ;;  %v7861_v21 = vld [vmem:[#allocation28_spill] sm:$0xff] }
 0x226   : > { %7855 = vst [vmem:[#allocation44_spill] sm:$0xff] %v7191_v4  ;;  %v7197_v0 = vadd.f32 %v3922_v63, %v7856_v10  ;;  %v3226_v40 = vpop.f32.mrf.mxu0 }
 0x227   : > { %v3379_v28 = vpop.f32.mrf.mxu1  ;;  %v3923_v5 = vsel %vm3913_vm0, %v3896_v9, %v3898_v59  ;;  %v3378_v29 = vadd.f32 %v3377_v1, %v3225_v3  ;;  %v3227_v39 = vadd.f32 %v3226_v40, %v6975_v54  ;;  %v3899_v34 = vrot.slane %v3376_v17, 1  ;;  %v7863_v59 = vld [vmem:[#allocation29_spill] sm:$0xff] }
 0x228   : > { %7857 = vst [vmem:[#allocation41_spill] sm:$0xff] %v7197_v0  ;;  %v7203_v14 = vadd.f32 %v3923_v5, %v7858_v46  ;;  %v3228_v27 = vpop.f32.mrf.mxu0  ;;  %v7865_v5 = vld [vmem:[#allocation32_spill] sm:$0xff] }
 0x229   : > { %v3381_v38 = vpop.f32.mrf.mxu1  ;;  %v3380_v52 = vadd.f32 %v3379_v28, %v3227_v39  ;;  %v3229_v26 = vadd.f32 %v3228_v27, %v6980_v48  ;;  %v3900_v2 = vrot.slane %v3378_v29, 1  ;;  %v7866_v39 = vld [vmem:[#allocation30_spill] sm:$0xff] }
 0x22a   : > { %7859 = vst [vmem:[#allocation45_spill] sm:$0xff] %v7203_v14  ;;  %v3232_v35 = vpop.f32.mrf.mxu0 }
 0x22b   : > { %v3385_v12 = vpop.f32.mrf.mxu1  ;;  %v3901_v30 = vrot.slane %v3380_v52, 1  ;;  %v3382_v24 = vadd.f32 %v3381_v38, %v3229_v26  ;;  %v3233_v36 = vadd.f32 %v3232_v35, %v7860_v43  ;;  %v7868_v26 = vld [vmem:[#allocation56_spill] sm:$0xff] }
 0x22c   : > { %v3234_v9 = vpop.f32.mrf.mxu0 }
 0x22d   : > { %v3387_v11 = vpop.f32.mrf.mxu1  ;;  %v3920_v54 = vsel %vm3913_vm0, %v3899_v34, %v3901_v30  ;;  %v3902_v13 = vrot.slane %v3382_v24, 1  ;;  %v3386_v20 = vadd.f32 %v3385_v12, %v3233_v36  ;;  %v3235_v44 = vadd.f32 %v3234_v9, %v6991_v47  ;;  %v7869_v12 = vld [vmem:[#allocation53_spill] sm:$0xff] }
 0x22e   : > { %v7211_v57 = vadd.f32 %v3920_v54, %v7861_v21  ;;  %v3236_v48 = vpop.f32.mrf.mxu0 }
 0x22f   : > { %v3389_v6 = vpop.f32.mrf.mxu1  ;;  %v3921_v62 = vsel %vm3913_vm0, %v3900_v2, %v3902_v13  ;;  %v3903_v15 = vrot.slane %v3386_v20, 1  ;;  %v3388_v1 = vadd.f32 %v3387_v11, %v3235_v44  ;;  %v3237_v63 = vadd.f32 %v3236_v48, %v6993_v56  ;;  %v7871_v44 = vld [vmem:[#allocation57_spill] sm:$0xff] }
 0x230   : > { %7862 = vst [vmem:[#allocation43_spill] sm:$0xff] %v7211_v57  ;;  %v7217_v17 = vadd.f32 %v3921_v62, %v7863_v59  ;;  %v3238_v3 = vpop.f32.mrf.mxu0 }
 0x231   : > { %v3391_v10 = vpop.f32.mrf.mxu1  ;;  %v3918_v47 = vsel %vm3913_vm0, %v3901_v30, %v3903_v15  ;;  %v3904_v40 = vrot.slane %v3388_v1, 1  ;;  %v3390_v28 = vadd.f32 %v3389_v6, %v3237_v63  ;;  %v3239_v29 = vadd.f32 %v3238_v3, %v7865_v5  ;;  %v7872_v63 = vld [vmem:[#allocation58_spill] sm:$0xff]  ;;  %v7873_v3 = vld [vmem:[#allocation31_spill] sm:$0xff] }
 0x232   : > { %7864 = vst [vmem:[#allocation18_spill] sm:$0xff] %v7217_v17  ;;  %v7223_v46 = vadd.f32 %v3918_v47, %v7866_v39  ;;  %v3242_v27 = vpop.f32.mrf.mxu0  ;;  %v7875_v39 = vld [vmem:[#allocation55_spill] sm:$0xff] }
 0x233   : > { %v3395_v38 = vpop.f32.mrf.mxu1  ;;  %v3919_v56 = vsel %vm3913_vm0, %v3902_v13, %v3904_v40  ;;  %v3392_v52 = vadd.f32 %v3391_v10, %v3239_v29  ;;  %v3243_v35 = vadd.f32 %v3242_v27, %v7868_v26  ;;  %v3905_v11 = vrot.slane %v3390_v28, 1 }
 0x234   : > { %7867 = vst [vmem:[#allocation19_spill] sm:$0xff] %v7223_v46  ;;  %v7229_v34 = vadd.f32 %v3919_v56, %v7869_v12  ;;  %v3244_v24 = vpop.f32.mrf.mxu0  ;;  %v7877_v12 = vld [vmem:[#allocation33_spill] sm:$0xff] }
 0x235   : > { %v3397_v30 = vpop.f32.mrf.mxu1  ;;  %v3396_v43 = vadd.f32 %v3395_v38, %v3243_v35  ;;  %v3245_v36 = vadd.f32 %v3244_v24, %v7012_v50  ;;  %v3906_v48 = vrot.slane %v3392_v52, 1 }
 0x236   : > { %7870 = vst [vmem:[#allocation46_spill] sm:$0xff] %v7229_v34  ;;  %v3246_v2 = vpop.f32.mrf.mxu0 }
 0x237   : > { %v3399_v9 = vpop.f32.mrf.mxu1  ;;  %v3907_v54 = vrot.slane %v3396_v43, 1  ;;  %v3398_v20 = vadd.f32 %v3397_v30, %v3245_v36  ;;  %v3247_v21 = vadd.f32 %v3246_v2, %v7871_v44 }
 0x238   : > { %v3248_v13 = vpop.f32.mrf.mxu0 }
 0x239   : > { %v3401_v6 = vpop.f32.mrf.mxu1  ;;  %v3916_v62 = vsel %vm3913_vm0, %v3905_v11, %v3907_v54  ;;  %v3908_v15 = vrot.slane %v3398_v20, 1  ;;  %v3400_v1 = vadd.f32 %v3399_v9, %v3247_v21  ;;  %v3249_v59 = vadd.f32 %v3248_v13, %v7872_v63  ;;  %v7879_v9 = vld [vmem:[#allocation34_spill] sm:$0xff] }
 0x23a   : > { %v7237_v10 = vadd.f32 %v3916_v62, %v7873_v3  ;;  %v3438_v50 = vpop.f32.mrf.mxu0 }
 0x23b   : > { %v3591_v47 = vpop.f32.mrf.mxu1  ;;  %v3917_v40 = vsel %vm3913_vm0, %v3906_v48, %v3908_v15  ;;  %v3909_v28 = vrot.slane %v3400_v1, 1  ;;  %v3402_v5 = vadd.f32 %v3401_v6, %v3249_v59 }
 0x23c   : > { %7874 = vst [vmem:[#allocation48_spill] sm:$0xff] %v7237_v10  ;;  %v7241_v29 = vadd.f32 %v3591_v47, %v3438_v50  ;;  %v7244_v27 = vadd.f32 %v3917_v40, %v7875_v39  ;;  %v3440_v38 = vpop.f32.mrf.mxu0 }
 0x23d   : > { %v3593_v56 = vpop.f32.mrf.mxu1  ;;  %v3914_v52 = vsel %vm3913_vm0, %v3907_v54, %v3909_v28  ;;  %v3910_v26 = vrot.slane %v3402_v5, 1 }
 0x23e   : > { %7876 = vst [vmem:[#allocation24_spill] sm:$0xff] %v7244_v27  ;;  %v7248_v35 = vadd.f32 %v3593_v56, %v3440_v38  ;;  %v7251_v24 = vadd.f32 %v3914_v52, %v7877_v12  ;;  %v3442_v30 = vpop.f32.mrf.mxu0 }
 0x23f   : > { %v3595_v43 = vpop.f32.mrf.mxu1  ;;  %v3915_v36 = vsel %vm3913_vm0, %v3908_v15, %v3910_v26 }
 0x240   : > { %7878 = vst [vmem:[#allocation21_spill] sm:$0xff] %v7251_v24  ;;  %v7255_v2 = vadd.f32 %v3595_v43, %v3442_v30  ;;  %v7258_v11 = vadd.f32 %v3915_v36, %v7879_v9  ;;  %v3444_v20 = vpop.f32.mrf.mxu0 }
 0x241   : > { %v3597_v44 = vpop.f32.mrf.mxu1 }
 0x242   : > { %7880 = vst [vmem:[#allocation22_spill] sm:$0xff] %v7258_v11  ;;  %v7260_v21 = vadd.f32 %v3597_v44, %v3444_v20  ;;  %v3448_v54 = vpop.f32.mrf.mxu0 }
 0x243   : > { %v3601_v48 = vpop.f32.mrf.mxu1 }
 0x244   : > { %v7262_v13 = vadd.f32 %v3601_v48, %v3448_v54  ;;  %v3450_v6 = vpop.f32.mrf.mxu0 }
 0x245   : > { %v3603_v62 = vpop.f32.mrf.mxu1 }
 0x246   : > { %7881 = vst [vmem:[#allocation49_spill] sm:$0xff] %v7262_v13  ;;  %v7264_v1 = vadd.f32 %v3603_v62, %v3450_v6  ;;  %v3452_v63 = vpop.f32.mrf.mxu0 }
 0x247   : > { %v3605_v59 = vpop.f32.mrf.mxu1 }
 0x248   : > { %7882 = vst [vmem:[#allocation23_spill] sm:$0xff] %v7264_v1  ;;  %v7266_v15 = vadd.f32 %v3605_v59, %v3452_v63  ;;  %v3454_v3 = vpop.f32.mrf.mxu0 }
 0x249   : > { %v3607_v50 = vpop.f32.mrf.mxu1 }
 0x24a   : > { %7883 = vst [vmem:[#allocation50_spill] sm:$0xff] %v7266_v15  ;;  %v7268_v47 = vadd.f32 %v3607_v50, %v3454_v3  ;;  %v3458_v40 = vpop.f32.mrf.mxu0 }
 0x24b   : > { %v3611_v28 = vpop.f32.mrf.mxu1 }
 0x24c   : > { %7884 = vst [vmem:[#allocation47_spill] sm:$0xff] %v7268_v47  ;;  %v7270_v5 = vadd.f32 %v3611_v28, %v3458_v40  ;;  %v3460_v39 = vpop.f32.mrf.mxu0  ;;  %v4099_v47 = vsub.s32 1, %v7027_v7 }
 0x24d   : > { %v3613_v38 = vpop.f32.mrf.mxu1 }
 0x24e   : > { %7885 = vst [vmem:[#allocation51_spill] sm:$0xff] %v7270_v5  ;;  %v7272_v56 = vadd.f32 %v3613_v38, %v3460_v39  ;;  %v3462_v52 = vpop.f32.mrf.mxu0  ;;  %v4095_v5 = vsub.s32 0, %v7027_v7 }
 0x24f   : > { %v3615_v26 = vpop.f32.mrf.mxu1 }
 0x250   : > { %7886 = vst [vmem:[#allocation25_spill] sm:$0xff] %v7272_v56  ;;  %v7274_v12 = vadd.f32 %v3615_v26, %v3462_v52  ;;  %v3464_v30 = vpop.f32.mrf.mxu0  ;;  %v7324_v32 = vrot.slane %v4091_v51, %v4095_v5 }
 0x251   : > { %v3617_v43 = vpop.f32.mrf.mxu1 }
 0x252   : > { %7887 = vst [vmem:[#allocation52_spill] sm:$0xff] %v7274_v12  ;;  %v7276_v36 = vadd.f32 %v3617_v43, %v3464_v30  ;;  %v3468_v9 = vpop.f32.mrf.mxu0 }
 0x253   : > { %v3621_v20 = vpop.f32.mrf.mxu1 }
 0x254   : > { %7888 = vst [vmem:[#allocation37_spill] sm:$0xff] %v7276_v36  ;;  %v7278_v44 = vadd.f32 %v3621_v20, %v3468_v9  ;;  %v3470_v54 = vpop.f32.mrf.mxu0 }
 0x255   : > { %v3623_v48 = vpop.f32.mrf.mxu1 }
 0x256   : > { %7889 = vst [vmem:[#allocation26_spill] sm:$0xff] %v7278_v44  ;;  %v7280_v6 = vadd.f32 %v3623_v48, %v3470_v54  ;;  %v3472_v62 = vpop.f32.mrf.mxu0 }
 0x257   : > { %v3625_v63 = vpop.f32.mrf.mxu1 }
 0x258   : > { %7890 = vst [vmem:[#allocation27_spill] sm:$0xff] %v7280_v6  ;;  %v7282_v59 = vadd.f32 %v3625_v63, %v3472_v62  ;;  %v3474_v3 = vpop.f32.mrf.mxu0 }
 0x259   : > { %v3627_v50 = vpop.f32.mrf.mxu1 }
 0x25a   : > { %7891 = vst [vmem:[#allocation54_spill] sm:$0xff] %v7282_v59  ;;  %v7284_v40 = vadd.f32 %v3627_v50, %v3474_v3  ;;  %v3478_v28 = vpop.f32.mrf.mxu0 }
 0x25b   : > { %v3631_v39 = vpop.f32.mrf.mxu1 }
 0x25c   : > { %7892 = vst [vmem:[#allocation28_spill] sm:$0xff] %v7284_v40  ;;  %v7286_v38 = vadd.f32 %v3631_v39, %v3478_v28  ;;  %v3480_v52 = vpop.f32.mrf.mxu0 }
 0x25d   : > { %v3633_v26 = vpop.f32.mrf.mxu1 }
 0x25e   : > { %7893 = vst [vmem:[#allocation29_spill] sm:$0xff] %v7286_v38  ;;  %v7288_v30 = vadd.f32 %v3633_v26, %v3480_v52  ;;  %v3482_v43 = vpop.f32.mrf.mxu0 }
 0x25f   : > { %v3635_v9 = vpop.f32.mrf.mxu1 }
 0x260   : > { %7894 = vst [vmem:[#allocation32_spill] sm:$0xff] %v7288_v30  ;;  %v7290_v20 = vadd.f32 %v3635_v9, %v3482_v43  ;;  %v3484_v54 = vpop.f32.mrf.mxu0 }
 0x261   : > { %v3637_v48 = vpop.f32.mrf.mxu1 }
 0x262   : > { %7895 = vst [vmem:[#allocation30_spill] sm:$0xff] %v7290_v20  ;;  %v7292_v62 = vadd.f32 %v3637_v48, %v3484_v54  ;;  %v3488_v63 = vpop.f32.mrf.mxu0 }
 0x263   : > { %v3641_v11 = vpop.f32.mrf.mxu1 }
 0x264   : > { %7896 = vst [vmem:[#allocation56_spill] sm:$0xff] %v7292_v62  ;;  %v7294_v3 = vadd.f32 %v3641_v11, %v3488_v63  ;;  %v3490_v50 = vpop.f32.mrf.mxu0 }
 0x265   : > { %v3643_v37 = vpop.f32.mrf.mxu1 }
 0x266   : > { %7897 = vst [vmem:[#allocation53_spill] sm:$0xff] %v7294_v3  ;;  %v7296_v28 = vadd.f32 %v3643_v37, %v3490_v50  ;;  %v3492_v39 = vpop.f32.mrf.mxu0 }
 0x267   : > { %v3645_v24 = vpop.f32.mrf.mxu1 }
 0x268   : > { %7898 = vst [vmem:[#allocation57_spill] sm:$0xff] %v7296_v28  ;;  %v7298_v52 = vadd.f32 %v3645_v24, %v3492_v39  ;;  %v3494_v26 = vpop.f32.mrf.mxu0 }
 0x269   : > { %v3647_v22 = vpop.f32.mrf.mxu1 }
 0x26a   : > { %7899 = vst [vmem:[#allocation58_spill] sm:$0xff] %v7298_v52  ;;  %v7300_v43 = vadd.f32 %v3647_v22, %v3494_v26  ;;  %v3498_v9 = vpop.f32.mrf.mxu0 }
 0x26b   : > { %v3651_v27 = vpop.f32.mrf.mxu1 }
 0x26c   : > { %7900 = vst [vmem:[#allocation31_spill] sm:$0xff] %v7300_v43  ;;  %v3500_v54 = vpop.f32.mrf.mxu0 }
 0x26d   : > { %v3653_v48 = vpop.f32.mrf.mxu1 }
 0x26e   : > { %v3502_v45 = vpop.f32.mrf.mxu0 }
 0x26f   : > { %v3655_v10 = vpop.f32.mrf.mxu1 }
 0x270   : > { %v3504_v11 = vpop.f32.mrf.mxu0  ;;  %v3656_v58 = vadd.f32 %v3655_v10, %v3502_v45 }
 0x271   : > { %v3657_v63 = vpop.f32.mrf.mxu1 }
 0x272   : > { %v3508_v19 = vpop.f32.mrf.mxu0  ;;  %v3658_v15 = vadd.f32 %v3657_v63, %v3504_v11 }
 0x273   : > { %v3661_v3 = vpop.f32.mrf.mxu1 }
 0x274   : > { %v3510_v37 = vpop.f32.mrf.mxu0  ;;  %v3662_v60 = vadd.f32 %v3661_v3, %v3508_v19 }
 0x275   : > { %v3663_v50 = vpop.f32.mrf.mxu1 }
 0x276   : > { %v3512_v28 = vpop.f32.mrf.mxu0  ;;  %v3664_v42 = vadd.f32 %v3663_v50, %v3510_v37  ;;  %v7911_v37 = vld [vmem:[#allocation59_spill] sm:$0xff]  ;;  %v7912_v50 = vld [vmem:[#allocation42_spill] sm:$0xff] }
 0x277   : > { %v3665_v62 = vpop.f32.mrf.mxu1 }
 0x278   : > { %v3514_v24 = vpop.f32.mrf.mxu0  ;;  %v7328_v1 = vadd.f32 %v3665_v62, %v3512_v28 }
 0x279   : > { %v3667_v39 = vpop.f32.mrf.mxu1 }
 0x27a   : > { %v3518_v52 = vpop.f32.mrf.mxu0  ;;  %v7330_v13 = vadd.f32 %v3667_v39, %v3514_v24 }
 0x27b   : > { %v3671_v34 = vpop.f32.mrf.mxu1 }
 0x27c   : > { %v3520_v22 = vpop.f32.mrf.mxu0 }
 0x27d   : > { %v3673_v26 = vpop.f32.mrf.mxu1 }
 0x27e   : > { %v3522_v43 = vpop.f32.mrf.mxu0  ;;  %v7335_v5 = vadd.f32 %v3673_v26, %v3520_v22 }
 0x27f   : > { %v3675_v16 = vpop.f32.mrf.mxu1 }
 0x280   : > { %v3524_v20 = vpop.f32.mrf.mxu0 }
 0x281   : > { %v3677_v46 = vpop.f32.mrf.mxu1 }
 0x282   : > { %v3528_v25 = vpop.f32.mrf.mxu0  ;;  %v7339_v45 = vadd.f32 %v3677_v46, %v3524_v20 }
 0x283   : > { %v3681_v17 = vpop.f32.mrf.mxu1 }
 0x284   : > { %v3530_v53 = vpop.f32.mrf.mxu0  ;;  %v7341_v19 = vadd.f32 %v3681_v17, %v3528_v25 }
 0x285   : > { %v3683_v30 = vpop.f32.mrf.mxu1 }
 0x286   : > { %v3532_v57 = vpop.f32.mrf.mxu0  ;;  %v7343_v10 = vadd.f32 %v3683_v30, %v3530_v53 }
 0x287   : > { %v3685_v55 = vpop.f32.mrf.mxu1 }
 0x288   : > { %v3534_v38 = vpop.f32.mrf.mxu0 }
 0x289   : > { %v3687_v40 = vpop.f32.mrf.mxu1 }
 0x28a   : > { %v3538_v14 = vpop.f32.mrf.mxu0 }
 0x28b   : > { %v3691_v61 = vpop.f32.mrf.mxu1 }
 0x28c   : > { %v3540_v59 = vpop.f32.mrf.mxu0  ;;  %v7352_v46 = vadd.f32 %v3691_v61, %v3538_v14 }
 0x28d   : > { %v3693_v6 = vpop.f32.mrf.mxu1 }
 0x28e   : > { %v3542_v44 = vpop.f32.mrf.mxu0  ;;  %v7354_v25 = vadd.f32 %v3693_v6, %v3540_v59 }
 0x28f   : > { %v3695_v36 = vpop.f32.mrf.mxu1 }
 0x290   : > { %v3544_v0 = vpop.f32.mrf.mxu0 }
 0x291   : > { %v3697_v18 = vpop.f32.mrf.mxu1 }
 0x292   : > { %v7302_v4 = vpop.f32.mrf.mxu0 }
 0x293   : > { %7901 = vst [vmem:[#allocation55_spill] sm:$0xff] %v7302_v4  ;;  %v7304_v41 = vpop.f32.mrf.mxu1 }
 0x294   : > { %7902 = vst [vmem:[#allocation33_spill] sm:$0xff] %v7304_v41  ;;  %v7306_v8 = vpop.f32.mrf.mxu0 }
 0x295   : > { %7903 = vst [vmem:[#allocation34_spill] sm:$0xff] %v7306_v8  ;;  %v7308_v33 = vpop.f32.mrf.mxu1  ;;  %v3652_v8 = vadd.f32 %v3651_v27, %v3498_v9 }
 0x296   : > { %7904 = vst [vmem:[#allocation62_spill] sm:$0xff] %v7308_v33  ;;  %v7310_v12 = vpop.f32.mrf.mxu0  ;;  %v3654_v33 = vadd.f32 %v3653_v48, %v3500_v54  ;;  %v7333_v54 = vadd.f32 %v3671_v34, %v3518_v52 }
 0x297   : > { %7905 = vst [vmem:[#allocation63_spill] sm:$0xff] %v7310_v12  ;;  %v7312_v56 = vpop.f32.mrf.mxu1 }
 0x298   : > { %7906 = vst [vmem:[#allocation64_spill] sm:$0xff] %v7312_v56  ;;  %v7319_v31 = vpop.f32.mrf.mxu0  ;;  %v7326_v56 = vrot.slane %v4091_v51, %v4099_v47  ;;  %v7337_v51 = vadd.f32 %v3675_v16, %v3522_v43  ;;  %v7910_v43 = vld [vmem:[#allocation23_spill] sm:$0xff] }
 0x299   : > { %7907 = vst [vmem:[#allocation65_spill] sm:$0xff] %v7319_v31  ;;  %v7321_v4 = vpop.f32.mrf.mxu1 }
 0x29a   : > { %7908 = vst [vmem:[#allocation66_spill] sm:$0xff] %v7321_v4  ;;  %v3744_v41 = vpop.f32.mrf.mxu0 }
 0x29b   : > { %v3804_v12 = vpop.f32.mrf.mxu1  ;;  %v3745_v4 = vadd.f32 %v3744_v41, %v7241_v29 }
 0x29c   : > { %v3805_v31 = vadd.f32 %v3804_v12, %v3652_v8  ;;  %v3746_v27 = vpop.f32.mrf.mxu0  ;;  %v7346_v8 = vadd.f32 %v3685_v55, %v3532_v57  ;;  %v7348_v12 = vadd.f32 %v3687_v40, %v3534_v38  ;;  %v7357_v40 = vadd.f32 %v3695_v36, %v3542_v44 }
 0x29d   : > { %v3806_v9 = vpop.f32.mrf.mxu1  ;;  %v3747_v47 = vadd.f32 %v3746_v27, %v7248_v35  ;;  %v3978_v53 = vrot.slane %v3745_v4, 2  ;;  %v7359_v38 = vadd.f32 %v3697_v18, %v3544_v0  ;;  %v7909_v18 = vld [vmem:[#allocation49_spill] sm:$0xff] }
 0x29e   : > { %v3807_v62 = vadd.f32 %v3806_v9, %v3654_v33  ;;  %v3748_v41 = vpop.f32.mrf.mxu0  ;;  %v4002_v17 = vrot.slane %v3805_v31, 2 }
 0x29f   : > { %v3808_v29 = vpop.f32.mrf.mxu1  ;;  %v3749_v34 = vadd.f32 %v3748_v41, %v7255_v2  ;;  %v3979_v2 = vrot.slane %v3747_v47, 2 }
 0x2a0   : > { %v3809_v16 = vadd.f32 %v3808_v29, %v3656_v58  ;;  %v3750_v30 = vpop.f32.mrf.mxu0  ;;  %v4003_v3 = vrot.slane %v3807_v62, 2  ;;  %v7913_v62 = vld [vmem:[#allocation50_spill] sm:$0xff] }
 0x2a1   : > { %v3810_v35 = vpop.f32.mrf.mxu1  ;;  %v3980_v33 = vrot.slane %v3749_v34, 2  ;;  %v3751_v55 = vadd.f32 %v3750_v30, %v7260_v21 }
 0x2a2   : > { %v4004_v20 = vrot.slane %v3809_v16, 2  ;;  %v3811_v57 = vadd.f32 %v3810_v35, %v3658_v15  ;;  %v3754_v58 = vpop.f32.mrf.mxu0 }
 0x2a3   : > { %v3814_v61 = vpop.f32.mrf.mxu1  ;;  %v4057_v31 = vsel %vm4026_vm1, %v3978_v53, %v3980_v33  ;;  %v3981_v14 = vrot.slane %v3751_v55, 2  ;;  %v3755_v0 = vadd.f32 %v3754_v58, %v7909_v18  ;;  %v7914_v55 = vld [vmem:[#allocation60_spill] sm:$0xff] }
 0x2a4   : > { %v4041_v4 = vsel %vm4026_vm1, %v4002_v17, %v4004_v20  ;;  %v4005_v6 = vrot.slane %v3811_v57, 2  ;;  %v4059_v21 = vadd.f32 %v4057_v31, %v7041_v49  ;;  %v3815_v36 = vadd.f32 %v3814_v61, %v3662_v60  ;;  %v3756_v44 = vpop.f32.mrf.mxu0  ;;  %v7917_v61 = vld [vmem:[#allocation40_spill] sm:$0xff] }
 0x2a5   : > { %v4075_v15 = vadd.f32 %v4041_v4, %v7159_v23  ;;  %v3816_v59 = vpop.f32.mrf.mxu1  ;;  %v4058_v28 = vsel %vm4026_vm1, %v3979_v2, %v3981_v14  ;;  %v3757_v48 = vadd.f32 %v3756_v44, %v7910_v43  ;;  %v3982_v22 = vrot.slane %v3755_v0, 2  ;;  %v7915_v2 = vld [vmem:[#allocation13_spill] sm:$0xff]  ;;  %v7922_v0 = vld [vmem:[#allocation47_spill] sm:$0xff] }
 0x2a6   : > { %v4042_v52 = vsel %vm4026_vm1, %v4003_v3, %v4005_v6  ;;  %v3817_v11 = vadd.f32 %v3816_v59, %v3664_v42  ;;  %v4103_v63 = vadd.f32 %v7324_v32, %v4059_v21  ;;  %v4060_v23 = vadd.f32 %v4058_v28, %v7911_v37  ;;  %v3758_v60 = vpop.f32.mrf.mxu0  ;;  %v7916_v3 = vld [vmem:[#allocation16_spill] sm:$0xff]  ;;  %v7919_v21 = vld [vmem:[#allocation33_spill] sm:$0xff] }
 0x2a7   : > { %v4119_v49 = vadd.f32 %v7324_v32, %v4075_v15  ;;  %v4076_v24 = vadd.f32 %v4042_v52, %v7912_v50  ;;  %v3818_v39 = vpop.f32.mrf.mxu1  ;;  %v4006_v26 = vrot.slane %v3815_v36, 2  ;;  %v3983_v27 = vrot.slane %v3757_v48, 2  ;;  %v7920_v15 = vld [vmem:[#allocation34_spill] sm:$0xff] }
 0x2a8   : > { %v4007_v9 = vrot.slane %v3817_v11, 2  ;;  %4135 = vst [vmem:[%s7379_s30] sm:$0xff] %v4103_v63  ;;  %v4104_v42 = vadd.f32 %v7326_v56, %v4060_v23  ;;  %v3759_v41 = vadd.f32 %v3758_v60, %v7913_v62  ;;  %v3819_v29 = vadd.f32 %v3818_v39, %v7328_v1  ;;  %v3760_v34 = vpop.f32.mrf.mxu0  ;;  %v7923_v63 = vld [vmem:[#allocation63_spill] sm:$0xff]  ;;  %v7925_v23 = vld [vmem:[#allocation65_spill] sm:$0xff]  ;;  %v7926_v50 = vld [vmem:[#allocation66_spill] sm:$0xff] }
 0x2a9   : > { %4151 = vst [vmem:[%s7379_s30 + $0x80] sm:$0xff] %v4119_v49  ;;  %v4120_v47 = vadd.f32 %v7326_v56, %v4076_v24  ;;  %v3820_v16 = vpop.f32.mrf.mxu1  ;;  %v4055_v53 = vsel %vm4026_vm1, %v3980_v33, %v3982_v22  ;;  %v4039_v17 = vsel %vm4026_vm1, %v4004_v20, %v4006_v26  ;;  %v4056_v30 = vsel %vm4026_vm1, %v3981_v14, %v3983_v27  ;;  %v7918_v20 = vld [vmem:[#allocation55_spill] sm:$0xff]  ;;  %v7924_v49 = vld [vmem:[#allocation64_spill] sm:$0xff]  ;;  %v7928_v27 = vld [vmem:[#allocation25_spill] sm:$0xff] }
 0x2aa   : > { %v4040_v35 = vsel %vm4026_vm1, %v4005_v6, %v4007_v9  ;;  %4136 = vst [vmem:[%s7379_s30 + $0x8] sm:$0xff] %v4104_v42  ;;  %v4061_v57 = vadd.f32 %v4055_v53, %v7914_v55  ;;  %v4077_v1 = vadd.f32 %v4039_v17, %v7915_v2  ;;  %v4062_v58 = vadd.f32 %v4056_v30, %v7916_v3  ;;  %v3764_v33 = vpop.f32.mrf.mxu0  ;;  %v7921_v6 = vld [vmem:[#allocation62_spill] sm:$0xff]  ;;  %v7927_v60 = vld [vmem:[#allocation51_spill] sm:$0xff]  ;;  %v7929_v53 = vld [vmem:[#allocation52_spill] sm:$0xff] }
 0x2ab   : > { %4152 = vst [vmem:[%s7379_s30 + $0x88] sm:$0xff] %v4120_v47  ;;  %v4078_v31 = vadd.f32 %v4040_v35, %v7917_v61  ;;  %v3824_v4 = vpop.f32.mrf.mxu1  ;;  %v7403_v14 = vadd.f32 %v7919_v21, %v7918_v20  ;;  %v7407_v18 = vadd.f32 %v7921_v6, %v7920_v15  ;;  %v3761_v36 = vadd.f32 %v3760_v34, %v7922_v0  ;;  %v7932_v15 = vld [vmem:[#allocation17_spill] sm:$0xff]  ;;  %v7933_v0 = vld [vmem:[#allocation44_spill] sm:$0xff] }
 0x2ac   : > { %v3821_v44 = vadd.f32 %v3820_v16, %v7330_v13  ;;  %v4105_v59 = vadd.f32 %v7324_v32, %v4061_v57  ;;  %v4121_v28 = vadd.f32 %v7324_v32, %v4077_v1  ;;  %v4106_v52 = vadd.f32 %v7326_v56, %v4062_v58  ;;  %v3766_v48 = vpop.f32.mrf.mxu0  ;;  %v7930_v58 = vld [vmem:[#allocation61_spill] sm:$0xff] }
 0x2ad   : > { %v4122_v43 = vadd.f32 %v7326_v56, %v4078_v31  ;;  %v3826_v11 = vpop.f32.mrf.mxu1  ;;  %v7417_v37 = vadd.f32 %v7924_v49, %v7923_v63  ;;  %v7421_v24 = vadd.f32 %v7926_v50, %v7925_v23  ;;  %v3765_v13 = vadd.f32 %v3764_v33, %v7927_v60  ;;  %v7931_v31 = vld [vmem:[#allocation20_spill] sm:$0xff] }
 0x2ae   : > { %v3825_v39 = vadd.f32 %v3824_v4, %v7333_v54  ;;  %4137 = vst [vmem:[%s7379_s30 + $0x10] sm:$0xff] %v4105_v59  ;;  %4153 = vst [vmem:[%s7379_s30 + $0x90] sm:$0xff] %v4121_v28  ;;  %v3984_v22 = vrot.slane %v3759_v41, 2  ;;  %v4008_v26 = vrot.slane %v3819_v29, 2  ;;  %v3767_v9 = vadd.f32 %v3766_v48, %v7928_v27  ;;  %v3768_v47 = vpop.f32.mrf.mxu0 }
 0x2af   : > { %4138 = vst [vmem:[%s7379_s30 + $0x18] sm:$0xff] %v4106_v52  ;;  %4154 = vst [vmem:[%s7379_s30 + $0x98] sm:$0xff] %v4122_v43  ;;  %v3827_v42 = vadd.f32 %v3826_v11, %v7335_v5  ;;  %v3828_v62 = vpop.f32.mrf.mxu1  ;;  %v3986_v34 = vrot.slane %v3765_v13, 2  ;;  %v3769_v17 = vadd.f32 %v3768_v47, %v7929_v53  ;;  %v3985_v35 = vrot.slane %v3761_v36, 2  ;;  %v7934_v43 = vld [vmem:[#allocation39_spill] sm:$0xff]  ;;  %v7935_v11 = vld [vmem:[#allocation41_spill] sm:$0xff] }
 0x2b0   : > { %v4010_v16 = vrot.slane %v3825_v39, 2  ;;  %v3829_v30 = vadd.f32 %v3828_v62, %v7337_v51  ;;  %v4009_v54 = vrot.slane %v3821_v44, 2  ;;  %v3987_v55 = vrot.slane %v3767_v9, 2  ;;  %v3770_v2 = vpop.f32.mrf.mxu0  ;;  %v7936_v13 = vld [vmem:[#allocation37_spill] sm:$0xff]  ;;  %v7937_v9 = vld [vmem:[#allocation26_spill] sm:$0xff] }
 0x2b1   : > { %v4011_v57 = vrot.slane %v3827_v42, 2  ;;  %v3830_v1 = vpop.f32.mrf.mxu1  ;;  %v4053_v41 = vsel %vm4026_vm1, %v3984_v22, %v3986_v34  ;;  %v3988_v29 = vrot.slane %v3769_v17, 2  ;;  %v3771_v39 = vadd.f32 %v3770_v2, %v7936_v13  ;;  %v7938_v17 = vld [vmem:[#allocation27_spill] sm:$0xff]  ;;  %v7939_v2 = vld [vmem:[#allocation54_spill] sm:$0xff]  ;;  %v7946_v13 = vld [vmem:[#allocation32_spill] sm:$0xff] }
 0x2b2   : > { %v4037_v5 = vsel %vm4026_vm1, %v4008_v26, %v4010_v16  ;;  %v4012_v3 = vrot.slane %v3829_v30, 2  ;;  %v4063_v61 = vadd.f32 %v4053_v41, %v7930_v58  ;;  %v4054_v51 = vsel %vm4026_vm1, %v3985_v35, %v3987_v55  ;;  %v3774_v20 = vpop.f32.mrf.mxu0 }
 0x2b3   : > { %v4079_v33 = vadd.f32 %v4037_v5, %v7931_v31  ;;  %v4038_v4 = vsel %vm4026_vm1, %v4009_v54, %v4011_v57  ;;  %v3834_v21 = vpop.f32.mrf.mxu1  ;;  %v4064_v6 = vadd.f32 %v4054_v51, %v7932_v15  ;;  %v4051_v44 = vsel %vm4026_vm1, %v3986_v34, %v3988_v29  ;;  %v7940_v31 = vld [vmem:[#allocation35_spill] sm:$0xff] }
 0x2b4   : > { %v4080_v36 = vadd.f32 %v4038_v4, %v7933_v0  ;;  %v4035_v59 = vsel %vm4026_vm1, %v4010_v16, %v4012_v3  ;;  %v4107_v28 = vadd.f32 %v7324_v32, %v4063_v61  ;;  %v4065_v48 = vadd.f32 %v4051_v44, %v7934_v43  ;;  %v3776_v49 = vpop.f32.mrf.mxu0 }
 0x2b5   : > { %v4123_v52 = vadd.f32 %v7324_v32, %v4079_v33  ;;  %v4081_v63 = vadd.f32 %v4035_v59, %v7935_v11  ;;  %v3836_v23 = vpop.f32.mrf.mxu1  ;;  %v4108_v50 = vadd.f32 %v7326_v56, %v4064_v6  ;;  %v3831_v22 = vadd.f32 %v3830_v1, %v7339_v45  ;;  %v7941_v33 = vld [vmem:[#allocation45_spill] sm:$0xff]  ;;  %v7944_v11 = vld [vmem:[#allocation38_spill] sm:$0xff] }
 0x2b6   : > { %v4124_v60 = vadd.f32 %v7326_v56, %v4080_v36  ;;  %4139 = vst [vmem:[%s7379_s30 + $0x20] sm:$0xff] %v4107_v28  ;;  %v4109_v26 = vadd.f32 %v7324_v32, %v4065_v48  ;;  %v3775_v42 = vadd.f32 %v3774_v20, %v7937_v9  ;;  %v3835_v47 = vadd.f32 %v3834_v21, %v7341_v19  ;;  %v3778_v62 = vpop.f32.mrf.mxu0 }
 0x2b7   : > { %4155 = vst [vmem:[%s7379_s30 + $0xa0] sm:$0xff] %v4123_v52  ;;  %v4125_v27 = vadd.f32 %v7324_v32, %v4081_v63  ;;  %v3838_v34 = vpop.f32.mrf.mxu1  ;;  %4140 = vst [vmem:[%s7379_s30 + $0x28] sm:$0xff] %v4108_v50  ;;  %v3989_v16 = vrot.slane %v3771_v39, 2  ;;  %v4013_v53 = vrot.slane %v3831_v22, 2  ;;  %v3777_v30 = vadd.f32 %v3776_v49, %v7938_v17  ;;  %v7945_v49 = vld [vmem:[#allocation43_spill] sm:$0xff] }
 0x2b8   : > { %4156 = vst [vmem:[%s7379_s30 + $0xa8] sm:$0xff] %v4124_v60  ;;  %v3837_v45 = vadd.f32 %v3836_v23, %v7343_v10  ;;  %4141 = vst [vmem:[%s7379_s30 + $0x30] sm:$0xff] %v4109_v26  ;;  %v3990_v35 = vrot.slane %v3775_v42, 2  ;;  %v4014_v54 = vrot.slane %v3835_v47, 2  ;;  %v3779_v1 = vadd.f32 %v3778_v62, %v7939_v2  ;;  %v3780_v5 = vpop.f32.mrf.mxu0 }
 0x2b9   : > { %4157 = vst [vmem:[%s7379_s30 + $0xb0] sm:$0xff] %v4125_v27  ;;  %v3839_v41 = vadd.f32 %v3838_v34, %v7346_v8  ;;  %v3840_v19 = vpop.f32.mrf.mxu1  ;;  %v4052_v29 = vsel %vm4026_vm1, %v3987_v55, %v3989_v16  ;;  %v4036_v3 = vsel %vm4026_vm1, %v4011_v57, %v4013_v53  ;;  %v3991_v58 = vrot.slane %v3777_v30, 2  ;;  %v7942_v8 = vld [vmem:[#allocation28_spill] sm:$0xff]  ;;  %v7943_v55 = vld [vmem:[#allocation29_spill] sm:$0xff]  ;;  %v7948_v53 = vld [vmem:[#allocation18_spill] sm:$0xff] }
 0x2ba   : > { %v4015_v61 = vrot.slane %v3837_v45, 2  ;;  %v4066_v10 = vadd.f32 %v4052_v29, %v7940_v31  ;;  %v4082_v51 = vadd.f32 %v4036_v3, %v7941_v33  ;;  %v3992_v4 = vrot.slane %v3779_v1, 2  ;;  %v3784_v21 = vpop.f32.mrf.mxu0  ;;  %v7947_v34 = vld [vmem:[#allocation9_spill] sm:$0xff]  ;;  %v7950_v1 = vld [vmem:[#allocation19_spill] sm:$0xff] }
 0x2bb   : > { %v4016_v20 = vrot.slane %v3839_v41, 2  ;;  %v3844_v15 = vpop.f32.mrf.mxu1  ;;  %v3781_v6 = vadd.f32 %v3780_v5, %v7942_v8  ;;  %v3841_v0 = vadd.f32 %v3840_v19, %v7348_v12  ;;  %v3785_v36 = vadd.f32 %v3784_v21, %v7943_v55 }
 0x2bc   : > { %v3845_v57 = vadd.f32 %v3844_v15, %v7352_v46  ;;  %v4110_v44 = vadd.f32 %v7326_v56, %v4066_v10  ;;  %v4126_v59 = vadd.f32 %v7326_v56, %v4082_v51  ;;  %v4049_v28 = vsel %vm4026_vm1, %v3990_v35, %v3992_v4  ;;  %v3786_v43 = vpop.f32.mrf.mxu0  ;;  %v7952_v15 = vld [vmem:[#allocation36_spill] sm:$0xff] }
 0x2bd   : > { %v4033_v52 = vsel %vm4026_vm1, %v4014_v54, %v4016_v20  ;;  %v3846_v48 = vpop.f32.mrf.mxu1  ;;  %v4067_v63 = vadd.f32 %v4049_v28, %v7944_v11  ;;  %v3993_v23 = vrot.slane %v3781_v6, 2  ;;  %v4017_v50 = vrot.slane %v3841_v0, 2  ;;  %v7949_v54 = vld [vmem:[#allocation10_spill] sm:$0xff] }
 0x2be   : > { %v4083_v12 = vadd.f32 %v4033_v52, %v7945_v49  ;;  %4142 = vst [vmem:[%s7379_s30 + $0x38] sm:$0xff] %v4110_v44  ;;  %4158 = vst [vmem:[%s7379_s30 + $0xb8] sm:$0xff] %v4126_v59  ;;  %v3994_v46 = vrot.slane %v3785_v36, 2  ;;  %v4018_v60 = vrot.slane %v3845_v57, 2  ;;  %v3787_v39 = vadd.f32 %v3786_v43, %v7946_v13  ;;  %v3788_v26 = vpop.f32.mrf.mxu0  ;;  %v7953_v6 = vld [vmem:[#allocation46_spill] sm:$0xff]  ;;  %v7954_v44 = vld [vmem:[#allocation56_spill] sm:$0xff] }
 0x2bf   : > { %v3847_v22 = vadd.f32 %v3846_v48, %v7354_v25  ;;  %v3848_v27 = vpop.f32.mrf.mxu1  ;;  %v4111_v9 = vadd.f32 %v7324_v32, %v4067_v63  ;;  %v4050_v47 = vsel %vm4026_vm1, %v3991_v58, %v3993_v23  ;;  %v4034_v62 = vsel %vm4026_vm1, %v4015_v61, %v4017_v50  ;;  %v7951_v58 = vld [vmem:[#allocation30_spill] sm:$0xff]  ;;  %v7955_v52 = vld [vmem:[#allocation53_spill] sm:$0xff] }
 0x2c0   : > { %v4127_v42 = vadd.f32 %v7324_v32, %v4083_v12  ;;  %v4068_v16 = vadd.f32 %v4050_v47, %v7947_v34  ;;  %v4084_v17 = vadd.f32 %v4034_v62, %v7948_v53  ;;  %v4047_v30 = vsel %vm4026_vm1, %v3992_v4, %v3994_v46  ;;  %v3790_v45 = vpop.f32.mrf.mxu0  ;;  %v7956_v49 = vld [vmem:[#allocation57_spill] sm:$0xff]  ;;  %v7958_v34 = vld [vmem:[#allocation31_spill] sm:$0xff] }
 0x2c1   : > { %v4031_v25 = vsel %vm4026_vm1, %v4016_v20, %v4018_v60  ;;  %v3850_v35 = vpop.f32.mrf.mxu1  ;;  %4143 = vst [vmem:[%s7379_s30 + $0x40] sm:$0xff] %v4111_v9  ;;  %v4069_v2 = vadd.f32 %v4047_v30, %v7949_v54  ;;  %v3995_v5 = vrot.slane %v3787_v39, 2  ;;  %v4019_v19 = vrot.slane %v3847_v22, 2  ;;  %v7961_v54 = vld [vmem:[#allocation11_spill] sm:$0xff] }
 0x2c2   : > { %4159 = vst [vmem:[%s7379_s30 + $0xc0] sm:$0xff] %v4127_v42  ;;  %v4085_v41 = vadd.f32 %v4031_v25, %v7950_v1  ;;  %v4112_v29 = vadd.f32 %v7326_v56, %v4068_v16  ;;  %v4128_v3 = vadd.f32 %v7326_v56, %v4084_v17  ;;  %v3789_v61 = vadd.f32 %v3788_v26, %v7951_v58  ;;  %v3794_v10 = vpop.f32.mrf.mxu0  ;;  %v7957_v26 = vld [vmem:[#allocation58_spill] sm:$0xff]  ;;  %v7960_v25 = vld [vmem:[#allocation48_spill] sm:$0xff] }
 0x2c3   : > { %v3849_v31 = vadd.f32 %v3848_v27, %v7357_v40  ;;  %v3854_v33 = vpop.f32.mrf.mxu1  ;;  %v4113_v51 = vadd.f32 %v7324_v32, %v4069_v2  ;;  %v4048_v20 = vsel %vm4026_vm1, %v3993_v23, %v3995_v5  ;;  %v4032_v21 = vsel %vm4026_vm1, %v4017_v50, %v4019_v19  ;;  %v7959_v17 = vld [vmem:[#allocation14_spill] sm:$0xff]  ;;  %v7962_v1 = vld [vmem:[#allocation24_spill] sm:$0xff] }
 0x2c4   : > { %v4129_v4 = vadd.f32 %v7324_v32, %v4085_v41  ;;  %4144 = vst [vmem:[%s7379_s30 + $0x48] sm:$0xff] %v4112_v29  ;;  %4160 = vst [vmem:[%s7379_s30 + $0xc8] sm:$0xff] %v4128_v3  ;;  %v4070_v8 = vadd.f32 %v4048_v20, %v7952_v15  ;;  %v4086_v0 = vadd.f32 %v4032_v21, %v7953_v6  ;;  %v3996_v40 = vrot.slane %v3789_v61, 2  ;;  %v3796_v36 = vpop.f32.mrf.mxu0  ;;  %v7964_v20 = vld [vmem:[#allocation21_spill] sm:$0xff]  ;;  %v7965_v6 = vld [vmem:[#allocation12_spill] sm:$0xff] }
 0x2c5   : > { %v4020_v55 = vrot.slane %v3849_v31, 2  ;;  %v3856_v57 = vpop.f32.mrf.mxu1  ;;  %4145 = vst [vmem:[%s7379_s30 + $0x50] sm:$0xff] %v4113_v51  ;;  %v3791_v59 = vadd.f32 %v3790_v45, %v7954_v44  ;;  %v3851_v28 = vadd.f32 %v3850_v35, %v7359_v38  ;;  %v3795_v43 = vadd.f32 %v3794_v10, %v7955_v52  ;;  %v7963_v51 = vld [vmem:[#allocation15_spill] sm:$0xff] }
 0x2c6   : > { %4161 = vst [vmem:[%s7379_s30 + $0xd0] sm:$0xff] %v4129_v4  ;;  %v3855_v48 = vadd.f32 %v3854_v33, %v7403_v14  ;;  %v4114_v11 = vadd.f32 %v7326_v56, %v4070_v8  ;;  %v4130_v63 = vadd.f32 %v7326_v56, %v4086_v0  ;;  %v3797_v12 = vadd.f32 %v3796_v36, %v7956_v49  ;;  %v3798_v50 = vpop.f32.mrf.mxu0 }
 0x2c7   : > { %v3857_v23 = vadd.f32 %v3856_v57, %v7407_v18  ;;  %v3858_v46 = vpop.f32.mrf.mxu1  ;;  %v3997_v60 = vrot.slane %v3791_v59, 2  ;;  %v4021_v13 = vrot.slane %v3851_v28, 2  ;;  %v3998_v39 = vrot.slane %v3795_v43, 2 }
 0x2c8   : > { %v4022_v38 = vrot.slane %v3855_v48, 2  ;;  %4146 = vst [vmem:[%s7379_s30 + $0x58] sm:$0xff] %v4114_v11  ;;  %4162 = vst [vmem:[%s7379_s30 + $0xd8] sm:$0xff] %v4130_v63  ;;  %v3999_v22 = vrot.slane %v3797_v12, 2  ;;  %v3799_v27 = vadd.f32 %v3798_v50, %v7957_v26  ;;  %v3859_v9 = vadd.f32 %v3858_v46, %v7417_v37  ;;  %v3800_v42 = vpop.f32.mrf.mxu0 }
 0x2c9   : > { %v4023_v14 = vrot.slane %v3857_v23, 2  ;;  %v3860_v47 = vpop.f32.mrf.mxu1  ;;  %v4045_v18 = vsel %vm4026_vm1, %v3996_v40, %v3998_v39  ;;  %v3801_v16 = vadd.f32 %v3800_v42, %v7958_v34  ;;  %v7966_v40 = vld [vmem:[#allocation22_spill] sm:$0xff] }
 0x2ca   : > { %v4029_v62 = vsel %vm4026_vm1, %v4020_v55, %v4022_v38  ;;  %v3861_v53 = vadd.f32 %v3860_v47, %v7421_v24  ;;  %v4071_v30 = vadd.f32 %v4045_v18, %v7959_v17  ;;  %v4046_v37 = vsel %vm4026_vm1, %v3997_v60, %v3999_v22 }
 0x2cb   : > { %v4087_v45 = vadd.f32 %v4029_v62, %v7960_v25  ;;  %v4030_v35 = vsel %vm4026_vm1, %v4021_v13, %v4023_v14  ;;  %v4072_v2 = vadd.f32 %v4046_v37, %v7961_v54  ;;  %v4000_v5 = vrot.slane %v3799_v27, 2 }
 0x2cc   : > { %v4088_v41 = vadd.f32 %v4030_v35, %v7962_v1  ;;  %v4024_v19 = vrot.slane %v3859_v9, 2  ;;  %v4115_v24 = vadd.f32 %v7324_v32, %v4071_v30  ;;  %v4001_v3 = vrot.slane %v3801_v16, 2 }
 0x2cd   : > { %v4131_v29 = vadd.f32 %v7324_v32, %v4087_v45  ;;  %v4025_v58 = vrot.slane %v3861_v53, 2  ;;  %v4116_v61 = vadd.f32 %v7326_v56, %v4072_v2  ;;  %v4043_v10 = vsel %vm4026_vm1, %v3998_v39, %v4000_v5 }
 0x2ce   : > { %v4132_v31 = vadd.f32 %v7326_v56, %v4088_v41  ;;  %v4027_v33 = vsel %vm4026_vm1, %v4022_v38, %v4024_v19  ;;  %4147 = vst [vmem:[%s7379_s30 + $0x60] sm:$0xff] %v4115_v24  ;;  %v4073_v4 = vadd.f32 %v4043_v10, %v7963_v51  ;;  %v4044_v15 = vsel %vm4026_vm1, %v3999_v22, %v4001_v3 }
 0x2cf   : > { %4163 = vst [vmem:[%s7379_s30 + $0xe0] sm:$0xff] %v4131_v29  ;;  %v4089_v21 = vadd.f32 %v4027_v33, %v7964_v20  ;;  %v4028_v8 = vsel %vm4026_vm1, %v4023_v14, %v4025_v58  ;;  %4148 = vst [vmem:[%s7379_s30 + $0x68] sm:$0xff] %v4116_v61  ;;  %v4074_v0 = vadd.f32 %v4044_v15, %v7965_v6 }
 0x2d0   : > { %4164 = vst [vmem:[%s7379_s30 + $0xe8] sm:$0xff] %v4132_v31  ;;  %v4090_v55 = vadd.f32 %v4028_v8, %v7966_v40  ;;  %v4117_v36 = vadd.f32 %v7324_v32, %v4073_v4 }
 0x2d1   : > { %v4133_v57 = vadd.f32 %v7324_v32, %v4089_v21  ;;  %v4118_v7 = vadd.f32 %v7326_v56, %v4074_v0 }
 0x2d2   : > { %v4134_v44 = vadd.f32 %v7326_v56, %v4090_v55  ;;  %4149 = vst [vmem:[%s7379_s30 + $0x70] sm:$0xff] %v4117_v36 }
 0x2d3   : > { %4165 = vst [vmem:[%s7379_s30 + $0xf0] sm:$0xff] %v4133_v57  ;;  %4150 = vst [vmem:[%s7379_s30 + $0x78] sm:$0xff] %v4118_v7 }
 0x2d4   : > { %4166 = vst [vmem:[%s7379_s30 + $0xf8] sm:$0xff] %v4134_v44 }
 0x2d5   : > { %5281 = shalt.err (!%p5278_p9)
}
 0x2d6   : > { %s5282_s11 = scalar_lea.hbm %s7583_s5, 4096  ;;  %s5286_s10 = scalar_lea.hbm %s7646_s4, 16384 }
 0x2d7   : > { %p5283_p10 = scmp.ne.s32.totalorder %s7583_s5, %s5282_s11  ;;  %p5287_p13 = scmp.lt.s32.totalorder %s7583_s5, %s7646_s4 }
 0x2d8   : > { %p5288_p0 = scmp.lt.s32.totalorder %s5286_s10, %s5282_s11 }
 0x2d9   : > { %p5284_p11 = pnand %p5283_p10, %p5441_p3 }
 0x2da   : > { %p5289_p1 = por %p5288_p0, %p5287_p13 }
 0x2db   : > { %p5285_p12 = pneg %p5284_p11 }
 0x2dd   : > { %p5290_p2 = pnand %p5289_p1, %p5285_p12 }
 0x2df   : > { %5293 = shalt.err (!%p5290_p2)
}
 0x2e0   : > { %s5363_s27 = smov 256   ;;  %s5364_s18 = smov 16  }
 0x2e1   : > { %4707 = dma.vmem_to_hbm [thread:$0]  (%p5441_p3), %s7576_s19, 4096, %s7583_s5, %s7591_s24, %s5363_s27, %s5363_s27, %s5364_s18  }
 0x2e2 PF: > { %p4713_p4 = scmp.ge.s32.totalorder %s5360_s22, 2  ;;  %s4199_s25 = sand.u32 1, %s5332_s15  }
 0x2e3   : > { %s4200_s26 = scalar_lea.sflag [#allocation4], %s4199_s25 }
 0x2e4   : > { %p4710_p5 = pnand %p4713_p4, %p5450_p8 }
 0x2e6   : > { %p4711_p6 = pneg %p4710_p5 }
 0x2e8   : > { %5327 = dma.done.wait (%p4711_p6), %s4200_s26, 4096  }
 0x2e9   : > { %5329 = vsyncadd (%p4711_p6), %s4200_s26, 4294963200  ;;  %s17_s22 = sadd.s32 1, %s5360_s22   ;;  %s7967_s19 = sld [smem:[#allocation6_spill]] }
 0x2ea   : > { %p14_p7 = scmp.ge.s32.totalorder %s17_s22, 6   ;;  %s7968_s28 = sld [smem:[#allocation7_spill]] }
 0x2eb   : > { %s7969_s21 = sld [smem:[#allocation8_spill]]  ;;  %s7970_s15 = smov %s5336_s16 }
 0x2ec   : > { %s7971_s16 = smov %s5340_s17  ;;  %s7972_s17 = smov %s5459_s7 }
 0x2ed   : > { %s7973_s18 = smov %s5352_s20  ;;  %16 = sbr.rel (!%p14_p7) target bundleno = 5 (0x5), region = 77 }
 0x2f0   : > { %s7974_s20 = smov %s7968_s28 }
 0x2f2   :  { %4205 = vsyncpa [#allocation4], 1 }
 0x2f3   :  { %4207 = vsyncpa [#allocation4 + $0x1], 1 }

</bundles_post_ra>
